<compile_context>
chip_gen: v5e
topology: v5e:2x2
jax: 0.10.0
libtpu: 0.0.40
codegen_flags: <defaults>
</compile_context>

<pallas_src>
import functools

import jax
import jax.numpy as jnp
from jax.experimental import pallas as pl
from jax.experimental.pallas import tpu as pltpu


def _round_up(x, m):
    return ((x + m - 1) // m) * m


def _ib_kernel(x_ref, w_exp_ref, b_exp_ref, w_dw_ref, b_dw_ref,
               w_proj_ref, b_proj_ref, o_ref, *,
               H, W, p, k, stride, TB, TH_in, TH_out,
               Wp_al, Wacc_al, Wsel, Wo, use_residual):
    t = pl.program_id(1)

    # ---- 1) pointwise expand (1x1 conv == matmul on MXU) + folded BN + ReLU ----
    x4 = x_ref[...]                                        # (B, TH_in, Wp_al, Cin)
    B = x4.shape[0]
    cin = x4.shape[-1]
    x2d = x4.reshape(B * TH_in * Wp_al, cin)               # layout-preserving (Wp_al % align == 0)
    h2d = jnp.dot(x2d, w_exp_ref[...], preferred_element_type=jnp.float32)
    h2d = jnp.maximum(h2d + b_exp_ref[...], 0.0)
    ce = h2d.shape[-1]
    h4 = h2d.reshape(B, TH_in, Wp_al, ce)

    # Zero the halo (outside the real image): after bias+ReLU the zero-padded border
    # is no longer zero, so one VPU select restores exact conv zero-padding semantics.
    # The iota is built directly in h4's (sublane, sublane, lane) layout so the select
    # is pure VPU work (no lane<->sublane relayout).
    r0 = t * TB
    rows = jax.lax.broadcasted_iota(jnp.int32, (1, TH_in, Wp_al, 1), 1) + r0
    cols = jax.lax.broadcasted_iota(jnp.int32, (1, TH_in, Wp_al, 1), 2)
    valid = (rows >= p) & (rows < p + H) & (cols >= p) & (cols < p + W)
    h4 = jnp.where(valid, h4, 0.0)

    # ---- 2) depthwise k x k conv (VPU tap accumulation, f32) + folded BN + ReLU ----
    wdw = w_dw_ref[...]                                    # (k, k, ce) -- single ref read
    row_span = (TH_out - 1) * stride + 1
    acc = jnp.zeros((B, TH_out, Wacc_al, ce), jnp.float32)
    for dj in range(k):                                    # k column shifts total
        hcol = h4[:, :, dj:dj + Wacc_al, :]
        for di in range(k):                                # cheap leading-dim slices
            tap = hcol[:, di:di + row_span:stride, :, :]
            acc = acc + tap * wdw[di, dj]
    # Column-subsample to the strided output set BEFORE bias/ReLU/project so the
    # project matmul M (and its MXU pushes) is not inflated by the stride.
    if stride > 1:
        acc = acc[:, :, 0:(Wsel - 1) * stride + 1:stride, :]
    acc = jnp.maximum(acc + b_dw_ref[0], 0.0)

    # ---- 3) pointwise project (1x1 conv) + folded BN, no activation ----
    acc2d = acc.reshape(B * TH_out * Wsel, ce)             # layout-preserving (Wsel % align == 0)
    y2d = jnp.dot(acc2d.astype(w_proj_ref.dtype), w_proj_ref[...],
                  preferred_element_type=jnp.float32)
    y2d = y2d + b_proj_ref[...]
    co = y2d.shape[-1]
    y = y2d.reshape(B, TH_out, Wsel, co)[:, :, :Wo, :]

    # ---- 4) residual (stride == 1 and Cin == Cout) ----
    if use_residual:
        y = y + x4[:, p:p + TH_out, p:p + Wo, :]

    o_ref[...] = y.astype(o_ref.dtype)


def mnv4_inverted_bottleneck(x_nhwc, params, *, dw_kernel_size, stride,
                             compute_dtype=jnp.float32,
                             vmem_budget_bytes=12 * 1024 * 1024):
    """x_nhwc: (N, H, W, Cin) float32.  params: dict of BN-folded weights/biases."""
    N, H, W, Cin = x_nhwc.shape
    Cexp = params["w_exp"].shape[1]
    Cout = params["w_proj"].shape[1]
    k = dw_kernel_size
    p = k // 2
    Ho = (H + 2 * p - k) // stride + 1
    Wo = (W + 2 * p - k) // stride + 1
    use_residual = (stride == 1 and Cin == Cout)

    in_itemsize = jnp.dtype(compute_dtype).itemsize
    align = 8 * (4 // in_itemsize)            # sublane alignment (8 f32, 16 bf16)

    # ---------------- width geometry (sublane-aligned, NO channel padding) ----------
    Wsel = _round_up(Wo, align)               # project-matmul column count
    Wacc_al = _round_up((Wsel - 1) * stride + 1, align)
    Wp_al = _round_up(max(W + 2 * p, Wacc_al + k - 1), align)

    w_bytes = ((Cin * Cexp + k * k * Cexp + Cexp * Cout) * in_itemsize
               + (2 * Cexp + Cout) * 4)

    def footprint(th_out, b_tile=1):
        th_in = (th_out - 1) * stride + k
        f = th_in * Wp_al * Cin * in_itemsize * 2            # input block (double-buffered)
        f += th_in * Wp_al * Cexp * 4                        # expanded intermediate
        f += th_out * Wacc_al * Cexp * 4                     # depthwise accumulator
        f += th_out * Wo * Cout * 4 * 2                      # output block (double-buffered)
        return b_tile * f + 2 * w_bytes

    # ---------------- row tiling sized from the VMEM budget -------------------------
    TH_out = Ho
    while TH_out > 1 and footprint(TH_out) > vmem_budget_bytes:
        TH_out -= 1
    T = pl.cdiv(Ho, TH_out)
    TB = TH_out * stride                      # input rows advanced per output tile
    TH_in = (TH_out - 1) * stride + k         # input rows consumed per output tile

    # Batch fusion: amortize the ~0.35us fixed per-step cost for tiny images, but
    # keep >= 2 grid steps so both v7x TensorCores get work.
    B_tile = 1
    if T == 1:
        min_steps = 2 if N >= 2 else 1
        for d in range(N, 0, -1):
            if N % d == 0 and N // d >= min_steps and footprint(TH_out, d) <= vmem_budget_bytes:
                B_tile = d
                break
    num_btiles = N // B_tile

    # ---------------- wrapper-side prep (plain JAX, layout plumbing only) -----------
    total_rows = (T - 1) * TB + TH_in
    x_cast = x_nhwc.astype(compute_dtype)
    bot = max(0, total_rows - (H + p))
    xp = jnp.pad(x_cast, ((0, 0), (p, bot), (p, Wp_al - W - p), (0, 0)))
    if xp.shape[1] != total_rows:
        xp = xp[:, :total_rows]

    if T == 1:
        x_in = xp                                            # (N, TH_in, Wp_al, Cin): no halo dup
        x_index = lambda b, t: (b, 0, 0, 0)
    else:
        # Fallback for very large feature maps: overlapping row windows (halo rows
        # duplicated once in HBM).  See TODO(synk) in the header for the manual-DMA /
        # row-carry replacement.
        win = jnp.arange(T)[:, None] * TB + jnp.arange(TH_in)[None, :]
        x_in = xp[:, win].reshape(N * T, TH_in, Wp_al, Cin)
        x_index = lambda n, t: (n * T + t, 0, 0, 0)

    f32 = jnp.float32
    w_exp = params["w_exp"].astype(compute_dtype)
    b_exp = params["b_exp"].astype(f32)
    w_dw = params["w_dw"].astype(compute_dtype)
    b_dw = params["b_dw"].astype(f32)
    w_proj = params["w_proj"].astype(compute_dtype)
    b_proj = params["b_proj"].astype(f32)

    kernel = functools.partial(
        _ib_kernel, H=H, W=W, p=p, k=k, stride=stride,
        TB=TB, TH_in=TH_in, TH_out=TH_out,
        Wp_al=Wp_al, Wacc_al=Wacc_al, Wsel=Wsel, Wo=Wo,
        use_residual=use_residual)

    grid = (num_btiles, T)

    grid_spec = pltpu.PrefetchScalarGridSpec(
        num_scalar_prefetch=0,
        grid=grid,
        in_specs=[
            pl.BlockSpec((B_tile, TH_in, Wp_al, Cin), x_index),
            # Weight/bias operands are KB-scale with constant index maps; default
            # buffering is fine (pl.Buffered(1) would reclaim a little VMEM on v7x).
            pl.BlockSpec((Cin, Cexp), lambda b, t: (0, 0)),
            pl.BlockSpec((1, Cexp), lambda b, t: (0, 0)),
            pl.BlockSpec((k, k, Cexp), lambda b, t: (0, 0, 0)),
            pl.BlockSpec((1, Cexp), lambda b, t: (0, 0)),
            pl.BlockSpec((Cexp, Cout), lambda b, t: (0, 0)),
            pl.BlockSpec((1, Cout), lambda b, t: (0, 0)),
        ],
        out_specs=pl.BlockSpec((B_tile, TH_out, Wo, Cout), lambda b, t: (b, t, 0, 0)),
    )

    flops = (2 * N * total_rows * Wp_al * Cin * Cexp
             + 2 * k * k * N * T * TH_out * Wacc_al * Cexp
             + 2 * N * T * TH_out * Wsel * Cexp * Cout)
    bytes_accessed = (x_in.size * in_itemsize
                      + N * T * TH_out * Wo * Cout * 4
                      + w_bytes)
    cost = pl.CostEstimate(flops=int(flops), transcendentals=0,
                           bytes_accessed=int(bytes_accessed))

    out = pl.pallas_call(
        kernel,
        out_shape=jax.ShapeDtypeStruct((N, T * TH_out, Wo, Cout), x_nhwc.dtype),
        grid_spec=grid_spec,
        compiler_params=pltpu.CompilerParams(
            dimension_semantics=("parallel", "parallel"),
            vmem_limit_bytes=32 * 1024 * 1024),
        cost_estimate=cost,
    )(x_in, w_exp, b_exp, w_dw, b_dw, w_proj, b_proj)

    if T * TH_out != Ho:
        out = out[:, :Ho]                      # ragged last row tile (only when T > 1)
    return out


def _fold_bn(gamma, beta, mean, var, eps=1e-5):
    scale = gamma / jnp.sqrt(var + eps)
    bias = beta - mean * scale
    return scale, bias


def make_params(key, in_channels, out_channels, expanded_channels, dw_kernel_size):
    """Deterministic synthetic parameters; BN (eval mode) folded into conv."""
    ks = jax.random.split(key, 15)
    k = dw_kernel_size

    w_exp = jax.random.normal(ks[0], (in_channels, expanded_channels), jnp.float32) * 0.1
    w_dw = jax.random.normal(ks[1], (k, k, expanded_channels), jnp.float32) * 0.1
    w_proj = jax.random.normal(ks[2], (expanded_channels, out_channels), jnp.float32) * 0.1

    def bn_params(k0, k1, k2, k3, c):
        gamma = 1.0 + 0.1 * jax.random.normal(k0, (c,), jnp.float32)
        beta = 0.1 * jax.random.normal(k1, (c,), jnp.float32)
        mean = 0.1 * jax.random.normal(k2, (c,), jnp.float32)
        var = jnp.abs(jax.random.normal(k3, (c,), jnp.float32)) + 0.5
        return gamma, beta, mean, var

    s1, b1 = _fold_bn(*bn_params(ks[3], ks[4], ks[5], ks[6], expanded_channels))
    s2, b2 = _fold_bn(*bn_params(ks[7], ks[8], ks[9], ks[10], expanded_channels))
    s3, b3 = _fold_bn(*bn_params(ks[11], ks[12], ks[13], ks[14], out_channels))

    return {
        "w_exp": w_exp * s1[None, :],
        "b_exp": b1.reshape(1, -1),
        "w_dw": w_dw * s2[None, None, :],
        "b_dw": b2.reshape(1, -1),
        "w_proj": w_proj * s3[None, :],
        "b_proj": b3.reshape(1, -1),
    }


def reference_forward(x_nhwc, params, *, dw_kernel_size, stride):
    """Pure-JAX reference (lax conv), same folded-BN semantics."""
    Cexp = params["w_exp"].shape[1]
    Cout = params["w_proj"].shape[1]
    Cin = x_nhwc.shape[-1]
    p = dw_kernel_size // 2

    h = jnp.einsum("nhwc,ce->nhwe", x_nhwc, params["w_exp"]) + params["b_exp"][0]
    h = jnp.maximum(h, 0.0)

    w_dw = params["w_dw"].reshape(dw_kernel_size, dw_kernel_size, 1, Cexp)
    h = jax.lax.conv_general_dilated(
        h, w_dw, window_strides=(stride, stride),
        padding=[(p, p), (p, p)],
        dimension_numbers=("NHWC", "HWIO", "NHWC"),
        feature_group_count=Cexp)
    h = jnp.maximum(h + params["b_dw"][0], 0.0)

    y = jnp.einsum("nhwe,eo->nhwo", h, params["w_proj"]) + params["b_proj"][0]
    if stride == 1 and Cin == Cout:
        y = y + x_nhwc
    return y


if __name__ == "__main__":
    # Small shapes consistent with the module: NCHW input (2, 32, 16, 16),
    # expanded_channels=64, dw_kernel_size=3, stride=1 (residual active).
    N, Cin, H, W = 2, 32, 16, 16
    Cout, Cexp, k, stride = 32, 64, 3, 1

    key = jax.random.PRNGKey(0)
    kx, kp = jax.random.split(key)
    x_nchw = jax.random.normal(kx, (N, Cin, H, W), jnp.float32)
    params = make_params(kp, Cin, Cout, Cexp, k)

    # PyTorch convention is NCHW; kernel works in NHWC (channels -> lane axis).
    x_nhwc = jnp.transpose(x_nchw, (0, 2, 3, 1))

    fwd = jax.jit(functools.partial(mnv4_inverted_bottleneck,
                                    dw_kernel_size=k, stride=stride))
    out_nhwc = jax.block_until_ready(fwd(x_nhwc, params))
    out_nchw = jnp.transpose(out_nhwc, (0, 3, 1, 2))

    ref = reference_forward(x_nhwc, params, dw_kernel_size=k, stride=stride)
    assert out_nhwc.shape == ref.shape
    assert jnp.allclose(out_nhwc, ref, atol=1e-4, rtol=1e-4), "mismatch vs reference"

    print("KERNEL_OK")
</pallas_src>

<mosaic_0001>
module attributes {stable_mosaic.version = 11 : i64} {
  func.func @_ib_kernel(%arg0: i32, %arg1: i32, %arg2: memref<1x18x24x32xf32, #tpu.memory_space<vmem>>, %arg3: memref<32x64xf32, #tpu.memory_space<vmem>>, %arg4: memref<1x64xf32, #tpu.memory_space<vmem>>, %arg5: memref<3x3x64xf32, #tpu.memory_space<vmem>>, %arg6: memref<1x64xf32, #tpu.memory_space<vmem>>, %arg7: memref<64x32xf32, #tpu.memory_space<vmem>>, %arg8: memref<1x32xf32, #tpu.memory_space<vmem>>, %arg9: memref<1x16x16x32xf32, #tpu.memory_space<vmem>>) attributes {dimension_semantics = [#tpu.dimension_semantics<parallel>, #tpu.dimension_semantics<parallel>], iteration_bounds = array<i64: 2, 1>, scalar_prefetch = 0 : i64, scratch_operands = 0 : i64, tpu.core_type = #tpu.core_type<tc>, window_params = [{transform_indices = @transform_0, window_bounds = array<i64: 1, 18, 24, 32>}, {pipeline_mode = #tpu.pipeline_mode<synchronous>, transform_indices = @transform_1, window_bounds = array<i64: 32, 64>}, {pipeline_mode = #tpu.pipeline_mode<synchronous>, transform_indices = @transform_2, window_bounds = array<i64: 1, 64>}, {pipeline_mode = #tpu.pipeline_mode<synchronous>, transform_indices = @transform_3, window_bounds = array<i64: 3, 3, 64>}, {pipeline_mode = #tpu.pipeline_mode<synchronous>, transform_indices = @transform_4, window_bounds = array<i64: 1, 64>}, {pipeline_mode = #tpu.pipeline_mode<synchronous>, transform_indices = @transform_5, window_bounds = array<i64: 64, 32>}, {pipeline_mode = #tpu.pipeline_mode<synchronous>, transform_indices = @transform_6, window_bounds = array<i64: 1, 32>}, {transform_indices = @transform_7, window_bounds = array<i64: 1, 16, 16, 32>}]} {
    %c0 = arith.constant 0 : index
    %c0_0 = arith.constant 0 : index
    %c0_1 = arith.constant 0 : index
    %c0_2 = arith.constant 0 : index
    %0 = vector.load %arg2[%c0, %c0_0, %c0_1, %c0_2] : memref<1x18x24x32xf32, #tpu.memory_space<vmem>>, vector<1x18x24x32xf32>
    %1 = vector.shape_cast %0 : vector<1x18x24x32xf32> to vector<432x32xf32>
    %c0_3 = arith.constant 0 : index
    %c0_4 = arith.constant 0 : index
    %2 = vector.load %arg3[%c0_3, %c0_4] : memref<32x64xf32, #tpu.memory_space<vmem>>, vector<32x64xf32>
    %cst = arith.constant dense<0.000000e+00> : vector<432x64xf32>
    %3 = tpu.matmul %1, %2, %cst {dimension_numbers = #tpu.dot_dimension_numbers<[1], [0], [0], [1], [0, 0, 1, 1], [], []>} : vector<432x32xf32>, vector<32x64xf32>, vector<432x64xf32> -> vector<432x64xf32>
    %c0_5 = arith.constant 0 : index
    %c0_6 = arith.constant 0 : index
    %4 = vector.load %arg4[%c0_5, %c0_6] : memref<1x64xf32, #tpu.memory_space<vmem>>, vector<1x64xf32>
    %5 = vector.broadcast %4 : vector<1x64xf32> to vector<432x64xf32>
    %6 = arith.addf %3, %5 : vector<432x64xf32>
    %cst_7 = arith.constant 0.000000e+00 : f32
    %7 = vector.broadcast %cst_7 : f32 to vector<432x64xf32>
    %8 = arith.maximumf %6, %7 : vector<432x64xf32>
    %9 = vector.shape_cast %8 : vector<432x64xf32> to vector<1x18x24x64xf32>
    %c16_i32 = arith.constant 16 : i32
    %10 = arith.muli %arg1, %c16_i32 : i32
    %11 = tpu.iota {dimensions = array<i32: 1>} : vector<1x18x24x1xi32>
    %12 = vector.broadcast %10 : i32 to vector<1x18x24x1xi32>
    %13 = arith.addi %11, %12 : vector<1x18x24x1xi32>
    %14 = tpu.iota {dimensions = array<i32: 2>} : vector<1x18x24x1xi32>
    %c1_i32 = arith.constant 1 : i32
    %15 = vector.broadcast %c1_i32 : i32 to vector<1x18x24x1xi32>
    %16 = arith.cmpi sge, %13, %15 : vector<1x18x24x1xi32>
    %c17_i32 = arith.constant 17 : i32
    %17 = vector.broadcast %c17_i32 : i32 to vector<1x18x24x1xi32>
    %18 = arith.cmpi slt, %13, %17 : vector<1x18x24x1xi32>
    %19 = arith.andi %16, %18 : vector<1x18x24x1xi1>
    %c1_i32_8 = arith.constant 1 : i32
    %20 = vector.broadcast %c1_i32_8 : i32 to vector<1x18x24x1xi32>
    %21 = arith.cmpi sge, %14, %20 : vector<1x18x24x1xi32>
    %22 = arith.andi %19, %21 : vector<1x18x24x1xi1>
    %c17_i32_9 = arith.constant 17 : i32
    %23 = vector.broadcast %c17_i32_9 : i32 to vector<1x18x24x1xi32>
    %24 = arith.cmpi slt, %14, %23 : vector<1x18x24x1xi32>
    %25 = arith.andi %22, %24 : vector<1x18x24x1xi1>
    %cst_10 = arith.constant 0.000000e+00 : f32
    %26 = vector.shape_cast %25 : vector<1x18x24x1xi1> to vector<1x18x24x1xi1>
    %27 = vector.broadcast %26 : vector<1x18x24x1xi1> to vector<1x18x24x64xi1>
    %28 = vector.broadcast %cst_10 : f32 to vector<1x18x24x64xf32>
    %29 = arith.select %27, %9, %28 : vector<1x18x24x64xi1>, vector<1x18x24x64xf32>
    %c0_11 = arith.constant 0 : index
    %c0_12 = arith.constant 0 : index
    %c0_13 = arith.constant 0 : index
    %30 = vector.load %arg5[%c0_11, %c0_12, %c0_13] : memref<3x3x64xf32, #tpu.memory_space<vmem>>, vector<3x3x64xf32>
    %cst_14 = arith.constant 0.000000e+00 : f32
    %31 = vector.broadcast %cst_14 : f32 to vector<1x16x16x64xf32>
    %32 = vector.extract_strided_slice %29 {offsets = [0, 0, 0, 0], sizes = [1, 18, 16, 64], strides = [1, 1, 1, 1]} : vector<1x18x24x64xf32> to vector<1x18x16x64xf32>
    %33 = vector.extract_strided_slice %32 {offsets = [0, 0, 0, 0], sizes = [1, 16, 16, 64], strides = [1, 1, 1, 1]} : vector<1x18x16x64xf32> to vector<1x16x16x64xf32>
    %34 = vector.extract_strided_slice %30 {offsets = [0, 0, 0], sizes = [1, 1, 64], strides = [1, 1, 1]} : vector<3x3x64xf32> to vector<1x1x64xf32>
    %35 = vector.shape_cast %34 : vector<1x1x64xf32> to vector<64xf32>
    %36 = vector.shape_cast %35 : vector<64xf32> to vector<1x1x1x64xf32>
    %37 = vector.broadcast %36 : vector<1x1x1x64xf32> to vector<1x16x16x64xf32>
    %38 = arith.mulf %33, %37 : vector<1x16x16x64xf32>
    %39 = arith.addf %31, %38 : vector<1x16x16x64xf32>
    %40 = vector.extract_strided_slice %32 {offsets = [0, 1, 0, 0], sizes = [1, 16, 16, 64], strides = [1, 1, 1, 1]} : vector<1x18x16x64xf32> to vector<1x16x16x64xf32>
    %41 = vector.extract_strided_slice %30 {offsets = [1, 0, 0], sizes = [1, 1, 64], strides = [1, 1, 1]} : vector<3x3x64xf32> to vector<1x1x64xf32>
    %42 = vector.shape_cast %41 : vector<1x1x64xf32> to vector<64xf32>
    %43 = vector.shape_cast %42 : vector<64xf32> to vector<1x1x1x64xf32>
    %44 = vector.broadcast %43 : vector<1x1x1x64xf32> to vector<1x16x16x64xf32>
    %45 = arith.mulf %40, %44 : vector<1x16x16x64xf32>
    %46 = arith.addf %39, %45 : vector<1x16x16x64xf32>
    %47 = vector.extract_strided_slice %32 {offsets = [0, 2, 0, 0], sizes = [1, 16, 16, 64], strides = [1, 1, 1, 1]} : vector<1x18x16x64xf32> to vector<1x16x16x64xf32>
    %48 = vector.extract_strided_slice %30 {offsets = [2, 0, 0], sizes = [1, 1, 64], strides = [1, 1, 1]} : vector<3x3x64xf32> to vector<1x1x64xf32>
    %49 = vector.shape_cast %48 : vector<1x1x64xf32> to vector<64xf32>
    %50 = vector.shape_cast %49 : vector<64xf32> to vector<1x1x1x64xf32>
    %51 = vector.broadcast %50 : vector<1x1x1x64xf32> to vector<1x16x16x64xf32>
    %52 = arith.mulf %47, %51 : vector<1x16x16x64xf32>
    %53 = arith.addf %46, %52 : vector<1x16x16x64xf32>
    %54 = vector.extract_strided_slice %29 {offsets = [0, 0, 1, 0], sizes = [1, 18, 16, 64], strides = [1, 1, 1, 1]} : vector<1x18x24x64xf32> to vector<1x18x16x64xf32>
    %55 = vector.extract_strided_slice %54 {offsets = [0, 0, 0, 0], sizes = [1, 16, 16, 64], strides = [1, 1, 1, 1]} : vector<1x18x16x64xf32> to vector<1x16x16x64xf32>
    %56 = vector.extract_strided_slice %30 {offsets = [0, 1, 0], sizes = [1, 1, 64], strides = [1, 1, 1]} : vector<3x3x64xf32> to vector<1x1x64xf32>
    %57 = vector.shape_cast %56 : vector<1x1x64xf32> to vector<64xf32>
    %58 = vector.shape_cast %57 : vector<64xf32> to vector<1x1x1x64xf32>
    %59 = vector.broadcast %58 : vector<1x1x1x64xf32> to vector<1x16x16x64xf32>
    %60 = arith.mulf %55, %59 : vector<1x16x16x64xf32>
    %61 = arith.addf %53, %60 : vector<1x16x16x64xf32>
    %62 = vector.extract_strided_slice %54 {offsets = [0, 1, 0, 0], sizes = [1, 16, 16, 64], strides = [1, 1, 1, 1]} : vector<1x18x16x64xf32> to vector<1x16x16x64xf32>
    %63 = vector.extract_strided_slice %30 {offsets = [1, 1, 0], sizes = [1, 1, 64], strides = [1, 1, 1]} : vector<3x3x64xf32> to vector<1x1x64xf32>
    %64 = vector.shape_cast %63 : vector<1x1x64xf32> to vector<64xf32>
    %65 = vector.shape_cast %64 : vector<64xf32> to vector<1x1x1x64xf32>
    %66 = vector.broadcast %65 : vector<1x1x1x64xf32> to vector<1x16x16x64xf32>
    %67 = arith.mulf %62, %66 : vector<1x16x16x64xf32>
    %68 = arith.addf %61, %67 : vector<1x16x16x64xf32>
    %69 = vector.extract_strided_slice %54 {offsets = [0, 2, 0, 0], sizes = [1, 16, 16, 64], strides = [1, 1, 1, 1]} : vector<1x18x16x64xf32> to vector<1x16x16x64xf32>
    %70 = vector.extract_strided_slice %30 {offsets = [2, 1, 0], sizes = [1, 1, 64], strides = [1, 1, 1]} : vector<3x3x64xf32> to vector<1x1x64xf32>
    %71 = vector.shape_cast %70 : vector<1x1x64xf32> to vector<64xf32>
    %72 = vector.shape_cast %71 : vector<64xf32> to vector<1x1x1x64xf32>
    %73 = vector.broadcast %72 : vector<1x1x1x64xf32> to vector<1x16x16x64xf32>
    %74 = arith.mulf %69, %73 : vector<1x16x16x64xf32>
    %75 = arith.addf %68, %74 : vector<1x16x16x64xf32>
    %76 = vector.extract_strided_slice %29 {offsets = [0, 0, 2, 0], sizes = [1, 18, 16, 64], strides = [1, 1, 1, 1]} : vector<1x18x24x64xf32> to vector<1x18x16x64xf32>
    %77 = vector.extract_strided_slice %76 {offsets = [0, 0, 0, 0], sizes = [1, 16, 16, 64], strides = [1, 1, 1, 1]} : vector<1x18x16x64xf32> to vector<1x16x16x64xf32>
    %78 = vector.extract_strided_slice %30 {offsets = [0, 2, 0], sizes = [1, 1, 64], strides = [1, 1, 1]} : vector<3x3x64xf32> to vector<1x1x64xf32>
    %79 = vector.shape_cast %78 : vector<1x1x64xf32> to vector<64xf32>
    %80 = vector.shape_cast %79 : vector<64xf32> to vector<1x1x1x64xf32>
    %81 = vector.broadcast %80 : vector<1x1x1x64xf32> to vector<1x16x16x64xf32>
    %82 = arith.mulf %77, %81 : vector<1x16x16x64xf32>
    %83 = arith.addf %75, %82 : vector<1x16x16x64xf32>
    %84 = vector.extract_strided_slice %76 {offsets = [0, 1, 0, 0], sizes = [1, 16, 16, 64], strides = [1, 1, 1, 1]} : vector<1x18x16x64xf32> to vector<1x16x16x64xf32>
    %85 = vector.extract_strided_slice %30 {offsets = [1, 2, 0], sizes = [1, 1, 64], strides = [1, 1, 1]} : vector<3x3x64xf32> to vector<1x1x64xf32>
    %86 = vector.shape_cast %85 : vector<1x1x64xf32> to vector<64xf32>
    %87 = vector.shape_cast %86 : vector<64xf32> to vector<1x1x1x64xf32>
    %88 = vector.broadcast %87 : vector<1x1x1x64xf32> to vector<1x16x16x64xf32>
    %89 = arith.mulf %84, %88 : vector<1x16x16x64xf32>
    %90 = arith.addf %83, %89 : vector<1x16x16x64xf32>
    %91 = vector.extract_strided_slice %76 {offsets = [0, 2, 0, 0], sizes = [1, 16, 16, 64], strides = [1, 1, 1, 1]} : vector<1x18x16x64xf32> to vector<1x16x16x64xf32>
    %92 = vector.extract_strided_slice %30 {offsets = [2, 2, 0], sizes = [1, 1, 64], strides = [1, 1, 1]} : vector<3x3x64xf32> to vector<1x1x64xf32>
    %93 = vector.shape_cast %92 : vector<1x1x64xf32> to vector<64xf32>
    %94 = vector.shape_cast %93 : vector<64xf32> to vector<1x1x1x64xf32>
    %95 = vector.broadcast %94 : vector<1x1x1x64xf32> to vector<1x16x16x64xf32>
    %96 = arith.mulf %91, %95 : vector<1x16x16x64xf32>
    %97 = arith.addf %90, %96 : vector<1x16x16x64xf32>
    %c0_15 = arith.constant 0 : index
    %c0_16 = arith.constant 0 : index
    %98 = vector.load %arg6[%c0_15, %c0_16] : memref<1x64xf32, #tpu.memory_space<vmem>>, vector<1x64xf32>
    %99 = vector.shape_cast %98 : vector<1x64xf32> to vector<64xf32>
    %100 = vector.shape_cast %99 : vector<64xf32> to vector<1x1x1x64xf32>
    %101 = vector.broadcast %100 : vector<1x1x1x64xf32> to vector<1x16x16x64xf32>
    %102 = arith.addf %97, %101 : vector<1x16x16x64xf32>
    %cst_17 = arith.constant 0.000000e+00 : f32
    %103 = vector.broadcast %cst_17 : f32 to vector<1x16x16x64xf32>
    %104 = arith.maximumf %102, %103 : vector<1x16x16x64xf32>
    %105 = vector.shape_cast %104 : vector<1x16x16x64xf32> to vector<256x64xf32>
    %c0_18 = arith.constant 0 : index
    %c0_19 = arith.constant 0 : index
    %106 = vector.load %arg7[%c0_18, %c0_19] : memref<64x32xf32, #tpu.memory_space<vmem>>, vector<64x32xf32>
    %cst_20 = arith.constant dense<0.000000e+00> : vector<256x32xf32>
    %107 = tpu.matmul %105, %106, %cst_20 {dimension_numbers = #tpu.dot_dimension_numbers<[1], [0], [0], [1], [0, 0, 1, 1], [], []>} : vector<256x64xf32>, vector<64x32xf32>, vector<256x32xf32> -> vector<256x32xf32>
    %c0_21 = arith.constant 0 : index
    %c0_22 = arith.constant 0 : index
    %108 = vector.load %arg8[%c0_21, %c0_22] : memref<1x32xf32, #tpu.memory_space<vmem>>, vector<1x32xf32>
    %109 = vector.broadcast %108 : vector<1x32xf32> to vector<256x32xf32>
    %110 = arith.addf %107, %109 : vector<256x32xf32>
    %111 = vector.shape_cast %110 : vector<256x32xf32> to vector<1x16x16x32xf32>
    %112 = vector.extract_strided_slice %0 {offsets = [0, 1, 1, 0], sizes = [1, 16, 16, 32], strides = [1, 1, 1, 1]} : vector<1x18x24x32xf32> to vector<1x16x16x32xf32>
    %113 = arith.addf %111, %112 : vector<1x16x16x32xf32>
    %c0_23 = arith.constant 0 : index
    %c0_24 = arith.constant 0 : index
    %c0_25 = arith.constant 0 : index
    %c0_26 = arith.constant 0 : index
    %114 = vector.load %arg9[%c0_23, %c0_24, %c0_25, %c0_26] : memref<1x16x16x32xf32, #tpu.memory_space<vmem>>, vector<1x16x16x32xf32>
    tpu.vector_store %arg9[%c0_23, %c0_24, %c0_25, %c0_26], %113 {strides = array<i32>} : memref<1x16x16x32xf32, #tpu.memory_space<vmem>>, vector<1x16x16x32xf32>,
    return
  }
  func.func @transform_0(%arg0: i32, %arg1: i32) -> (i32, i32, i32, i32) {
    %c0_i32 = arith.constant 0 : i32
    %c0_i32_0 = arith.constant 0 : i32
    %c0_i32_1 = arith.constant 0 : i32
    %c0_i32_2 = arith.constant 0 : i32
    return %arg0, %c0_i32, %c0_i32_0, %c0_i32_1 : i32, i32, i32, i32
  }
  func.func @transform_1(%arg0: i32, %arg1: i32) -> (i32, i32) {
    %c0_i32 = arith.constant 0 : i32
    %c0_i32_0 = arith.constant 0 : i32
    %c0_i32_1 = arith.constant 0 : i32
    return %c0_i32, %c0_i32_0 : i32, i32
  }
  func.func @transform_2(%arg0: i32, %arg1: i32) -> (i32, i32) {
    %c0_i32 = arith.constant 0 : i32
    %c0_i32_0 = arith.constant 0 : i32
    %c0_i32_1 = arith.constant 0 : i32
    return %c0_i32, %c0_i32_0 : i32, i32
  }
  func.func @transform_3(%arg0: i32, %arg1: i32) -> (i32, i32, i32) {
    %c0_i32 = arith.constant 0 : i32
    %c0_i32_0 = arith.constant 0 : i32
    %c0_i32_1 = arith.constant 0 : i32
    %c0_i32_2 = arith.constant 0 : i32
    return %c0_i32, %c0_i32_0, %c0_i32_1 : i32, i32, i32
  }
  func.func @transform_4(%arg0: i32, %arg1: i32) -> (i32, i32) {
    %c0_i32 = arith.constant 0 : i32
    %c0_i32_0 = arith.constant 0 : i32
    %c0_i32_1 = arith.constant 0 : i32
    return %c0_i32, %c0_i32_0 : i32, i32
  }
  func.func @transform_5(%arg0: i32, %arg1: i32) -> (i32, i32) {
    %c0_i32 = arith.constant 0 : i32
    %c0_i32_0 = arith.constant 0 : i32
    %c0_i32_1 = arith.constant 0 : i32
    return %c0_i32, %c0_i32_0 : i32, i32
  }
  func.func @transform_6(%arg0: i32, %arg1: i32) -> (i32, i32) {
    %c0_i32 = arith.constant 0 : i32
    %c0_i32_0 = arith.constant 0 : i32
    %c0_i32_1 = arith.constant 0 : i32
    return %c0_i32, %c0_i32_0 : i32, i32
  }
  func.func @transform_7(%arg0: i32, %arg1: i32) -> (i32, i32, i32, i32) {
    %c0_i32 = arith.constant 0 : i32
    %c0_i32_0 = arith.constant 0 : i32
    %c0_i32_1 = arith.constant 0 : i32
    return %arg0, %arg1, %c0_i32, %c0_i32_0 : i32, i32, i32, i32
  }
}

</mosaic_0001>

<bundles_post_ra>
// kernel: mnv4_inverted_bottleneck.1
= control target key start
LH: loop header
LB: loop body
LE: loop exit
PB: predicated region body
PF: predicated region fallthrough
CT: control target
= control target key end

     0   :  { %12 = vsyncpa [#allocation3], 0  ;;  %s6224_s0 = inlined_call_operand.vmem [shape: f32[2,18,24,32], index: 0, kind: input, shape index: {}]   ;;  %s6225_s1 = inlined_call_operand.vmem [shape: f32[32,64], index: 1, kind: input, shape index: {}]   ;;  %s6226_s2 = inlined_call_operand.vmem [shape: f32[1,64], index: 2, kind: input, shape index: {}]   ;;  %s6227_s3 = inlined_call_operand.vmem [shape: f32[3,3,64], index: 3, kind: input, shape index: {}]   ;;  %s6228_s4 = inlined_call_operand.vmem [shape: f32[1,64], index: 4, kind: input, shape index: {}]   ;;  %s6229_s5 = inlined_call_operand.vmem [shape: f32[64,32], index: 5, kind: input, shape index: {}]   ;;  %s6230_s6 = inlined_call_operand.vmem [shape: f32[1,32], index: 6, kind: input, shape index: {}]   ;;  %s6231_s7 = inlined_call_operand.hbm [shape: f32[2,16,16,32], index: 7, kind: output, shape index: {}]  }
   0x1   :  { %14 = vsyncpa [#allocation3 + $0x1], 0  ;;  %s3629_s24 = smov 0   ;;  %s3631_s25 = smov 0  }
   0x2   :  { %s3633_s26 = smov 0   ;;  %s3635_s27 = smov 0  }
   0x3   :  { %s3637_s28 = smov 0   ;;  %s3639_s29 = smov 0  }
   0x4 LB: > { %s3307_s30 = sadd.s32 4294967295, %s3585_s29   ;;  %s3308_s8 = sadd.s32 4294967294, %s3585_s29   ;;  %s3585_s29 = sphi %s3639_s29, %s20_s29   ;;  %s3581_s28 = sphi %s3637_s28, %s6761_s28   ;;  %s3577_s27 = sphi %s3635_s27, %s6760_s27   ;;  %s3573_s26 = sphi %s3633_s26, %s6759_s26   ;;  %s3569_s25 = sphi %s3631_s25, %s6758_s25   ;;  %s3565_s24 = sphi %s3629_s24, %s6757_s24  }
   0x5   : > { %s32_s9 = sadd.s32 1, %s3581_s28  ;;  %s193_s10 = sadd.s32 1, %s3573_s26 }
   0x6   : > { %p34_p0 = scmp.ge.s32.totalorder %s32_s9, 2  ;;  %p203_p1 = scmp.ne.s32.totalorder %s3573_s26, %s3569_s25 }
   0x7   : > { %p204_p2 = scmp.eq.s32.totalorder %s3307_s30, 1  ;;  %p209_p3 = scmp.ne.s32.totalorder %s3569_s25, %s3565_s24 }
   0x8   : > { %s6763_s9 = smov (%p34_p0, %s32_s9), 0  ;;  %p210_p5 = scmp.eq.s32.totalorder %s3308_s8, 1 }
   0x9   : > { %p3669_p4 = por %p204_p2, %p203_p1  ;;  %s188_s12 = ssub.s32 %s3581_s28, %s6763_s9 }
   0xa   : > { %p3311_p6 = scmp.ge.s32.totalorder %s3585_s29, 1  ;;  %p191_p7 = scmp.eq.s32.totalorder %s188_s12, 0 }
   0xb   : > { %p3676_p8 = por %p210_p5, %p209_p3  ;;  %p254_p9 = scmp.lt.s32.totalorder %s3585_s29, 3 }
   0xc   : > { %s3682_s14 = scalar_select %p191_p7, %s3573_s26, %s193_s10  }
   0xd   : > { %p255_p10 = pnand %p3311_p6, %p254_p9 }
   0xf   : > { %258 = sbr.rel (%p255_p10) target bundleno = 684 (0x2ac), region = 48 }
  0x14   : > { %v349_v0 = vld [vmem:[%s6225_s1 + $0x18] sm:$0xff]  ;;  %v348_v1 = vld [vmem:[%s6225_s1 + $0x10] sm:$0xff]  ;;  %p286_p11 = scmp.lt.s32.totalorder %s3577_s27, 1  ;;  %v347_v2 = vld [vmem:[%s6225_s1 + $0x8] sm:$0xff]  ;;  %vm354_vm0 = vcmask 261120   ;;  %v769_v49 = vlaneseq  ;;  %vm1398_vm2 = vcmask 1046528  }
  0x15   : > { %529 = vmatpush.msra.mxu0 %v349_v0  ;;  %3406 = vmatpush.msra.mxu2 %v349_v0  ;;  %v346_v3 = vld [vmem:[%s6225_s1] sm:$0xff]  ;;  %vm2122_vm4 = vcmask 1045504   ;;  %vm2829_vm5 = vcmask 523264   ;;  %s3405_s18 = sshll.u32 %s3577_s27, 8  ;;  %s3527_s17 = scalar_lea.hbm %s6231_s7, 512 }
  0x16   : > { %s287_s21 = scalar_select %p286_p11, %s3577_s27, 1  ;;  %3407 = vmatpush.msra.mxu3 %v349_v0  ;;  %v3856_v51 = vld [vmem:[%s6226_s2] ss:$0 sm:$0xff]  ;;  %v3858_v52 = vshrl.u32 %v769_v49, 7  ;;  %v2823_v0 = vld [vmem:[%s6229_s5 + $0x30] sm:$0xff] }
  0x17   : > { %530 = vmatpush.msra.mxu0 %v348_v1  ;;  %3408 = vmatpush.msra.mxu2 %v348_v1  ;;  %s3230_s22 = scalar_lea.hbm %s6231_s7, %s3405_s18 }
  0x18   : > { %s3422_s30 = smul.u32 432, %s287_s21  ;;  %3409 = vmatpush.msra.mxu3 %v348_v1  ;;  %v3874_v58 = vadd.s32 16, %v3858_v52  ;;  %vm827_vm3 = vcmp.ge.s32.totalorder %v3858_v52, 1  ;;  %s283_s21 = sand.u32 1, %s3569_s25  }
  0x19   : > { %531 = vmatpush.msra.mxu0 %v347_v2  ;;  %3410 = vmatpush.msra.mxu2 %v347_v2  ;;  %s3216_s27 = scalar_lea.sflag [#allocation3], %s283_s21 }
  0x1a   : > { %s3701_s12 = scalar_lea.vmem %s6224_s0, %s3422_s30  ;;  %3411 = vmatpush.msra.mxu3 %v347_v2  ;;  %vm886_vm1 = vcmp.lt.s32.totalorder %v3874_v58, 17  ;;  %s3312_s30 = sshll.u32 %s283_s21, 8 }
  0x1b   : > { %532 = vmatpush.msra.mxu0 %v346_v3  ;;  %3412 = vmatpush.msra.mxu2 %v346_v3  ;;  %v292_v4 = vld [vmem:[%s3701_s12] sm:$0xff]  ;;  %v3705_v5 = vld [vmem:[%s3701_s12 + $0xb0] sm:$0xff]  ;;  %v293_v6 = vld [vmem:[%s3701_s12 + $0x8] sm:$0xff]  ;;  %s5420_s8 = scalar_lea.vmem [#allocation2], %s3312_s30  ;;  %s3233_s30 = sshll.u32 %s3230_s22, 4  ;;  %s3234_s30 = int_to_ptr.hbm [resolvable:$true] %s3233_s30 }
  0x1c   : > { %6373 = vst [vmem:[#allocation5_spill] sm:$0xff] %v3705_v5  ;;  %3314 = vmatmul.msk.f32.vlgmr.msra.gmra.mxu0 %vm354_vm0, %v292_v4  ;;  %3336 = vmatmul.msk.f32.vlgmr.msra.gmra.mxu2 %vm354_vm0, %v3705_v5  ;;  %v315_v7 = vld [vmem:[%s3701_s12 + $0xb8] sm:$0xff]  ;;  %v294_v8 = vld [vmem:[%s3701_s12 + $0x10] sm:$0xff]  ;;  %v316_v9 = vld [vmem:[%s3701_s12 + $0xc0] sm:$0xff]  ;;  %s3231_s23 = sshll.u32 %s5420_s8, 4  ;;  %s3232_s23 = int_to_ptr.vmem [resolvable:$true] %s3231_s23 }
  0x1d   : > { %3413 = vmatpush.msra.mxu3 %v346_v3  ;;  %v3719_v10 = vld [vmem:[%s3701_s12 + $0x18] sm:$0xff]  ;;  %v317_v11 = vld [vmem:[%s3701_s12 + $0xc8] sm:$0xff]  ;;  %v3726_v12 = vld [vmem:[%s3701_s12 + $0x20] sm:$0xff] }
  0x1e   : > { %6374 = vst [vmem:[#allocation6_spill] sm:$0xff] %v3719_v10  ;;  %v318_v13 = vld [vmem:[%s3701_s12 + $0xd0] sm:$0xff]  ;;  %v3733_v14 = vld [vmem:[%s3701_s12 + $0x28] sm:$0xff]  ;;  %v319_v15 = vld [vmem:[%s3701_s12 + $0xd8] sm:$0xff] }
  0x1f   : > { %6375 = vst [vmem:[#allocation7_spill] sm:$0xff] %v3726_v12  ;;  %v3740_v16 = vld [vmem:[%s3701_s12 + $0x30] sm:$0xff]  ;;  %v320_v17 = vld [vmem:[%s3701_s12 + $0xe0] sm:$0xff]  ;;  %v3747_v18 = vld [vmem:[%s3701_s12 + $0x38] sm:$0xff] }
  0x20   : > { %6376 = vst [vmem:[#allocation8_spill] sm:$0xff] %v3733_v14  ;;  %v321_v19 = vld [vmem:[%s3701_s12 + $0xe8] sm:$0xff]  ;;  %v3754_v20 = vld [vmem:[%s3701_s12 + $0x40] sm:$0xff]  ;;  %v322_v21 = vld [vmem:[%s3701_s12 + $0xf0] sm:$0xff] }
  0x21   : > { %6377 = vst [vmem:[#allocation9_spill] sm:$0xff] %v3740_v16  ;;  %v3761_v22 = vld [vmem:[%s3701_s12 + $0x48] sm:$0xff]  ;;  %v323_v23 = vld [vmem:[%s3701_s12 + $0xf8] sm:$0xff]  ;;  %v3768_v24 = vld [vmem:[%s3701_s12 + $0x50] sm:$0xff] }
  0x22   : > { %6378 = vst [vmem:[#allocation10_spill] sm:$0xff] %v3747_v18  ;;  %v324_v25 = vld [vmem:[%s3701_s12 + $0x100] sm:$0xff]  ;;  %v3775_v26 = vld [vmem:[%s3701_s12 + $0x58] sm:$0xff]  ;;  %v325_v27 = vld [vmem:[%s3701_s12 + $0x108] sm:$0xff] }
  0x23   : > { %6379 = vst [vmem:[#allocation11_spill] sm:$0xff] %v3754_v20  ;;  %v336_v28 = vld [vmem:[%s3701_s12 + $0x160] sm:$0xff]  ;;  %v3786_v30 = vld [vmem:[%s3701_s12 + $0x110] sm:$0xff]  ;;  %v337_v31 = vld [vmem:[%s3701_s12 + $0x168] sm:$0xff] }
  0x24   : > { %3315 = vmatmul.msk.f32.gmra.mxu0 %vm354_vm0, %v293_v6  ;;  %3337 = vmatmul.msk.f32.gmra.mxu2 %vm354_vm0, %v315_v7  ;;  %6380 = vst [vmem:[#allocation12_spill] sm:$0xff] %v3761_v22  ;;  %v3783_v29 = vld [vmem:[%s3701_s12 + $0x60] sm:$0xff]  ;;  %v3795_v32 = vld [vmem:[%s3701_s12 + $0x68] sm:$0xff]  ;;  %v3798_v33 = vld [vmem:[%s3701_s12 + $0x118] sm:$0xff] }
  0x25   : > { %6381 = vst [vmem:[#allocation13_spill] sm:$0xff] %v3768_v24  ;;  %3358 = vmatmul.msk.f32.vlgmr.msra.gmra.mxu3 %vm354_vm0, %v336_v28  ;;  %v338_v34 = vld [vmem:[%s3701_s12 + $0x170] sm:$0xff]  ;;  %v3810_v36 = vld [vmem:[%s3701_s12 + $0x120] sm:$0xff]  ;;  %v3818_v37 = vld [vmem:[%s3701_s12 + $0x78] sm:$0xff] }
  0x26   : > { %6382 = vst [vmem:[#allocation14_spill] sm:$0xff] %v3775_v26  ;;  %v3807_v35 = vld [vmem:[%s3701_s12 + $0x70] sm:$0xff]  ;;  %v3821_v38 = vld [vmem:[%s3701_s12 + $0x128] sm:$0xff]  ;;  %v339_v39 = vld [vmem:[%s3701_s12 + $0x178] sm:$0xff] }
  0x27   : > { %6383 = vst [vmem:[#allocation15_spill] sm:$0xff] %v3783_v29  ;;  %v3830_v41 = vld [vmem:[%s3701_s12 + $0x80] sm:$0xff]  ;;  %v3833_v42 = vld [vmem:[%s3701_s12 + $0x130] sm:$0xff]  ;;  %v3842_v46 = vld [vmem:[%s3701_s12 + $0x88] sm:$0xff] }
  0x28   : > { %6384 = vst [vmem:[#allocation16_spill] sm:$0xff] %v3786_v30  ;;  %v340_v43 = vld [vmem:[%s3701_s12 + $0x180] sm:$0xff]  ;;  %v3845_v47 = vld [vmem:[%s3701_s12 + $0x138] sm:$0xff]  ;;  %v341_v48 = vld [vmem:[%s3701_s12 + $0x188] sm:$0xff] }
  0x29   : > { %6385 = vst [vmem:[#allocation17_spill] sm:$0xff] %v3795_v32  ;;  %v3861_v54 = vld [vmem:[%s3701_s12 + $0x90] sm:$0xff]  ;;  %v3864_v55 = vld [vmem:[%s3701_s12 + $0x140] sm:$0xff]  ;;  %v1105_v28 = vld [vmem:[%s6227_s3 + $0x8] sm:$0x7] }
  0x2a   : > { %6386 = vst [vmem:[#allocation18_spill] sm:$0xff] %v3798_v33  ;;  %v342_v56 = vld [vmem:[%s3701_s12 + $0x190] sm:$0xff] }
  0x2b   : > { %6387 = vst [vmem:[#allocation19_spill] sm:$0xff] %v3807_v35 }
  0x2c   : > { %3316 = vmatmul.msk.f32.gmra.mxu0 %vm354_vm0, %v294_v8  ;;  %3338 = vmatmul.msk.f32.gmra.mxu2 %vm354_vm0, %v316_v9  ;;  %6388 = vst [vmem:[#allocation20_spill] sm:$0xff] %v3810_v36  ;;  %v1103_v9 = vld [vmem:[%s6227_s3] sm:$0x7] }
  0x2d   : > { %3359 = vmatmul.msk.f32.gmra.mxu3 %vm354_vm0, %v337_v31  ;;  %6389 = vst [vmem:[#allocation21_spill] sm:$0xff] %v3818_v37 }
  0x2e   : > { %6390 = vst [vmem:[#allocation22_spill] sm:$0xff] %v3821_v38 }
  0x2f   : > { %6391 = vst [vmem:[#allocation23_spill] sm:$0xff] %v3830_v41 }
  0x30   : > { %6392 = vst [vmem:[#allocation24_spill] sm:$0xff] %v3833_v42 }
  0x31   : > { %6393 = vst [vmem:[#allocation25_spill] sm:$0xff] %v3842_v46 }
  0x32   : > { %6394 = vst [vmem:[#allocation26_spill] sm:$0xff] %v3845_v47 }
  0x33   : > { %6395 = vst [vmem:[#allocation27_spill] sm:$0xff] %v3861_v54 }
  0x34   : > { %3317 = vmatmul.msk.f32.gmra.mxu0 %vm354_vm0, %v3719_v10  ;;  %3339 = vmatmul.msk.f32.gmra.mxu2 %vm354_vm0, %v317_v11  ;;  %6396 = vst [vmem:[#allocation28_spill] sm:$0xff] %v3864_v55  ;;  %v334_v11 = vld [vmem:[%s3701_s12 + $0x150] sm:$0xff] }
  0x35   : > { %3360 = vmatmul.msk.f32.gmra.mxu3 %vm354_vm0, %v338_v34  ;;  %v3942_v34 = vperm.slane %v1105_v28, 2 }
  0x3c   : > { %3318 = vmatmul.msk.f32.gmra.mxu0 %vm354_vm0, %v3726_v12  ;;  %3340 = vmatmul.msk.f32.gmra.mxu2 %vm354_vm0, %v318_v13 }
  0x3d   : > { %3361 = vmatmul.msk.f32.gmra.mxu3 %vm354_vm0, %v339_v39  ;;  %v3964_v39 = vperm.slane %v1105_v28, 0 }
  0x44   : > { %3319 = vmatmul.msk.f32.gmra.mxu0 %vm354_vm0, %v3733_v14  ;;  %3341 = vmatmul.msk.f32.gmra.mxu2 %vm354_vm0, %v319_v15 }
  0x45   : > { %3362 = vmatmul.msk.f32.gmra.mxu3 %vm354_vm0, %v340_v43  ;;  %v3913_v43 = vperm.slane %v1103_v9, 1 }
  0x4c   : > { %3320 = vmatmul.msk.f32.gmra.mxu0 %vm354_vm0, %v3740_v16  ;;  %3342 = vmatmul.msk.f32.gmra.mxu2 %vm354_vm0, %v320_v17 }
  0x4d   : > { %3363 = vmatmul.msk.f32.gmra.mxu3 %vm354_vm0, %v341_v48 }
  0x54   : > { %3321 = vmatmul.msk.f32.gmra.mxu0 %vm354_vm0, %v3747_v18  ;;  %3343 = vmatmul.msk.f32.gmra.mxu2 %vm354_vm0, %v321_v19  ;;  %v3895_v19 = vld [vmem:[%s3701_s12 + $0x98] sm:$0xff] }
  0x55   : > { %3364 = vmatmul.msk.f32.gmra.mxu3 %vm354_vm0, %v342_v56  ;;  %6397 = vst [vmem:[#allocation29_spill] sm:$0xff] %v3895_v19 }
  0x5c   : > { %3322 = vmatmul.msk.f32.gmra.mxu0 %vm354_vm0, %v3754_v20  ;;  %3344 = vmatmul.msk.f32.gmra.mxu2 %vm354_vm0, %v322_v21  ;;  %v3898_v21 = vld [vmem:[%s3701_s12 + $0x148] sm:$0xff] }
  0x5d   : > { %6398 = vst [vmem:[#allocation30_spill] sm:$0xff] %v3898_v21 }
  0x64   : > { %3323 = vmatmul.msk.f32.gmra.mxu0 %vm354_vm0, %v3761_v22  ;;  %3345 = vmatmul.msk.f32.gmra.mxu2 %vm354_vm0, %v323_v23 }
  0x6c   : > { %3324 = vmatmul.msk.f32.gmra.mxu0 %vm354_vm0, %v3768_v24  ;;  %3346 = vmatmul.msk.f32.gmra.mxu2 %vm354_vm0, %v324_v25  ;;  %v3958_v25 = vld [vmem:[%s3701_s12 + $0xa0] sm:$0xff] }
  0x6d   : > { %6403 = vst [vmem:[#allocation35_spill] sm:$0xff] %v3958_v25 }
  0x74   : > { %3325 = vmatmul.msk.f32.gmra.mxu0 %vm354_vm0, %v3775_v26  ;;  %3347 = vmatmul.msk.f32.gmra.mxu2 %vm354_vm0, %v325_v27  ;;  %v1104_v27 = vld [vmem:[%s6227_s3 + $0x4] sm:$0x7] }
  0x75   : > { %v3926_v56 = vperm.slane %v1104_v27, 1 }
  0x7c   : > { %3326 = vmatmul.msk.f32.gmra.mxu0 %vm354_vm0, %v3783_v29  ;;  %3348 = vmatmul.msk.f32.gmra.mxu2 %vm354_vm0, %v3786_v30 }
  0x84   : > { %3327 = vmatmul.msk.f32.gmra.mxu0 %vm354_vm0, %v3795_v32  ;;  %3349 = vmatmul.msk.f32.gmra.mxu2 %vm354_vm0, %v3798_v33 }
  0x8c   : > { %3328 = vmatmul.msk.f32.gmra.mxu0 %vm354_vm0, %v3807_v35  ;;  %3350 = vmatmul.msk.f32.gmra.mxu2 %vm354_vm0, %v3810_v36 }
  0x94   : > { %3329 = vmatmul.msk.f32.gmra.mxu0 %vm354_vm0, %v3818_v37  ;;  %3351 = vmatmul.msk.f32.gmra.mxu2 %vm354_vm0, %v3821_v38 }
  0x99   : > { %v534_v40 = vpop.f32.mrf.mxu0 }
  0x9c   : > { %3330 = vmatmul.msk.f32.gmra.mxu0 %vm354_vm0, %v3830_v41  ;;  %3352 = vmatmul.msk.f32.gmra.mxu2 %vm354_vm0, %v3833_v42 }
  0x9f   : > { %v600_v44 = vpop.f32.mrf.mxu2 }
  0xa0   : > { %v601_v2 = vadd.f32 %v3856_v51, %v600_v44  ;;  %v2824_v44 = vld [vmem:[%s6229_s5 + $0x38] sm:$0xff] }
  0xa1   : > { %v537_v45 = vpop.f32.mrf.mxu0  ;;  %2934 = vmatpush.msra.mxu1 %v2824_v44  ;;  %3414 = vmatpush.msrb.mxu3 %v2824_v44 }
  0xa2   : > { %v3911_v40 = vmax.f32 %v601_v2, 0.0  ;;  %v3930_v2 = vperm.slane %v1103_v9, 2  ;;  %v3946_v45 = vperm.slane %v1104_v27, 0 }
  0xa3   : > { %2935 = vmatpush.msra.mxu1 %v2823_v0  ;;  %3415 = vmatpush.msrb.mxu3 %v2823_v0 }
  0xa4   : > { %3331 = vmatmul.msk.f32.gmra.mxu0 %vm354_vm0, %v3842_v46  ;;  %3353 = vmatmul.msk.f32.gmra.mxu2 %vm354_vm0, %v3845_v47  ;;  %6399 = vst [vmem:[#allocation31_spill] sm:$0xff] %v3911_v40  ;;  %v3936_v59 = vmul.f32 %v3913_v43, %v3911_v40 }
  0xa6   : > { %6400 = vst [vmem:[#allocation32_spill] sm:$0xff] %v3936_v59  ;;  %v6235_v6 = vrot.slane %v3936_v59, 1 }
  0xa7   : > { %v603_v50 = vpop.f32.mrf.mxu2 }
  0xa8   : > { %v604_v57 = vadd.f32 %v3856_v51, %v603_v50 }
  0xa9   : > { %v540_v53 = vpop.f32.mrf.mxu0 }
  0xaa   : > { %v719_v8 = vmax.f32 %v604_v57, 0.0  ;;  %v3928_v57 = vperm.slane %v1105_v28, 1  ;;  %v3940_v53 = vperm.slane %v1103_v9, 0 }
  0xac   : > { %3332 = vmatmul.msk.f32.gmra.mxu0 %vm354_vm0, %v3861_v54  ;;  %3354 = vmatmul.msk.f32.gmra.mxu2 %vm354_vm0, %v3864_v55  ;;  %v1072_v49 = vsel %vm886_vm1, %v719_v8, 0.0  ;;  %v3955_v23 = vmul.f32 0.0, %v3940_v53  ;;  %v335_v55 = vld [vmem:[%s3701_s12 + $0x158] sm:$0xff] }
  0xad   : > { %v1325_v48 = vmul.f32 %v3913_v43, %v1072_v49  ;;  %v3952_v13 = vmul.f32 %v3928_v57, %v1072_v49 }
  0xaf   : > { %v606_v3 = vpop.f32.mrf.mxu2  ;;  %6402 = vst [vmem:[#allocation34_spill] sm:$0xff] %v3952_v13  ;;  %v1437_v1 = vrot.slane %v1325_v48, 1  ;;  %v3988_v48 = vld [vmem:[%s3701_s12 + $0xa8] sm:$0xff] }
  0xb0   : > { %v607_v28 = vadd.f32 %v3856_v51, %v606_v3  ;;  %6406 = vst [vmem:[#allocation38_spill] sm:$0xff] %v3988_v48  ;;  %v3991_v3 = vmul.f32 %v3942_v34, %v1072_v49 }
  0xb1   : > { %v543_v17 = vpop.f32.mrf.mxu0  ;;  %v4008_v63 = vsel %vm1398_vm2, %v6235_v6, %v1437_v1 }
  0xb2   : > { %v544_v31 = vadd.f32 %v3856_v51, %v543_v17  ;;  %v3932_v17 = vperm.slane %v1104_v27, 2  ;;  %v3967_v27 = vmul.f32 %v3930_v2, %v1072_v49  ;;  %6407 = vst [vmem:[#allocation39_spill] sm:$0xff] %v3991_v3  ;;  %v720_v61 = vmax.f32 %v607_v28, 0.0 }
  0xb3   : > { %6408 = vst [vmem:[#allocation40_spill] sm:$0xff] %v4008_v63 }
  0xb4   : > { %3333 = vmatmul.msk.f32.gmra.mxu0 %vm354_vm0, %v3895_v19  ;;  %3355 = vmatmul.msk.f32.gmra.mxu2 %vm354_vm0, %v3898_v21  ;;  %v699_v8 = vmax.f32 %v544_v31, 0.0  ;;  %v3949_v31 = vmul.f32 %v3926_v56, %v1072_v49  ;;  %6404 = vst [vmem:[#allocation36_spill] sm:$0xff] %v3967_v27  ;;  %v3970_v15 = vmul.f32 %v3932_v17, %v1072_v49  ;;  %v2821_v49 = vld [vmem:[%s6229_s5 + $0x20] sm:$0xff]  ;;  %v4050_v19 = vsel %vm827_vm3, %v720_v61, 0.0 }
  0xb5   : > { %6411 = vst [vmem:[#allocation43_spill] sm:$0xff] %v4050_v19 }
  0xb6   : > { %6401 = vst [vmem:[#allocation33_spill] sm:$0xff] %v3949_v31  ;;  %v1052_v7 = vsel %vm827_vm3, %v699_v8, 0.0 }
  0xb7   : > { %v609_v50 = vpop.f32.mrf.mxu2  ;;  %6405 = vst [vmem:[#allocation37_spill] sm:$0xff] %v3970_v15  ;;  %v4011_v21 = vmul.f32 %v3940_v53, %v1052_v7  ;;  %v1305_v0 = vmul.f32 %v3913_v43, %v1052_v7  ;;  %v4018_v44 = vmul.f32 %v3926_v56, %v1052_v7  ;;  %v4030_v62 = vmul.f32 %v3930_v2, %v1052_v7 }
  0xb8   : > { %v610_v60 = vadd.f32 %v3856_v51, %v609_v50  ;;  %v3999_v50 = vmul.f32 0.0, %v3913_v43  ;;  %v4033_v47 = vmul.f32 %v3932_v17, %v1052_v7 }
  0xb9   : > { %v546_v9 = vpop.f32.mrf.mxu0  ;;  %v1404_v38 = vrot.slane %v1305_v0, 1  ;;  %v1640_v37 = vrot.slane %v4018_v44, 1  ;;  %v2128_v41 = vrot.slane %v4030_v62, 2 }
  0xba   : > { %v547_v4 = vadd.f32 %v3856_v51, %v546_v9  ;;  %v1172_v9 = vmul.f32 %v3946_v45, %v1052_v7  ;;  %v4046_v7 = vmul.f32 0.0, %v3930_v2 }
  0xbc   : > { %v700_v8 = vmax.f32 %v547_v4, 0.0  ;;  %3334 = vmatmul.msk.f32.gmra.mxu0 %vm354_vm0, %v3958_v25  ;;  %3356 = vmatmul.msk.f32.gmra.mxu2 %vm354_vm0, %v334_v11  ;;  %v2822_v4 = vld [vmem:[%s6229_s5 + $0x28] sm:$0xff]  ;;  %v4020_v11 = vmax.f32 %v610_v60, 0.0  ;;  %v4027_v6 = vadd.f32 %v1172_v9, %v3955_v23  ;;  %v2820_v60 = vld [vmem:[%s6229_s5 + $0x18] sm:$0xff] }
  0xbd   : > { %2936 = vmatpush.msra.mxu1 %v2822_v4  ;;  %3416 = vmatpush.msrb.mxu3 %v2822_v4 }
  0xbe   : > { %6409 = vst [vmem:[#allocation41_spill] sm:$0xff] %v4020_v11  ;;  %v4024_v28 = vmul.f32 %v3913_v43, %v700_v8  ;;  %v4042_v9 = vmul.f32 %v3913_v43, %v4020_v11  ;;  %v1173_v42 = vmul.f32 %v3946_v45, %v700_v8  ;;  %v4069_v36 = vmul.f32 %v3930_v2, %v700_v8 }
  0xbf   : > { %v612_v5 = vpop.f32.mrf.mxu2  ;;  %2937 = vmatpush.msra.mxu1 %v2821_v49  ;;  %3417 = vmatpush.msrb.mxu3 %v2821_v49  ;;  %v2819_v49 = vld [vmem:[%s6229_s5 + $0x10] sm:$0xff] }
  0xc0   : > { %v613_v1 = vadd.f32 %v3856_v51, %v612_v5  ;;  %6410 = vst [vmem:[#allocation42_spill] sm:$0xff] %v4042_v9  ;;  %v4054_v5 = vmul.f32 %v3926_v56, %v700_v8  ;;  %v1405_v61 = vrot.slane %v4024_v28, 1 }
  0xc1   : > { %v549_v4 = vpop.f32.mrf.mxu0  ;;  %2938 = vmatpush.msra.mxu1 %v2820_v60  ;;  %3418 = vmatpush.msrb.mxu3 %v2820_v60  ;;  %v2364_v60 = vrot.slane %v4033_v47, 2 }
  0xc2   : > { %v722_v25 = vmax.f32 %v613_v1, 0.0  ;;  %v550_v54 = vadd.f32 %v3856_v51, %v549_v4  ;;  %v4060_v1 = vmul.f32 %v3932_v17, %v700_v8  ;;  %v1641_v47 = vrot.slane %v4054_v5, 1 }
  0xc3   : > { %2939 = vmatpush.msra.mxu1 %v2819_v49  ;;  %3419 = vmatpush.msrb.mxu3 %v2819_v49  ;;  %v4096_v49 = vsel %vm1398_vm2, %v1404_v38, %v1405_v61  ;;  %v2129_v5 = vrot.slane %v4069_v36, 2 }
  0xc4   : > { %v1075_v4 = vsel %vm886_vm1, %v722_v25, 0.0  ;;  %v701_v46 = vmax.f32 %v550_v54, 0.0  ;;  %3335 = vmatmul.msk.f32.gmra.mxu0 %vm354_vm0, %v3988_v48  ;;  %3357 = vmatmul.msk.f32.gmra.mxu2 %vm354_vm0, %v335_v55  ;;  %v2818_v54 = vld [vmem:[%s6229_s5 + $0x8] sm:$0xff]  ;;  %v4078_v25 = vmul.f32 %v3940_v53, %v700_v8  ;;  %v2817_v48 = vld [vmem:[%s6229_s5] sm:$0xff]  ;;  %v2365_v8 = vrot.slane %v4060_v1, 2 }
  0xc5   : > { %v1328_v62 = vmul.f32 %v3913_v43, %v1075_v4  ;;  %2940 = vmatpush.msra.mxu1 %v2818_v54  ;;  %v4091_v55 = vadd.f32 %v1173_v42, %v3955_v23  ;;  %3420 = vmatpush.msrb.mxu3 %v2818_v54  ;;  %v4100_v30 = vmul.f32 %v3926_v56, %v1075_v4 }
  0xc6   : > { %v1054_v28 = vsel %vm886_vm1, %v701_v46, 0.0  ;;  %v4103_v33 = vmul.f32 %v3928_v57, %v1075_v4  ;;  %v4106_v1 = vmul.f32 %v3930_v2, %v1075_v4  ;;  %v4110_v35 = vmul.f32 %v3932_v17, %v1075_v4 }
  0xc7   : > { %v615_v44 = vpop.f32.mrf.mxu2  ;;  %v1307_v46 = vmul.f32 %v3913_v43, %v1054_v28  ;;  %v1546_v0 = vmul.f32 %v3926_v56, %v1054_v28  ;;  %6412 = vst [vmem:[#allocation44_spill] sm:$0xff] %v4100_v30  ;;  %v2031_v42 = vmul.f32 %v3930_v2, %v1054_v28  ;;  %2941 = vmatpush.msra.mxu1 %v2817_v48  ;;  %v1442_v29 = vrot.slane %v1328_v62, 1 }
  0xc8   : > { %6413 = vst [vmem:[#allocation45_spill] sm:$0xff] %v4103_v33  ;;  %v2270_v38 = vmul.f32 %v3932_v17, %v1054_v28  ;;  %v616_v36 = vadd.f32 %v3856_v51, %v615_v44  ;;  %3421 = vmatpush.msrb.mxu3 %v2817_v48  ;;  %v1642_v26 = vsel %vm1398_vm2, %v1640_v37, %v1641_v47 }
  0xc9   : > { %6414 = vst [vmem:[#allocation46_spill] sm:$0xff] %v4106_v1  ;;  %v552_v23 = vpop.f32.mrf.mxu0  ;;  %v1407_v32 = vrot.slane %v1307_v46, 1  ;;  %v4117_v22 = vsel %vm2122_vm4, %v2364_v60, %v2365_v8  ;;  %v4120_v24 = vmul.f32 %v3942_v34, %v1075_v4  ;;  %v1643_v63 = vrot.slane %v1546_v0, 1 }
  0xca   : > { %6415 = vst [vmem:[#allocation47_spill] sm:$0xff] %v4110_v35  ;;  %v553_v54 = vadd.f32 %v3856_v51, %v552_v23  ;;  %v4123_v27 = vsel %vm2122_vm4, %v2128_v41, %v2129_v5  ;;  %v2131_v62 = vrot.slane %v2031_v42, 2  ;;  %v2367_v46 = vrot.slane %v2270_v38, 2 }
  0xcb   : > { %6416 = vst [vmem:[#allocation48_spill] sm:$0xff] %v4120_v24  ;;  %v723_v60 = vmax.f32 %v616_v36, 0.0  ;;  %v6417_v0 = vrot.slane %v4042_v9, 1  ;;  %v4137_v41 = vsel %vm1398_vm2, %v1405_v61, %v1407_v32  ;;  %v4142_v48 = vsel %vm1398_vm2, %v1641_v47, %v1643_v63 }
  0xcc   : > { %v702_v20 = vmax.f32 %v553_v54, 0.0 }
  0xcd   : > { %v4134_v23 = vsel %vm1398_vm2, %v6417_v0, %v1442_v29  ;;  %v4151_v0 = vsel %vm2122_vm4, %v2129_v5, %v2131_v62  ;;  %v4155_v63 = vsel %vm827_vm3, %v723_v60, 0.0 }
  0xce   : > { %v1055_v4 = vsel %vm827_vm3, %v702_v20, 0.0  ;;  %6418 = vst [vmem:[#allocation49_spill] sm:$0xff] %v4134_v23 }
  0xcf   : > { %v618_v54 = vpop.f32.mrf.mxu2  ;;  %v1237_v28 = vmul.f32 %v3964_v39, %v1055_v4  ;;  %v1785_v42 = vmul.f32 %v3928_v57, %v1055_v4  ;;  %v2509_v20 = vmul.f32 %v3942_v34, %v1055_v4  ;;  %v1174_v36 = vmul.f32 %v3946_v45, %v1055_v4  ;;  %6419 = vst [vmem:[#allocation50_spill] sm:$0xff] %v4155_v63 }
  0xd0   : > { %v619_v38 = vadd.f32 %v3856_v51, %v618_v54  ;;  %v1547_v32 = vmul.f32 %v3926_v56, %v1055_v4  ;;  %v2271_v61 = vmul.f32 %v3932_v17, %v1055_v4  ;;  %v4159_v54 = vsel %vm2122_vm4, %v2365_v8, %v2367_v46 }
  0xd1   : > { %v555_v37 = vpop.f32.mrf.mxu0  ;;  %v1269_v29 = vadd.f32 %v1237_v28, %v4027_v6  ;;  %v4162_v44 = vmul.f32 %v3940_v53, %v1055_v4  ;;  %v6421_v28 = vrot.slane %v3999_v50, 1  ;;  %v1881_v1 = vrot.slane %v1785_v42, 1 }
  0xd2   : > { %v556_v47 = vadd.f32 %v3856_v51, %v555_v37  ;;  %v4164_v6 = vmax.f32 %v619_v38, 0.0  ;;  %v1308_v5 = vmul.f32 %v3913_v43, %v1055_v4  ;;  %v2605_v60 = vrot.slane %v2509_v20, 2 }
  0xd3   : > { %v1511_v23 = vadd.f32 %v6421_v28, %v1269_v29  ;;  %v4172_v9 = vadd.f32 %v1174_v36, %v4011_v21  ;;  %v4175_v8 = vmul.f32 %v3930_v2, %v1055_v4  ;;  %v1645_v38 = vrot.slane %v1547_v32, 1 }
  0xd4   : > { %6420 = vst [vmem:[#allocation51_spill] sm:$0xff] %v4164_v6  ;;  %v4169_v62 = vmax.f32 %v556_v47, 0.0  ;;  %v4179_v37 = vmul.f32 %v3913_v43, %v4164_v6  ;;  %v2369_v35 = vrot.slane %v2271_v61, 2  ;;  %v1409_v4 = vrot.slane %v1308_v5, 1 }
  0xd5   : > { %v1752_v46 = vadd.f32 %v1642_v26, %v1511_v23 }
  0xd6   : > { %6422 = vst [vmem:[#allocation52_spill] sm:$0xff] %v4179_v37  ;;  %v4183_v42 = vmul.f32 %v3913_v43, %v4169_v62  ;;  %v4187_v20 = vmul.f32 %v3928_v57, %v4169_v62  ;;  %v4191_v21 = vmul.f32 %v3942_v34, %v4169_v62  ;;  %v1238_v29 = vmul.f32 %v3964_v39, %v4169_v62 }
  0xd7   : > { %v621_v36 = vpop.f32.mrf.mxu2  ;;  %v4197_v26 = vmul.f32 %v3926_v56, %v4169_v62  ;;  %v4201_v23 = vmul.f32 %v3932_v17, %v4169_v62  ;;  %v1175_v32 = vmul.f32 %v3946_v45, %v4169_v62 }
  0xd8   : > { %v622_v61 = vadd.f32 %v3856_v51, %v621_v36  ;;  %v1882_v47 = vrot.slane %v4187_v20, 1  ;;  %v6278_v28 = vrot.slane %v4191_v21, 2  ;;  %v1410_v16 = vrot.slane %v4183_v42, 1 }
  0xd9   : > { %v558_v30 = vpop.f32.mrf.mxu0  ;;  %v1270_v18 = vadd.f32 %v1238_v29, %v4091_v55  ;;  %v1646_v6 = vrot.slane %v4197_v26, 1  ;;  %v2370_v59 = vrot.slane %v4201_v23, 2  ;;  %v6423_v42 = vrot.slane %v3999_v50, 1 }
  0xda   : > { %v725_v63 = vmax.f32 %v622_v61, 0.0  ;;  %v559_v36 = vadd.f32 %v3856_v51, %v558_v30  ;;  %v1883_v20 = vsel %vm1398_vm2, %v1881_v1, %v1882_v47  ;;  %v2607_v5 = vsel %vm2122_vm4, %v2605_v60, %v6278_v28 }
  0xdb   : > { %v1993_v15 = vadd.f32 %v1883_v20, %v1752_v46  ;;  %v1512_v33 = vadd.f32 %v6423_v42, %v1270_v18  ;;  %v4222_v55 = vadd.f32 %v1175_v32, %v4078_v25  ;;  %v4227_v23 = vsel %vm1398_vm2, %v1645_v38, %v1646_v6 }
  0xdc   : > { %v1078_v29 = vsel %vm886_vm1, %v725_v63, 0.0  ;;  %v704_v26 = vmax.f32 %v559_v36, 0.0  ;;  %v4230_v30 = vsel %vm2122_vm4, %v2369_v35, %v2370_v59  ;;  %v4240_v50 = vsel %vm1398_vm2, %v1409_v4, %v1410_v16 }
  0xdd   : > { %v1331_v1 = vmul.f32 %v3913_v43, %v1078_v29  ;;  %v4234_v60 = vmul.f32 %v3926_v56, %v1078_v29  ;;  %v4237_v18 = vmul.f32 %v3928_v57, %v1078_v29  ;;  %v4243_v25 = vmul.f32 %v3930_v2, %v1078_v29 }
  0xde   : > { %v4246_v63 = vmul.f32 %v3932_v17, %v1078_v29  ;;  %v1057_v35 = vsel %vm886_vm1, %v704_v26, 0.0  ;;  %v4252_v46 = vmul.f32 %v3930_v2, %v4169_v62  ;;  %v4256_v61 = vmul.f32 %v3942_v34, %v1078_v29 }
  0xdf   : > { %6424 = vst [vmem:[#allocation53_spill] sm:$0xff] %v4234_v60  ;;  %v1447_v38 = vrot.slane %v1331_v1, 1  ;;  %v624_v4 = vpop.f32.mrf.mxu2  ;;  %v6429_v36 = vrot.slane %v4046_v7, 2  ;;  %v1310_v28 = vmul.f32 %v3913_v43, %v1057_v35  ;;  %v1549_v26 = vmul.f32 %v3926_v56, %v1057_v35 }
  0xe0   : > { %6425 = vst [vmem:[#allocation54_spill] sm:$0xff] %v4237_v18  ;;  %v1787_v24 = vmul.f32 %v3928_v57, %v1057_v35  ;;  %v6430_v1 = vrot.slane %v4179_v37, 1  ;;  %v2034_v29 = vmul.f32 %v3930_v2, %v1057_v35  ;;  %v2273_v60 = vmul.f32 %v3932_v17, %v1057_v35 }
  0xe1   : > { %6426 = vst [vmem:[#allocation55_spill] sm:$0xff] %v4243_v25  ;;  %v2235_v20 = vadd.f32 %v6429_v36, %v1993_v15  ;;  %v2511_v15 = vmul.f32 %v3942_v34, %v1057_v35  ;;  %v561_v36 = vpop.f32.mrf.mxu0  ;;  %v1412_v42 = vrot.slane %v1310_v28, 1  ;;  %v625_v31 = vadd.f32 %v3856_v51, %v624_v4 }
  0xe2   : > { %6427 = vst [vmem:[#allocation56_spill] sm:$0xff] %v4246_v63  ;;  %v4267_v32 = vsel %vm1398_vm2, %v6430_v1, %v1447_v38  ;;  %v1884_v18 = vrot.slane %v1787_v24, 1  ;;  %v2372_v11 = vrot.slane %v2273_v60, 2  ;;  %v562_v37 = vadd.f32 %v3856_v51, %v561_v36  ;;  %v4279_v1 = vld [vmem:[%s6228_s4] ss:$0 sm:$0xff] }
  0xe3   : > { %6428 = vst [vmem:[#allocation57_spill] sm:$0xff] %v4256_v61  ;;  %v1648_v61 = vrot.slane %v1549_v26, 1  ;;  %v2476_v38 = vadd.f32 %v4117_v22, %v2235_v20  ;;  %v1753_v28 = vadd.f32 %v4142_v48, %v1512_v33  ;;  %v4285_v4 = vsel %vm1398_vm2, %v1410_v16, %v1412_v42 }
  0xe4   : > { %6431 = vst [vmem:[#allocation58_spill] sm:$0xff] %v4267_v32  ;;  %v726_v32 = vmax.f32 %v625_v31, 0.0  ;;  %v1885_v24 = vsel %vm1398_vm2, %v1882_v47, %v1884_v18  ;;  %v2136_v60 = vrot.slane %v2034_v29, 2  ;;  %v705_v26 = vmax.f32 %v562_v37, 0.0 }
  0xe5   : > { %v2717_v36 = vadd.f32 %v2607_v5, %v2476_v38  ;;  %v1994_v20 = vadd.f32 %v1885_v24, %v1753_v28  ;;  %v2608_v14 = vrot.slane %v2511_v15, 2  ;;  %v4292_v25 = vsel %vm1398_vm2, %v1646_v6, %v1648_v61 }
  0xe6   : > { %v4289_v22 = vsel %vm827_vm3, %v726_v32, 0.0  ;;  %v4296_v33 = vsel %vm827_vm3, %v705_v26, 0.0  ;;  %v4300_v48 = vsel %vm2122_vm4, %v2370_v59, %v2372_v11  ;;  %v2134_v37 = vrot.slane %v4252_v46, 2 }
  0xe7   : > { %6432 = vst [vmem:[#allocation59_spill] sm:$0xff] %v4289_v22  ;;  %v627_v31 = vpop.f32.mrf.mxu2  ;;  %v2753_v16 = vadd.f32 %v4279_v1, %v2717_v36  ;;  %v6433_v5 = vrot.slane %v4046_v7, 2  ;;  %v1239_v6 = vmul.f32 %v3964_v39, %v4296_v33  ;;  %v1788_v32 = vmul.f32 %v3928_v57, %v4296_v33 }
  0xe8   : > { %v628_v47 = vadd.f32 %v3856_v51, %v627_v31  ;;  %v2512_v29 = vmul.f32 %v3942_v34, %v4296_v33  ;;  %v1176_v59 = vmul.f32 %v3946_v45, %v4296_v33  ;;  %v1550_v11 = vmul.f32 %v3926_v56, %v4296_v33 }
  0xe9   : > { %v2236_v18 = vadd.f32 %v6433_v5, %v1994_v20  ;;  %v2785_v61 = vmax.f32 %v2753_v16, 0.0  ;;  %v564_v42 = vpop.f32.mrf.mxu0  ;;  %v1271_v38 = vadd.f32 %v1239_v6, %v4172_v9  ;;  %v6435_v28 = vrot.slane %v4191_v21, 2 }
  0xea   : > { %v4316_v46 = vmax.f32 %v628_v47, 0.0  ;;  %v565_v7 = vadd.f32 %v3856_v51, %v564_v42  ;;  %v1886_v26 = vrot.slane %v1788_v32, 1  ;;  %v2610_v36 = vrot.slane %v2512_v29, 2 }
  0xeb   : > { %v2477_v15 = vadd.f32 %v4159_v54, %v2236_v18  ;;  %3368 = vmatmul.msk.f32.vlgmr.msra.gmra.mxu1 %vm2829_vm5, %v2785_v61  ;;  %v2609_v24 = vsel %vm2122_vm4, %v6435_v28, %v2608_v14  ;;  %v4327_v20 = vmul.f32 %v3940_v53, %v4169_v62  ;;  %v4336_v9 = vadd.f32 %v1176_v59, %v4162_v44 }
  0xec   : > { %6434 = vst [vmem:[#allocation60_spill] sm:$0xff] %v4316_v46  ;;  %v4329_v31 = vmax.f32 %v565_v7, 0.0  ;;  %v4333_v16 = vmul.f32 %v3913_v43, %v4316_v46  ;;  %v1513_v21 = vadd.f32 %v4096_v49, %v1271_v38  ;;  %v1650_v47 = vrot.slane %v1550_v11, 1 }
  0xed   : > { %v2718_v54 = vadd.f32 %v2609_v24, %v2477_v15  ;;  %v6437_v14 = vrot.slane %v4175_v8, 2  ;;  %v2274_v62 = vmul.f32 %v3932_v17, %v4296_v33  ;;  %v4352_v44 = vsel %vm2122_vm4, %v2134_v37, %v2136_v60 }
  0xee   : > { %6436 = vst [vmem:[#allocation61_spill] sm:$0xff] %v4333_v16  ;;  %v4349_v6 = vmul.f32 %v3913_v43, %v4329_v31  ;;  %v4356_v49 = vmul.f32 %v3940_v53, %v4296_v33  ;;  %v1789_v32 = vmul.f32 %v3928_v57, %v4329_v31  ;;  %v4362_v61 = vmul.f32 %v3942_v34, %v4329_v31 }
  0xef   : > { %v4342_v5 = vsel %vm2122_vm4, %v6437_v14, %v2134_v37  ;;  %v2754_v18 = vadd.f32 %v4279_v1, %v2718_v54  ;;  %v630_v8 = vpop.f32.mrf.mxu2  ;;  %v1240_v42 = vmul.f32 %v3964_v39, %v4329_v31  ;;  %v4368_v29 = vmul.f32 %v3926_v56, %v4329_v31 }
  0xf0   : > { %v631_v60 = vadd.f32 %v3856_v51, %v630_v8  ;;  %v4374_v11 = vmul.f32 %v3932_v17, %v4329_v31  ;;  %v1754_v15 = vadd.f32 %v4227_v23, %v1513_v21  ;;  %v1887_v38 = vrot.slane %v1789_v32, 1 }
  0xf1   : > { %v2786_v59 = vmax.f32 %v2754_v18, 0.0  ;;  %v567_v7 = vpop.f32.mrf.mxu0  ;;  %v6287_v28 = vrot.slane %v4362_v61, 2  ;;  %v1272_v24 = vadd.f32 %v1240_v42, %v4222_v55  ;;  %v1651_v8 = vrot.slane %v4368_v29, 1 }
  0xf2   : > { %v728_v54 = vmax.f32 %v631_v60, 0.0  ;;  %v568_v14 = vadd.f32 %v3856_v51, %v567_v7  ;;  %v6288_v35 = vrot.slane %v4374_v11, 2  ;;  %v1888_v37 = vsel %vm1398_vm2, %v1886_v26, %v1887_v38 }
  0xf3   : > { %3369 = vmatmul.msk.f32.gmra.mxu1 %vm2829_vm5, %v2786_v59  ;;  %v2612_v23 = vsel %vm2122_vm4, %v2610_v36, %v6287_v28  ;;  %v2374_v21 = vrot.slane %v2274_v62, 2  ;;  %v1995_v42 = vadd.f32 %v1888_v37, %v1754_v15  ;;  %v1514_v29 = vadd.f32 %v4137_v41, %v1272_v24 }
  0xf4   : > { %v1081_v55 = vsel %vm886_vm1, %v728_v54, 0.0  ;;  %v707_v32 = vmax.f32 %v568_v14, 0.0  ;;  %v4407_v37 = vsel %vm1398_vm2, %v1650_v47, %v1651_v8 }
  0xf5   : > { %v1334_v60 = vmul.f32 %v3913_v43, %v1081_v55  ;;  %v4393_v59 = vmul.f32 %v3926_v56, %v1081_v55  ;;  %v4396_v7 = vmul.f32 %v3928_v57, %v1081_v55  ;;  %v4399_v26 = vmul.f32 %v3930_v2, %v1081_v55 }
  0xf6   : > { %v4402_v36 = vmul.f32 %v3932_v17, %v1081_v55  ;;  %v1060_v62 = vsel %vm886_vm1, %v707_v32, 0.0  ;;  %v4412_v41 = vsel %vm2122_vm4, %v2374_v21, %v6288_v35  ;;  %v4416_v54 = vmul.f32 %v3942_v34, %v1081_v55 }
  0xf7   : > { %6438 = vst [vmem:[#allocation62_spill] sm:$0xff] %v4393_v59  ;;  %v1452_v15 = vrot.slane %v1334_v60, 1  ;;  %v633_v14 = vpop.f32.mrf.mxu2  ;;  %v2237_v28 = vadd.f32 %v4123_v27, %v1995_v42  ;;  %v1313_v32 = vmul.f32 %v3913_v43, %v1060_v62  ;;  %v1552_v47 = vmul.f32 %v3926_v56, %v1060_v62 }
  0xf8   : > { %6439 = vst [vmem:[#allocation63_spill] sm:$0xff] %v4396_v7  ;;  %v4425_v60 = vmul.f32 %v3930_v2, %v1060_v62  ;;  %v4428_v24 = vmul.f32 %v3932_v17, %v1060_v62  ;;  %v2514_v55 = vmul.f32 %v3942_v34, %v1060_v62  ;;  %v6442_v42 = vrot.slane %v4333_v16, 1 }
  0xf9   : > { %6440 = vst [vmem:[#allocation64_spill] sm:$0xff] %v4402_v36  ;;  %v1790_v36 = vmul.f32 %v3928_v57, %v1060_v62  ;;  %v570_v27 = vpop.f32.mrf.mxu0  ;;  %v1417_v35 = vrot.slane %v1313_v32, 1  ;;  %v1653_v21 = vrot.slane %v1552_v47, 1  ;;  %v2478_v22 = vadd.f32 %v4230_v30, %v2237_v28 }
  0xfa   : > { %6441 = vst [vmem:[#allocation65_spill] sm:$0xff] %v4416_v54  ;;  %v4434_v18 = vsel %vm1398_vm2, %v6442_v42, %v1452_v15  ;;  %v634_v54 = vadd.f32 %v3856_v51, %v633_v14  ;;  %v571_v7 = vadd.f32 %v3856_v51, %v570_v27  ;;  %v2377_v19 = vrot.slane %v4428_v24, 2  ;;  %v666_v15 = vpop.f32.mrf.mxu3  ;;  %v343_v42 = vld [vmem:[%s3701_s12 + $0x198] sm:$0xff] }
  0xfb   : > { %v1889_v59 = vrot.slane %v1790_v36, 1  ;;  %v1755_v10 = vadd.f32 %v4292_v25, %v1514_v29  ;;  %v2719_v36 = vadd.f32 %v2612_v23, %v2478_v22  ;;  %v2613_v12 = vrot.slane %v2514_v55, 2  ;;  %3365 = vmatmul.msk.f32.gmra.mxu3 %vm354_vm0, %v343_v42 }
  0xfc   : > { %v729_v62 = vmax.f32 %v634_v54, 0.0  ;;  %v708_v32 = vmax.f32 %v571_v7, 0.0  ;;  %v667_v14 = vadd.f32 %v3856_v51, %v666_v15  ;;  %v6443_v47 = vrot.slane %v4349_v6, 1 }
  0xfd   : > { %v1890_v16 = vsel %vm1398_vm2, %v1887_v38, %v1889_v59  ;;  %v1177_v38 = vmul.f32 %v3946_v45, %v4329_v31  ;;  %v2755_v29 = vadd.f32 %v4279_v1, %v2719_v36  ;;  %v4463_v7 = vsel %vm1398_vm2, %v1651_v8, %v1653_v21 }
  0xfe   : > { %v4449_v30 = vsel %vm1398_vm2, %v6443_v47, %v1417_v35  ;;  %v4453_v28 = vsel %vm827_vm3, %v729_v62, 0.0  ;;  %v1996_v25 = vadd.f32 %v1890_v16, %v1755_v10  ;;  %v4459_v22 = vsel %vm827_vm3, %v708_v32, 0.0 }
  0xff   : > { %6444 = vst [vmem:[#allocation66_spill] sm:$0xff] %v4453_v28  ;;  %v636_v23 = vpop.f32.mrf.mxu2  ;;  %v740_v59 = vmax.f32 %v667_v14, 0.0  ;;  %v1241_v10 = vmul.f32 %v3964_v39, %v4459_v22  ;;  %v1791_v16 = vmul.f32 %v3928_v57, %v4459_v22  ;;  %v2787_v55 = vmax.f32 %v2755_v29, 0.0 }
 0x100   : > { %6445 = vst [vmem:[#allocation67_spill] sm:$0xff] %v4459_v22  ;;  %v637_v35 = vadd.f32 %v3856_v51, %v636_v23  ;;  %v2238_v54 = vadd.f32 %v4151_v0, %v1996_v25  ;;  %v6446_v62 = vrot.slane %v4362_v61, 2  ;;  %v2515_v8 = vmul.f32 %v3942_v34, %v4459_v22 }
 0x101   : > { %v573_v27 = vpop.f32.mrf.mxu0  ;;  %v1093_v21 = vsel %vm886_vm1, %v740_v59, 0.0  ;;  %v1273_v36 = vadd.f32 %v1241_v10, %v4336_v9  ;;  %3370 = vmatmul.msk.f32.gmra.mxu1 %vm2829_vm5, %v2787_v55  ;;  %v1891_v14 = vrot.slane %v1791_v16, 1  ;;  %v1209_v47 = vadd.f32 %v1177_v38, %v4327_v20 }
 0x102   : > { %v2614_v15 = vsel %vm2122_vm4, %v6446_v62, %v2613_v12  ;;  %v4478_v42 = vmax.f32 %v637_v35, 0.0  ;;  %v574_v0 = vadd.f32 %v3856_v51, %v573_v27  ;;  %v2479_v32 = vadd.f32 %v4300_v48, %v2238_v54 }
 0x103   : > { %v4485_v61 = vmul.f32 %v3913_v43, %v1093_v21  ;;  %v4488_v12 = vmul.f32 %v3926_v56, %v1093_v21  ;;  %v1515_v29 = vadd.f32 %v4240_v50, %v1273_v36  ;;  %v2615_v59 = vrot.slane %v2515_v8, 2 }
 0x104   : > { %6447 = vst [vmem:[#allocation68_spill] sm:$0xff] %v4478_v42  ;;  %v4491_v25 = vmax.f32 %v574_v0, 0.0  ;;  %v4495_v23 = vmul.f32 %v3913_v43, %v4478_v42  ;;  %v4499_v48 = vmul.f32 %v3926_v56, %v4478_v42  ;;  %v2720_v9 = vadd.f32 %v2614_v15, %v2479_v32 }
 0x105   : > { %6448 = vst [vmem:[#allocation69_spill] sm:$0xff] %v4485_v61  ;;  %v4504_v54 = vmul.f32 %v3928_v57, %v1093_v21  ;;  %v1756_v50 = vadd.f32 %v4407_v37, %v1515_v29  ;;  %v4526_v36 = vmul.f32 %v3930_v2, %v1093_v21  ;;  %v4532_v16 = vmul.f32 %v3932_v17, %v1093_v21 }
 0x106   : > { %6449 = vst [vmem:[#allocation70_spill] sm:$0xff] %v4488_v12  ;;  %v2756_v38 = vadd.f32 %v4279_v1, %v2720_v9  ;;  %v4510_v10 = vmul.f32 %v3913_v43, %v4491_v25  ;;  %v4517_v62 = vmul.f32 %v3928_v57, %v4491_v25  ;;  %v4521_v15 = vmul.f32 %v3942_v34, %v4491_v25  ;;  %v344_v12 = vld [vmem:[%s3701_s12 + $0x1a0] sm:$0xff] }
 0x107   : > { %6450 = vst [vmem:[#allocation71_spill] sm:$0xff] %v4499_v48  ;;  %v639_v55 = vpop.f32.mrf.mxu2  ;;  %v1242_v32 = vmul.f32 %v3964_v39, %v4491_v25  ;;  %v6456_v61 = vrot.slane %v4374_v11, 2  ;;  %3366 = vmatmul.msk.f32.gmra.mxu3 %vm354_vm0, %v344_v12 }
 0x108   : > { %6451 = vst [vmem:[#allocation72_spill] sm:$0xff] %v4504_v54  ;;  %v640_v8 = vadd.f32 %v3856_v51, %v639_v55  ;;  %v2788_v0 = vmax.f32 %v2756_v38, 0.0  ;;  %v1892_v37 = vrot.slane %v4517_v62, 1  ;;  %v6300_v29 = vrot.slane %v4521_v15, 2 }
 0x109   : > { %6452 = vst [vmem:[#allocation73_spill] sm:$0xff] %v4510_v10  ;;  %v576_v9 = vpop.f32.mrf.mxu0  ;;  %v4536_v38 = vmul.f32 %v3942_v34, %v1093_v21 }
 0x10a   : > { %6453 = vst [vmem:[#allocation74_spill] sm:$0xff] %v4526_v36  ;;  %v731_v63 = vmax.f32 %v640_v8, 0.0  ;;  %v577_v55 = vadd.f32 %v3856_v51, %v576_v9  ;;  %3371 = vmatmul.msk.f32.gmra.mxu1 %vm2829_vm5, %v2788_v0  ;;  %v1893_v35 = vsel %vm1398_vm2, %v1891_v14, %v1892_v37  ;;  %v2617_v62 = vsel %vm2122_vm4, %v2615_v59, %v6300_v29  ;;  %v669_v14 = vpop.f32.mrf.mxu3 }
 0x10b   : > { %6454 = vst [vmem:[#allocation75_spill] sm:$0xff] %v4532_v16  ;;  %v1997_v20 = vadd.f32 %v1893_v35, %v1756_v50  ;;  %v4554_v0 = vsel %vm2122_vm4, %v6456_v61, %v2377_v19  ;;  %v1274_v61 = vadd.f32 %v1242_v32, %v1209_v47  ;;  %v670_v40 = vadd.f32 %v3856_v51, %v669_v14 }
 0x10c   : > { %6455 = vst [vmem:[#allocation76_spill] sm:$0xff] %v4536_v38  ;;  %v1084_v9 = vsel %vm886_vm1, %v731_v63, 0.0  ;;  %v710_v21 = vmax.f32 %v577_v55, 0.0 }
 0x10d   : > { %v1337_v59 = vmul.f32 %v3913_v43, %v1084_v9  ;;  %v1576_v27 = vmul.f32 %v3926_v56, %v1084_v9  ;;  %v4560_v8 = vmul.f32 %v3928_v57, %v1084_v9  ;;  %v4563_v63 = vmul.f32 %v3930_v2, %v1084_v9 }
 0x10e   : > { %v4567_v24 = vmul.f32 %v3932_v17, %v1084_v9  ;;  %v4570_v19 = vmul.f32 %v3942_v34, %v1084_v9  ;;  %v1063_v11 = vsel %vm886_vm1, %v710_v21, 0.0  ;;  %v2239_v36 = vadd.f32 %v4342_v5, %v1997_v20 }
 0x10f   : > { %6457 = vst [vmem:[#allocation77_spill] sm:$0xff] %v4560_v8  ;;  %v1457_v35 = vrot.slane %v1337_v59, 1  ;;  %v1693_v50 = vrot.slane %v1576_v27, 1  ;;  %v642_v29 = vpop.f32.mrf.mxu2  ;;  %v1316_v16 = vmul.f32 %v3913_v43, %v1063_v11  ;;  %v4579_v38 = vmul.f32 %v3926_v56, %v1063_v11 }
 0x110   : > { %6458 = vst [vmem:[#allocation78_spill] sm:$0xff] %v4563_v63  ;;  %v1793_v9 = vmul.f32 %v3928_v57, %v1063_v11  ;;  %v6460_v21 = vrot.slane %v4495_v23, 1  ;;  %v4589_v32 = vmul.f32 %v3930_v2, %v1063_v11  ;;  %v4592_v5 = vmul.f32 %v3932_v17, %v1063_v11 }
 0x111   : > { %6459 = vst [vmem:[#allocation79_spill] sm:$0xff] %v4570_v19  ;;  %v579_v20 = vpop.f32.mrf.mxu0  ;;  %v6463_v59 = vrot.slane %v4499_v48, 1  ;;  %v1422_v12 = vrot.slane %v1316_v16, 1  ;;  %v2517_v8 = vmul.f32 %v3942_v34, %v1063_v11  ;;  %v643_v54 = vadd.f32 %v3856_v51, %v642_v29 }
 0x112   : > { %v4585_v47 = vsel %vm1398_vm2, %v6460_v21, %v1457_v35  ;;  %6462 = vst [vmem:[#allocation81_spill] sm:$0xff] %v4589_v32  ;;  %v1894_v19 = vrot.slane %v1793_v9, 1  ;;  %v345_v35 = vld [vmem:[%s3701_s12 + $0x1a8] sm:$0xff]  ;;  %v580_v3 = vadd.f32 %v3856_v51, %v579_v20  ;;  %v2480_v48 = vadd.f32 %v4412_v41, %v2239_v36  ;;  %v672_v21 = vpop.f32.mrf.mxu3 }
 0x113   : > { %6461 = vst [vmem:[#allocation80_spill] sm:$0xff] %v4585_v47  ;;  %v4597_v55 = vsel %vm1398_vm2, %v6463_v59, %v1693_v50  ;;  %v1516_v50 = vadd.f32 %v4285_v4, %v1274_v61  ;;  %v732_v9 = vmax.f32 %v643_v54, 0.0  ;;  %v2618_v11 = vrot.slane %v2517_v8, 2  ;;  %3367 = vmatmul.msk.f32.gmra.mxu3 %vm354_vm0, %v345_v35 }
 0x114   : > { %v1895_v16 = vsel %vm1398_vm2, %v1892_v37, %v1894_v19  ;;  %v711_v59 = vmax.f32 %v580_v3, 0.0  ;;  %v2721_v27 = vadd.f32 %v2617_v62, %v2480_v48  ;;  %v673_v20 = vadd.f32 %v3856_v51, %v672_v21  ;;  %v4634_v37 = vld [vmem:[%s6226_s2] ss:$0 sm:$0xff] }
 0x115   : > { %v1757_v29 = vadd.f32 %v4463_v7, %v1516_v50  ;;  %v1178_v41 = vmul.f32 %v3946_v45, %v4459_v22  ;;  %v6464_v4 = vrot.slane %v4510_v10, 1  ;;  %v4622_v3 = vsel %vm827_vm3, %v732_v9, 0.0 }
 0x116   : > { %v4626_v54 = vsel %vm827_vm3, %v711_v59, 0.0  ;;  %v6467_v7 = vrot.slane %v4521_v15, 2  ;;  %v2757_v8 = vadd.f32 %v4279_v1, %v2721_v27  ;;  %v741_v19 = vmax.f32 %v670_v40, 0.0 }
 0x117   : > { %v4618_v36 = vsel %vm1398_vm2, %v6464_v4, %v1422_v12  ;;  %6466 = vst [vmem:[#allocation83_spill] sm:$0xff] %v4626_v54  ;;  %v645_v48 = vpop.f32.mrf.mxu2  ;;  %v1998_v14 = vadd.f32 %v1895_v16, %v1757_v29  ;;  %v4638_v12 = vmax.f32 %v673_v20, 0.0  ;;  %v1210_v35 = vadd.f32 %v1178_v41, %v4356_v49 }
 0x118   : > { %6465 = vst [vmem:[#allocation82_spill] sm:$0xff] %v4618_v36  ;;  %v2619_v51 = vsel %vm2122_vm4, %v6467_v7, %v2618_v11  ;;  %v646_v62 = vadd.f32 %v4634_v37, %v645_v48  ;;  %v1243_v15 = vmul.f32 %v3964_v39, %v4626_v54  ;;  %v1311_v21 = vmul.f32 %v3913_v43, %v4296_v33 }
 0x119   : > { %v582_v61 = vpop.f32.mrf.mxu0  ;;  %6468 = vst [vmem:[#allocation84_spill] sm:$0xff] %v4638_v12  ;;  %v2789_v9 = vmax.f32 %v2757_v8, 0.0  ;;  %v2240_v27 = vadd.f32 %v4352_v44, %v1998_v14  ;;  %v1553_v11 = vmul.f32 %v3926_v56, %v4459_v22  ;;  %v4653_v49 = vmul.f32 %v3926_v56, %v4491_v25 }
 0x11a   : > { %v4645_v50 = vmax.f32 %v646_v62, 0.0  ;;  %v583_v59 = vadd.f32 %v4634_v37, %v582_v61  ;;  %v1275_v16 = vadd.f32 %v1243_v15, %v1210_v35  ;;  %v1414_v40 = vrot.slane %v1311_v21, 1 }
 0x11b   : > { %3372 = vmatmul.msk.f32.gmra.mxu1 %vm2829_vm5, %v2789_v9  ;;  %v2481_v41 = vadd.f32 %v4554_v0, %v2240_v27  ;;  %v1794_v44 = vmul.f32 %v3928_v57, %v4626_v54  ;;  %v6470_v4 = vrot.slane %v4349_v6, 1  ;;  %v1655_v7 = vrot.slane %v1553_v11, 1 }
 0x11c   : > { %v4656_v29 = vmax.f32 %v583_v59, 0.0  ;;  %v4660_v20 = vmul.f32 %v3913_v43, %v4645_v50  ;;  %v6309_v62 = vrot.slane %v4653_v49, 1  ;;  %v2035_v8 = vmul.f32 %v3930_v2, %v4296_v33 }
 0x11d   : > { %v1416_v48 = vsel %vm1398_vm2, %v1414_v40, %v6470_v4  ;;  %v2722_v61 = vadd.f32 %v2619_v51, %v2481_v41  ;;  %v4674_v35 = vsel %vm827_vm3, %v741_v19, 0.0  ;;  %v4689_v51 = vmul.f32 %v3930_v2, %v4329_v31 }
 0x11e   : > { %6469 = vst [vmem:[#allocation85_spill] sm:$0xff] %v4660_v20  ;;  %v1517_v0 = vadd.f32 %v1416_v48, %v1275_v16  ;;  %v4678_v6 = vmul.f32 %v3913_v43, %v4656_v29  ;;  %v1657_v21 = vsel %vm1398_vm2, %v1655_v7, %v6309_v62  ;;  %v4685_v33 = vmul.f32 %v3928_v57, %v4656_v29 }
 0x11f   : > { %6471 = vst [vmem:[#allocation86_spill] sm:$0xff] %v4674_v35  ;;  %v648_v15 = vpop.f32.mrf.mxu2  ;;  %v2758_v9 = vadd.f32 %v4279_v1, %v2722_v61  ;;  %v1896_v27 = vrot.slane %v1794_v44, 1  ;;  %v2138_v11 = vrot.slane %v2035_v8, 2  ;;  %v6310_v41 = vrot.slane %v4689_v51, 2 }
 0x120   : > { %6472 = vst [vmem:[#allocation87_spill] sm:$0xff] %v4678_v6  ;;  %v649_v19 = vadd.f32 %v4634_v37, %v648_v15  ;;  %v1758_v59 = vadd.f32 %v1657_v21, %v1517_v0  ;;  %v6311_v40 = vrot.slane %v4685_v33, 1  ;;  %v2277_v4 = vmul.f32 %v3932_v17, %v4459_v22 }
 0x121   : > { %v585_v16 = vpop.f32.mrf.mxu0  ;;  %v2790_v7 = vmax.f32 %v2758_v9, 0.0  ;;  %v4700_v15 = vmul.f32 %v3932_v17, %v4491_v25  ;;  %v2140_v8 = vsel %vm2122_vm4, %v2138_v11, %v6310_v41  ;;  %v6482_v41 = vrot.slane %v4678_v6, 1 }
 0x122   : > { %v734_v48 = vmax.f32 %v649_v19, 0.0  ;;  %v586_v13 = vadd.f32 %v4634_v37, %v585_v16  ;;  %v1898_v44 = vsel %vm1398_vm2, %v1896_v27, %v6311_v40  ;;  %v2379_v0 = vrot.slane %v2277_v4, 2 }
 0x123   : > { %3373 = vmatmul.msk.f32.gmra.mxu1 %vm2829_vm5, %v2790_v7  ;;  %v1999_v9 = vadd.f32 %v1898_v44, %v1758_v59  ;;  %v2518_v16 = vmul.f32 %v3942_v34, %v4626_v54  ;;  %v4806_v6 = vmul.f32 %v3930_v2, %v4316_v46 }
 0x124   : > { %v1087_v21 = vsel %vm886_vm1, %v734_v48, 0.0  ;;  %v713_v19 = vmax.f32 %v586_v13, 0.0 }
 0x125   : > { %v1340_v62 = vmul.f32 %v3913_v43, %v1087_v21  ;;  %v4716_v61 = vmul.f32 %v3926_v56, %v1087_v21  ;;  %v4719_v27 = vmul.f32 %v3928_v57, %v1087_v21  ;;  %v4722_v11 = vmul.f32 %v3930_v2, %v1087_v21  ;;  %6486 = vst [vmem:[#allocation98_spill] sm:$0xff] %v4806_v6 }
 0x126   : > { %v4725_v4 = vmul.f32 %v3932_v17, %v1087_v21  ;;  %v4728_v13 = vmul.f32 %v3942_v34, %v1087_v21  ;;  %v1066_v59 = vsel %vm886_vm1, %v713_v19, 0.0  ;;  %v2241_v14 = vadd.f32 %v2140_v8, %v1999_v9 }
 0x127   : > { %6473 = vst [vmem:[#allocation88_spill] sm:$0xff] %v4716_v61  ;;  %v1462_v7 = vrot.slane %v1340_v62, 1  ;;  %v651_v40 = vpop.f32.mrf.mxu2  ;;  %v1319_v32 = vmul.f32 %v3913_v43, %v1066_v59  ;;  %v4739_v21 = vmul.f32 %v3926_v56, %v1066_v59  ;;  %v4743_v48 = vmul.f32 %v3928_v57, %v1066_v59 }
 0x128   : > { %6474 = vst [vmem:[#allocation89_spill] sm:$0xff] %v4722_v11  ;;  %v4746_v62 = vmul.f32 %v3930_v2, %v1066_v59  ;;  %v4749_v44 = vmul.f32 %v3932_v17, %v1066_v59  ;;  %v6479_v9 = vrot.slane %v4660_v20, 1  ;;  %v652_v19 = vadd.f32 %v4634_v37, %v651_v40  ;;  %v675_v40 = vpop.f32.mrf.mxu3 }
 0x129   : > { %6475 = vst [vmem:[#allocation90_spill] sm:$0xff] %v4725_v4  ;;  %v588_v8 = vpop.f32.mrf.mxu0  ;;  %v1427_v47 = vrot.slane %v1319_v32, 1  ;;  %v4761_v63 = vmul.f32 %v3942_v34, %v1066_v59  ;;  %v2620_v12 = vrot.slane %v2518_v16, 2  ;;  %v6495_v54 = vrot.slane %v4719_v27, 1 }
 0x12a   : > { %6476 = vst [vmem:[#allocation91_spill] sm:$0xff] %v4739_v21  ;;  %v4754_v36 = vsel %vm1398_vm2, %v6479_v9, %v1462_v7  ;;  %v589_v61 = vadd.f32 %v4634_v37, %v588_v8  ;;  %v735_v20 = vmax.f32 %v652_v19, 0.0  ;;  %v6481_v7 = vrot.slane %v4700_v15, 2 }
 0x12b   : > { %6477 = vst [vmem:[#allocation92_spill] sm:$0xff] %v4746_v62  ;;  %v4770_v9 = vmul.f32 %v3942_v34, %v4656_v29  ;;  %v4775_v4 = vsel %vm1398_vm2, %v6482_v41, %v1427_v47  ;;  %v676_v8 = vadd.f32 %v4634_v37, %v675_v40 }
 0x12c   : > { %6478 = vst [vmem:[#allocation93_spill] sm:$0xff] %v4749_v44  ;;  %v2381_v32 = vsel %vm2122_vm4, %v2379_v0, %v6481_v7  ;;  %v714_v59 = vmax.f32 %v589_v61, 0.0  ;;  %v1128_v0 = vmul.f32 %v3940_v53, %v4316_v46  ;;  %v1193_v7 = vmul.f32 %v3946_v45, %v4478_v42 }
 0x12d   : > { %6480 = vst [vmem:[#allocation94_spill] sm:$0xff] %v4754_v36  ;;  %v2482_v11 = vadd.f32 %v2381_v32, %v2241_v14  ;;  %v6322_v19 = vrot.slane %v4770_v9, 2  ;;  %v4785_v36 = vsel %vm827_vm3, %v735_v20, 0.0  ;;  %v743_v41 = vmax.f32 %v676_v8, 0.0 }
 0x12e   : > { %6483 = vst [vmem:[#allocation95_spill] sm:$0xff] %v4775_v4  ;;  %v4789_v47 = vsel %vm827_vm3, %v714_v59, 0.0  ;;  %v4793_v61 = vmul.f32 %v3928_v57, %v4645_v50  ;;  %v1225_v40 = vadd.f32 %v1193_v7, %v1128_v0  ;;  %v1258_v20 = vmul.f32 %v3964_v39, %v4645_v50 }
 0x12f   : > { %6484 = vst [vmem:[#allocation96_spill] sm:$0xff] %v4789_v47  ;;  %v654_v14 = vpop.f32.mrf.mxu2  ;;  %v2622_v32 = vsel %vm2122_vm4, %v2620_v12, %v6322_v19  ;;  %v1096_v59 = vsel %vm886_vm1, %v743_v41, 0.0  ;;  %v4846_v46 = vmul.f32 %v3942_v34, %v4645_v50  ;;  %v6497_v8 = vrot.slane %v4399_v26, 2 }
 0x130   : > { %6485 = vst [vmem:[#allocation97_spill] sm:$0xff] %v4793_v61  ;;  %v655_v16 = vadd.f32 %v4634_v37, %v654_v14  ;;  %v2723_v4 = vadd.f32 %v2622_v32, %v2482_v11  ;;  %v4810_v44 = vmul.f32 %v3913_v43, %v1096_v59  ;;  %v4813_v12 = vmul.f32 %v3926_v56, %v1096_v59 }
 0x131   : > { %v591_v62 = vpop.f32.mrf.mxu0  ;;  %v4817_v11 = vmul.f32 %v3932_v17, %v4478_v42  ;;  %v4821_v7 = vmul.f32 %v3928_v57, %v1096_v59  ;;  %v4824_v41 = vmul.f32 %v3930_v2, %v1096_v59  ;;  %v4838_v47 = vmul.f32 %v3942_v34, %v1096_v59  ;;  %6493 = vst [vmem:[#allocation105_spill] sm:$0xff] %v4846_v46 }
 0x132   : > { %v592_v14 = vadd.f32 %v4634_v37, %v591_v62  ;;  %6487 = vst [vmem:[#allocation99_spill] sm:$0xff] %v4813_v12  ;;  %v2759_v0 = vadd.f32 %v4279_v1, %v2723_v4  ;;  %v4827_v62 = vmul.f32 %v3932_v17, %v1096_v59  ;;  %v4829_v32 = vmax.f32 %v655_v16, 0.0 }
 0x133   : > { %6488 = vst [vmem:[#allocation100_spill] sm:$0xff] %v4817_v11  ;;  %v1290_v22 = vadd.f32 %v1258_v20, %v1225_v40  ;;  %v6335_v16 = vrot.slane %v4806_v6, 2  ;;  %v1114_v59 = vmul.f32 %v3940_v53, %v4329_v31  ;;  %v1179_v40 = vmul.f32 %v3946_v45, %v4491_v25 }
 0x134   : > { %6489 = vst [vmem:[#allocation101_spill] sm:$0xff] %v4821_v7  ;;  %v4831_v19 = vmax.f32 %v592_v14, 0.0  ;;  %v2791_v21 = vmax.f32 %v2759_v0, 0.0  ;;  %v4850_v10 = vmul.f32 %v3913_v43, %v4829_v32  ;;  %v6498_v31 = vrot.slane %v4567_v24, 2 }
 0x135   : > { %6490 = vst [vmem:[#allocation102_spill] sm:$0xff] %v4824_v41  ;;  %v1532_v20 = vadd.f32 %v4434_v18, %v1290_v22  ;;  %v2177_v14 = vsel %vm2122_vm4, %v6335_v16, %v6497_v8  ;;  %v6336_v22 = vrot.slane %v4846_v46, 2  ;;  %v1211_v27 = vadd.f32 %v1179_v40, %v1114_v59 }
 0x136   : > { %6491 = vst [vmem:[#allocation103_spill] sm:$0xff] %v4827_v62  ;;  %3374 = vmatmul.msk.f32.gmra.mxu1 %vm2829_vm5, %v2791_v21  ;;  %v6496_v21 = vrot.slane %v4793_v61, 1  ;;  %v6499_v62 = vrot.slane %v4817_v11, 2  ;;  %v6337_v8 = vrot.slane %v4850_v10, 1  ;;  %v6501_v24 = vrot.slane %v4653_v49, 1 }
 0x137   : > { %6492 = vst [vmem:[#allocation104_spill] sm:$0xff] %v4838_v47  ;;  %v657_v0 = vpop.f32.mrf.mxu2  ;;  %v1773_v26 = vadd.f32 %v4597_v55, %v1532_v20  ;;  %v6504_v55 = vrot.slane %v4685_v33, 1  ;;  %v6505_v20 = vrot.slane %v4425_v60, 2 }
 0x138   : > { %6494 = vst [vmem:[#allocation106_spill] sm:$0xff] %v4850_v10  ;;  %v1935_v4 = vsel %vm1398_vm2, %v6496_v21, %v6495_v54  ;;  %v658_v41 = vadd.f32 %v4634_v37, %v657_v0  ;;  %v2418_v18 = vsel %vm2122_vm4, %v6499_v62, %v6498_v31  ;;  %v1244_v54 = vmul.f32 %v3964_v39, %v4656_v29  ;;  %v6532_v10 = vld [vmem:[#allocation73_spill] sm:$0xff] }
 0x139   : > { %v594_v21 = vpop.f32.mrf.mxu0  ;;  %v6500_v0 = vrot.slane %v4579_v38, 1  ;;  %v6502_v62 = vrot.slane %v4728_v13, 2  ;;  %v6503_v31 = vrot.slane %v4743_v48, 1  ;;  %v6506_v38 = vrot.slane %v4689_v51, 2 }
 0x13a   : > { %v737_v6 = vmax.f32 %v658_v41, 0.0  ;;  %v1276_v40 = vadd.f32 %v1244_v54, %v1211_v27  ;;  %v595_v27 = vadd.f32 %v4634_v37, %v594_v21  ;;  %v6511_v21 = vrot.slane %v4700_v15, 2 }
 0x13b   : > { %v1659_v16 = vsel %vm1398_vm2, %v6501_v24, %v6500_v0  ;;  %v2659_v59 = vsel %vm2122_vm4, %v6336_v22, %v6502_v62  ;;  %v1900_v41 = vsel %vm1398_vm2, %v6504_v55, %v6503_v31  ;;  %v2142_v49 = vsel %vm2122_vm4, %v6506_v38, %v6505_v20 }
 0x13c   : > { %v2014_v0 = vadd.f32 %v1935_v4, %v1773_v26  ;;  %v1090_v13 = vsel %vm886_vm1, %v737_v6, 0.0  ;;  %v2623_v24 = vrot.slane %v4761_v63, 2  ;;  %v1518_v6 = vadd.f32 %v4449_v30, %v1276_v40  ;;  %v678_v40 = vpop.f32.mrf.mxu3 }
 0x13d   : > { %v1343_v48 = vmul.f32 %v3913_v43, %v1090_v13  ;;  %v4904_v33 = vmul.f32 %v3926_v56, %v1090_v13  ;;  %v4907_v54 = vmul.f32 %v3928_v57, %v1090_v13  ;;  %v4910_v60 = vmul.f32 %v3930_v2, %v1090_v13 }
 0x13e   : > { %v2256_v51 = vadd.f32 %v2177_v14, %v2014_v0  ;;  %v4913_v4 = vmul.f32 %v3932_v17, %v1090_v13  ;;  %v6510_v63 = vrot.slane %v4592_v5, 2  ;;  %v4924_v20 = vmul.f32 %v3942_v34, %v1090_v13 }
 0x13f   : > { %6507 = vst [vmem:[#allocation107_spill] sm:$0xff] %v4904_v33  ;;  %v1467_v62 = vrot.slane %v1343_v48, 1  ;;  %v1759_v30 = vadd.f32 %v1659_v16, %v1518_v6  ;;  %v6512_v5 = vrot.slane %v4770_v9, 2  ;;  %v4933_v48 = vmul.f32 %v3913_v43, %v4831_v19  ;;  %v660_v9 = vpop.f32.mrf.mxu2 }
 0x140   : > { %6508 = vst [vmem:[#allocation108_spill] sm:$0xff] %v4910_v60  ;;  %v2383_v26 = vsel %vm2122_vm4, %v6511_v21, %v6510_v63  ;;  %v2497_v14 = vadd.f32 %v2418_v18, %v2256_v51  ;;  %v716_v63 = vmax.f32 %v595_v27, 0.0  ;;  %v679_v21 = vadd.f32 %v4634_v37, %v678_v40 }
 0x141   : > { %6509 = vst [vmem:[#allocation109_spill] sm:$0xff] %v4913_v4  ;;  %v2624_v15 = vsel %vm2122_vm4, %v6512_v5, %v2623_v24  ;;  %v4939_v18 = vsel %vm1398_vm2, %v6337_v8, %v1467_v62  ;;  %v2000_v51 = vadd.f32 %v1900_v41, %v1759_v30  ;;  %v1137_v16 = vmul.f32 %v3940_v53, %v4674_v35  ;;  %v597_v55 = vpop.f32.mrf.mxu0 }
 0x142   : > { %6513 = vst [vmem:[#allocation110_spill] sm:$0xff] %v4933_v48  ;;  %v2738_v13 = vadd.f32 %v2659_v59, %v2497_v14  ;;  %v1069_v24 = vsel %vm886_vm1, %v716_v63, 0.0  ;;  %v744_v6 = vmax.f32 %v679_v21, 0.0  ;;  %v4947_v5 = vmul.f32 0.0, %v3964_v39 }
 0x143   : > { %6514 = vst [vmem:[#allocation111_spill] sm:$0xff] %v4939_v18  ;;  %v2242_v14 = vadd.f32 %v2142_v49, %v2000_v51  ;;  %v1322_v62 = vmul.f32 %v3913_v43, %v1069_v24  ;;  %v4952_v41 = vmul.f32 %v3926_v56, %v1069_v24  ;;  %v4955_v30 = vmul.f32 %v3928_v57, %v1069_v24 }
 0x144   : > { %v2774_v59 = vadd.f32 %v4279_v1, %v2738_v13  ;;  %v4958_v40 = vmul.f32 %v3930_v2, %v1069_v24  ;;  %v4961_v63 = vmul.f32 %v3932_v17, %v1069_v24  ;;  %v661_v21 = vadd.f32 %v4634_v37, %v660_v9  ;;  %v681_v0 = vpop.f32.mrf.mxu3 }
 0x145   : > { %v2483_v38 = vadd.f32 %v2383_v26, %v2242_v14  ;;  %v1432_v13 = vrot.slane %v1322_v62, 1  ;;  %v4965_v49 = vmul.f32 %v3942_v34, %v1069_v24  ;;  %v1097_v31 = vsel %vm827_vm3, %v744_v6, 0.0 }
 0x146   : > { %6515 = vst [vmem:[#allocation112_spill] sm:$0xff] %v4958_v40  ;;  %v2806_v22 = vmax.f32 %v2774_v59, 0.0  ;;  %v6517_v9 = vrot.slane %v4933_v48, 1  ;;  %v1202_v59 = vmul.f32 %v3946_v45, %v1097_v31  ;;  %v4981_v14 = vmul.f32 %v3964_v39, %v1097_v31 }
 0x147   : > { %6516 = vst [vmem:[#allocation113_spill] sm:$0xff] %v4961_v63  ;;  %v2724_v27 = vadd.f32 %v2624_v15, %v2483_v38  ;;  %v4984_v62 = vmul.f32 %v3926_v56, %v1097_v31  ;;  %v4987_v6 = vmul.f32 %v3928_v57, %v1097_v31  ;;  %v4997_v8 = vmul.f32 %v3942_v34, %v1097_v31 }
 0x148   : > { %3389 = vmatmul.msk.f32.vlgmr.msrb.gmra.mxu3 %vm2829_vm5, %v2806_v22  ;;  %v4976_v26 = vsel %vm1398_vm2, %v6517_v9, %v1432_v13  ;;  %6519 = vst [vmem:[#allocation115_spill] sm:$0xff] %v4981_v14  ;;  %v4990_v22 = vmul.f32 %v3932_v17, %v1097_v31  ;;  %v1234_v15 = vadd.f32 %v1202_v59, %v1137_v16  ;;  %v738_v13 = vmax.f32 %v661_v21, 0.0  ;;  %v6528_v14 = vld [vmem:[#allocation83_spill] sm:$0xff] }
 0x149   : > { %6518 = vst [vmem:[#allocation114_spill] sm:$0xff] %v4976_v26  ;;  %v2760_v38 = vadd.f32 %v4279_v1, %v2724_v27  ;;  %v598_v9 = vadd.f32 %v4634_v37, %v597_v55  ;;  %v682_v46 = vadd.f32 %v4634_v37, %v681_v0  ;;  %v1129_v55 = vmul.f32 %v3940_v53, %v4453_v28 }
 0x14a   : > { %6520 = vst [vmem:[#allocation116_spill] sm:$0xff] %v4984_v62  ;;  %v5001_v61 = vadd.f32 %v4947_v5, %v1234_v15  ;;  %v1194_v21 = vmul.f32 %v3946_v45, %v4622_v3  ;;  %v1259_v31 = vmul.f32 %v3964_v39, %v4785_v36  ;;  %v5015_v0 = vsel %vm827_vm3, %v738_v13, 0.0 }
 0x14b   : > { %6521 = vst [vmem:[#allocation117_spill] sm:$0xff] %v4987_v6  ;;  %v2792_v11 = vmax.f32 %v2760_v38, 0.0  ;;  %v717_v16 = vmax.f32 %v598_v9, 0.0  ;;  %v5004_v27 = vmax.f32 %v682_v46, 0.0  ;;  %v1335_v59 = vmul.f32 %v3913_v43, %v4453_v28 }
 0x14c   : > { %6522 = vst [vmem:[#allocation118_spill] sm:$0xff] %v4990_v22  ;;  %v1577_v46 = vmul.f32 %v3926_v56, %v4622_v3  ;;  %v5023_v38 = vmul.f32 %v3926_v56, %v4645_v50  ;;  %v1226_v13 = vadd.f32 %v1194_v21, %v1129_v55  ;;  %v1818_v9 = vmul.f32 %v3928_v57, %v4785_v36 }
 0x14d   : > { %6523 = vst [vmem:[#allocation119_spill] sm:$0xff] %v4997_v8  ;;  %3375 = vmatmul.msk.f32.gmra.mxu1 %vm2829_vm5, %v2792_v11  ;;  %v5027_v15 = vsel %vm827_vm3, %v717_v16, 0.0  ;;  %v5031_v11 = vmul.f32 %v3946_v45, %v5004_v27  ;;  %v1454_v1 = vrot.slane %v1335_v59, 1  ;;  %v5038_v22 = vmul.f32 %v3928_v57, %v4829_v32 }
 0x14e   : > { %6524 = vst [vmem:[#allocation120_spill] sm:$0xff] %v5001_v61  ;;  %v1695_v24 = vrot.slane %v1577_v46, 1  ;;  %v6346_v51 = vrot.slane %v5023_v38, 1  ;;  %v1291_v61 = vadd.f32 %v1259_v31, %v1226_v13  ;;  %v1936_v52 = vrot.slane %v1818_v9, 1  ;;  %v663_v13 = vpop.f32.mrf.mxu2 }
 0x14f   : > { %v2059_v16 = vmul.f32 %v3930_v2, %v4453_v28  ;;  %v5044_v62 = vmul.f32 %v3930_v2, %v4478_v42  ;;  %v6525_v55 = vrot.slane %v4495_v23, 1  ;;  %v6347_v46 = vrot.slane %v5038_v22, 1 }
 0x150   : > { %v1697_v59 = vsel %vm1398_vm2, %v1695_v24, %v6346_v51  ;;  %v2301_v31 = vmul.f32 %v3932_v17, %v4622_v3  ;;  %v5058_v8 = vmul.f32 %v3932_v17, %v4645_v50  ;;  %v2542_v24 = vmul.f32 %v3942_v34, %v4785_v36 }
 0x151   : > { %v1456_v21 = vsel %vm1398_vm2, %v1454_v1, %v6525_v55  ;;  %v2178_v28 = vrot.slane %v2059_v16, 2  ;;  %v1938_v23 = vsel %vm1398_vm2, %v1936_v52, %v6347_v46  ;;  %v5067_v55 = vmul.f32 %v3942_v34, %v4829_v32 }
 0x152   : > { %v1533_v9 = vadd.f32 %v1456_v21, %v1291_v61  ;;  %v2419_v1 = vrot.slane %v2301_v31, 2  ;;  %v5071_v61 = vmul.f32 %v3964_v39, %v5004_v27  ;;  %v6350_v21 = vrot.slane %v5058_v8, 2  ;;  %v6527_v31 = vld [vmem:[#allocation67_spill] sm:$0xff] }
 0x153   : > { %v664_v51 = vadd.f32 %v4634_v37, %v663_v13  ;;  %v2660_v12 = vrot.slane %v2542_v24, 2  ;;  %v1115_v46 = vmul.f32 %v3940_v53, %v6527_v31  ;;  %v1180_v6 = vmul.f32 %v3946_v45, %v6528_v14 }
 0x154   : > { %6526 = vst [vmem:[#allocation121_spill] sm:$0xff] %v5071_v61  ;;  %v1774_v16 = vadd.f32 %v1697_v59, %v1533_v9  ;;  %v6529_v47 = vrot.slane %v5044_v62, 2  ;;  %v2421_v59 = vsel %vm2122_vm4, %v2419_v1, %v6350_v21  ;;  %v6530_v9 = vld [vmem:[#allocation96_spill] sm:$0xff]  ;;  %v1314_v61 = vmul.f32 %v3913_v43, %v6527_v31 }
 0x155   : > { %v1245_v13 = vmul.f32 %v3964_v39, %v6530_v9  ;;  %v5088_v24 = vmax.f32 %v664_v51, 0.0  ;;  %v1212_v52 = vadd.f32 %v1180_v6, %v1115_v46  ;;  %v5102_v1 = vmul.f32 %v3928_v57, %v4831_v19 }
 0x156   : > { %v2015_v18 = vadd.f32 %v1938_v23, %v1774_v16  ;;  %v2180_v60 = vsel %vm2122_vm4, %v2178_v28, %v6529_v47  ;;  %v1556_v23 = vmul.f32 %v3926_v56, %v6528_v14  ;;  %v5096_v28 = vmul.f32 %v3926_v56, %v4656_v29 }
 0x157   : > { %v1797_v47 = vmul.f32 %v3928_v57, %v6530_v9  ;;  %v6531_v51 = vrot.slane %v5067_v55, 2  ;;  %v1277_v46 = vadd.f32 %v1245_v13, %v1212_v52  ;;  %v1419_v21 = vrot.slane %v1314_v61, 1  ;;  %v684_v61 = vpop.f32.mrf.mxu3 }
 0x158   : > { %v2257_v16 = vadd.f32 %v2180_v60, %v2015_v18  ;;  %v2038_v60 = vmul.f32 %v3930_v2, %v6527_v31  ;;  %v1660_v26 = vrot.slane %v1556_v23, 1  ;;  %v6360_v7 = vrot.slane %v5096_v28, 1 }
 0x159   : > { %v2662_v6 = vsel %vm2122_vm4, %v2660_v12, %v6531_v51  ;;  %v6359_v40 = vrot.slane %v5102_v1, 1  ;;  %v6533_v35 = vrot.slane %v6532_v10, 1  ;;  %v1901_v4 = vrot.slane %v1797_v47, 1 }
 0x15a   : > { %v2498_v18 = vadd.f32 %v2421_v59, %v2257_v16  ;;  %v5116_v33 = vmul.f32 %v3930_v2, %v4491_v25  ;;  %v2280_v12 = vmul.f32 %v3932_v17, %v6528_v14  ;;  %v1662_v59 = vsel %vm1398_vm2, %v1660_v26, %v6360_v7 }
 0x15b   : > { %v1421_v48 = vsel %vm1398_vm2, %v1419_v21, %v6533_v35  ;;  %v2143_v13 = vrot.slane %v2038_v60, 2  ;;  %v1903_v10 = vsel %vm1398_vm2, %v1901_v4, %v6359_v40  ;;  %v5129_v21 = vmul.f32 %v3932_v17, %v4656_v29  ;;  %v6534_v60 = vld [vmem:[#allocation84_spill] sm:$0xff] }
 0x15c   : > { %v2739_v52 = vadd.f32 %v2662_v6, %v2498_v18  ;;  %v1519_v31 = vadd.f32 %v1421_v48, %v1277_v46  ;;  %v6364_v35 = vrot.slane %v5116_v33, 2  ;;  %v2521_v23 = vmul.f32 %v3942_v34, %v6530_v9  ;;  %v5136_v48 = vld [vmem:[%s6228_s4] ss:$0 sm:$0xff] }
 0x15d   : > { %v5141_v4 = vmul.f32 %v3942_v34, %v4831_v19  ;;  %v685_v47 = vadd.f32 %v4634_v37, %v684_v61  ;;  %v2384_v6 = vrot.slane %v2280_v12, 2  ;;  %v2385_v46 = vrot.slane %v5129_v21, 2 }
 0x15e   : > { %v2775_v26 = vadd.f32 %v5136_v48, %v2739_v52  ;;  %v1760_v16 = vadd.f32 %v1662_v59, %v1519_v31  ;;  %v2145_v51 = vsel %vm2122_vm4, %v2143_v13, %v6364_v35  ;;  %v1138_v18 = vmul.f32 %v3940_v53, %v6534_v60 }
 0x15f   : > { %v2626_v52 = vrot.slane %v5141_v4, 2  ;;  %v746_v31 = vmax.f32 %v685_v47, 0.0  ;;  %v2625_v59 = vrot.slane %v2521_v23, 2  ;;  %v5154_v37 = vmul.f32 %v3913_v43, %v6534_v60 }
 0x160   : > { %v2807_v40 = vmax.f32 %v2775_v26, 0.0  ;;  %v2001_v7 = vadd.f32 %v1903_v10, %v1760_v16  ;;  %v1235_v63 = vadd.f32 %v5031_v11, %v1138_v18  ;;  %v5158_v12 = vmul.f32 %v3926_v56, %v5004_v27 }
 0x161   : > { %v2386_v13 = vsel %vm2122_vm4, %v2384_v6, %v2385_v46  ;;  %v1099_v10 = vsel %vm886_vm1, %v746_v31, 0.0  ;;  %v5166_v21 = vmul.f32 %v3928_v57, %v5004_v27  ;;  %v2627_v11 = vsel %vm2122_vm4, %v2625_v59, %v2626_v52 }
 0x162   : > { %3390 = vmatmul.msk.f32.gmra.mxu3 %vm2829_vm5, %v2807_v40  ;;  %v2243_v61 = vadd.f32 %v2145_v51, %v2001_v7  ;;  %v1300_v23 = vadd.f32 %v4947_v5, %v1235_v63  ;;  %v6362_v26 = vrot.slane %v5154_v37, 1  ;;  %v1591_v16 = vmul.f32 %v3926_v56, %v1099_v10 }
 0x163   : > { %v6363_v7 = vrot.slane %v5158_v12, 1  ;;  %v1829_v40 = vmul.f32 %v3928_v57, %v1099_v10  ;;  %v6365_v58 = vrot.slane %v5166_v21, 1  ;;  %v6535_v47 = vrot.slane %v4810_v44, 1 }
 0x164   : > { %v2484_v4 = vadd.f32 %v2386_v13, %v2243_v61  ;;  %v1718_v6 = vrot.slane %v1591_v16, 1  ;;  %v5181_v5 = vmul.f32 %v3932_v17, %v1099_v10  ;;  %v5184_v63 = vmul.f32 %v3942_v34, %v1099_v10 }
 0x165   : > { %v1478_v51 = vsel %vm1398_vm2, %v6362_v26, %v6535_v47  ;;  %v1954_v59 = vrot.slane %v1829_v40, 1  ;;  %v1130_v61 = vmul.f32 %v3940_v53, %v4478_v42  ;;  %v1195_v16 = vmul.f32 %v3946_v45, %v4645_v50 }
 0x166   : > { %v2725_v18 = vadd.f32 %v2627_v11, %v2484_v4  ;;  %v1542_v31 = vadd.f32 %v1478_v51, %v1300_v23  ;;  %v1719_v44 = vsel %vm1398_vm2, %v6363_v7, %v1718_v6  ;;  %v1260_v47 = vmul.f32 %v3964_v39, %v4829_v32  ;;  %v6536_v4 = vld [vmem:[#allocation88_spill] sm:$0xff] }
 0x167   : > { %v5202_v23 = vsel %vm1398_vm2, %v6365_v58, %v1954_v59  ;;  %v6537_v40 = vrot.slane %v6536_v4, 1  ;;  %v6538_v51 = vrot.slane %v5023_v38, 1  ;;  %v1227_v26 = vadd.f32 %v1195_v16, %v1130_v61  ;;  %v6544_v58 = vld [vmem:[#allocation90_spill] sm:$0xff] }
 0x168   : > { %v2761_v10 = vadd.f32 %v5136_v48, %v2725_v18  ;;  %v5197_v11 = vadd.f32 %v1719_v44, %v1542_v31  ;;  %v6539_v7 = vrot.slane %v4907_v54, 1  ;;  %v6540_v13 = vrot.slane %v5038_v22, 1  ;;  %v6541_v31 = vld [vmem:[#allocation78_spill] sm:$0xff] }
 0x169   : > { %v1699_v6 = vsel %vm1398_vm2, %v6538_v51, %v6537_v40  ;;  %v6542_v44 = vrot.slane %v6541_v31, 2  ;;  %v6543_v35 = vrot.slane %v5044_v62, 2  ;;  %v6545_v42 = vrot.slane %v6544_v58, 2 }
 0x16a   : > { %v1940_v18 = vsel %vm1398_vm2, %v6540_v13, %v6539_v7  ;;  %v6546_v4 = vrot.slane %v5058_v8, 2  ;;  %v2793_v40 = vmax.f32 %v2761_v10, 0.0  ;;  %v2663_v61 = vrot.slane %v4924_v20, 2  ;;  %v6553_v10 = vld [vmem:[#allocation81_spill] sm:$0xff] }
 0x16b   : > { %v2182_v59 = vsel %vm2122_vm4, %v6543_v35, %v6542_v44  ;;  %v1116_v54 = vmul.f32 %v3940_v53, %v4491_v25  ;;  %v1181_v22 = vmul.f32 %v3946_v45, %v4656_v29  ;;  %v1292_v7 = vadd.f32 %v1260_v47, %v1227_v26  ;;  %v6547_v35 = vld [vmem:[#allocation91_spill] sm:$0xff]  ;;  %v6556_v44 = vld [vmem:[#allocation93_spill] sm:$0xff] }
 0x16c   : > { %v2423_v38 = vsel %vm2122_vm4, %v6546_v4, %v6545_v42  ;;  %v1246_v62 = vmul.f32 %v3964_v39, %v4831_v19  ;;  %v6548_v13 = vrot.slane %v6547_v35, 1  ;;  %v6549_v58 = vrot.slane %v5096_v28, 1  ;;  %3376 = vmatmul.msk.f32.gmra.mxu1 %vm2829_vm5, %v2793_v40 }
 0x16d   : > { %v6550_v42 = vrot.slane %v4955_v30, 1  ;;  %v6551_v20 = vrot.slane %v5102_v1, 1  ;;  %v6552_v25 = vrot.slane %v5067_v55, 2  ;;  %v1213_v47 = vadd.f32 %v1181_v22, %v1116_v54  ;;  %v6558_v1 = vld [vmem:[#allocation80_spill] sm:$0xff] }
 0x16e   : > { %v1664_v8 = vsel %vm1398_vm2, %v6549_v58, %v6548_v13  ;;  %v6554_v51 = vrot.slane %v6553_v10, 2  ;;  %v6555_v31 = vrot.slane %v5116_v33, 2  ;;  %v6557_v4 = vrot.slane %v6556_v44, 2  ;;  %v6560_v44 = vld [vmem:[#allocation31_spill] sm:$0xff] }
 0x16f   : > { %v1905_v16 = vsel %vm1398_vm2, %v6551_v20, %v6550_v42  ;;  %v2664_v26 = vsel %vm2122_vm4, %v6552_v25, %v2663_v61  ;;  %v1534_v35 = vadd.f32 %v6558_v1, %v1292_v7  ;;  %v2628_v13 = vrot.slane %v4965_v49, 2  ;;  %v6559_v42 = vld [vmem:[#allocation82_spill] sm:$0xff] }
 0x170   : > { %v2147_v28 = vsel %vm2122_vm4, %v6555_v31, %v6554_v51  ;;  %v2388_v30 = vsel %vm2122_vm4, %v2385_v46, %v6557_v4  ;;  %v1117_v55 = vmul.f32 %v3940_v53, %v6528_v14  ;;  %v1182_v40 = vmul.f32 %v3946_v45, %v6530_v9  ;;  %v6561_v4 = vld [vmem:[#allocation87_spill] sm:$0xff] }
 0x171   : > { %v1278_v61 = vadd.f32 %v1246_v62, %v1213_v47  ;;  %v1247_v33 = vmul.f32 %v3964_v39, %v5027_v15  ;;  %v1317_v54 = vmul.f32 %v3913_v43, %v6528_v14  ;;  %v1559_v46 = vmul.f32 %v3926_v56, %v6530_v9 }
 0x172   : > { %v1775_v22 = vadd.f32 %v1699_v6, %v1534_v35  ;;  %v2629_v7 = vsel %vm2122_vm4, %v2626_v52, %v2628_v13  ;;  %v1214_v49 = vadd.f32 %v1182_v40, %v1117_v55  ;;  %v5268_v58 = vmul.f32 %v3926_v56, %v4831_v19 }
 0x173   : > { %v1520_v20 = vadd.f32 %v6559_v42, %v1278_v61  ;;  %v1424_v62 = vrot.slane %v1317_v54, 1  ;;  %v1665_v25 = vrot.slane %v1559_v46, 1  ;;  %v1800_v47 = vmul.f32 %v3928_v57, %v5027_v15 }
 0x174   : > { %v2016_v10 = vadd.f32 %v1940_v18, %v1775_v22  ;;  %v1279_v51 = vadd.f32 %v1247_v33, %v1214_v49  ;;  %v1666_v31 = vrot.slane %v5268_v58, 1  ;;  %v5276_v6 = vmul.f32 %v3928_v57, %v6560_v44 }
 0x175   : > { %v1761_v52 = vadd.f32 %v1664_v8, %v1520_v20  ;;  %v6562_v1 = vrot.slane %v6561_v4, 1  ;;  %v1906_v13 = vrot.slane %v1800_v47, 1  ;;  %v2041_v55 = vmul.f32 %v3930_v2, %v6528_v14 }
 0x176   : > { %v2258_v40 = vadd.f32 %v2182_v59, %v2016_v10  ;;  %v1667_v18 = vsel %vm1398_vm2, %v1665_v25, %v1666_v31  ;;  %v1907_v33 = vrot.slane %v5276_v6, 1  ;;  %v5289_v8 = vmul.f32 %v3930_v2, %v4656_v29 }
 0x177   : > { %v1426_v35 = vsel %vm1398_vm2, %v1424_v62, %v6562_v1  ;;  %v2002_v54 = vadd.f32 %v1905_v16, %v1761_v52  ;;  %v2148_v46 = vrot.slane %v2041_v55, 2  ;;  %v2283_v22 = vmul.f32 %v3932_v17, %v6530_v9 }
 0x178   : > { %v1521_v61 = vadd.f32 %v1426_v35, %v1279_v51  ;;  %v2499_v49 = vadd.f32 %v2423_v38, %v2258_v40  ;;  %v1908_v14 = vsel %vm1398_vm2, %v1906_v13, %v1907_v33  ;;  %v5298_v59 = vmul.f32 %v3932_v17, %v4831_v19 }
 0x179   : > { %v2244_v20 = vadd.f32 %v2147_v28, %v2002_v54  ;;  %v2149_v16 = vrot.slane %v5289_v8, 2  ;;  %v2389_v62 = vrot.slane %v2283_v22, 2  ;;  %v2524_v25 = vmul.f32 %v3942_v34, %v5027_v15 }
 0x17a   : > { %v1762_v42 = vadd.f32 %v1667_v18, %v1521_v61  ;;  %v2740_v47 = vadd.f32 %v2664_v26, %v2499_v49  ;;  %v6369_v38 = vrot.slane %v5298_v59, 2  ;;  %v5306_v51 = vmul.f32 %v3942_v34, %v6560_v44 }
 0x17b   : > { %v2485_v52 = vadd.f32 %v2388_v30, %v2244_v20  ;;  %v2150_v4 = vsel %vm2122_vm4, %v2148_v46, %v2149_v16  ;;  %v2630_v28 = vrot.slane %v2524_v25, 2  ;;  %v1131_v1 = vmul.f32 %v3940_v53, %v4622_v3 }
 0x17c   : > { %v2003_v10 = vadd.f32 %v1908_v14, %v1762_v42  ;;  %v2776_v35 = vadd.f32 %v5136_v48, %v2740_v47  ;;  %v2391_v26 = vsel %vm2122_vm4, %v2389_v62, %v6369_v38  ;;  %v6368_v55 = vrot.slane %v5306_v51, 2 }
 0x17d   : > { %v2726_v40 = vadd.f32 %v2629_v7, %v2485_v52  ;;  %v1196_v30 = vmul.f32 %v3946_v45, %v4785_v36  ;;  %v1261_v61 = vmul.f32 %v3964_v39, %v5015_v0  ;;  %v1338_v18 = vmul.f32 %v3913_v43, %v4622_v3 }
 0x17e   : > { %v2245_v13 = vadd.f32 %v2150_v4, %v2003_v10  ;;  %v2808_v54 = vmax.f32 %v2776_v35, 0.0  ;;  %v2632_v22 = vsel %vm2122_vm4, %v2630_v28, %v6368_v55  ;;  %v1580_v49 = vmul.f32 %v3926_v56, %v4785_v36  ;;  %v6563_v28 = vld [vmem:[#allocation85_spill] sm:$0xff]  ;;  %v6568_v55 = vld [vmem:[#allocation92_spill] sm:$0xff] }
 0x17f   : > { %v2762_v7 = vadd.f32 %v5136_v48, %v2726_v40  ;;  %v1228_v42 = vadd.f32 %v1196_v30, %v1131_v1  ;;  %v1459_v14 = vrot.slane %v1338_v18, 1  ;;  %v5332_v20 = vmul.f32 %v3926_v56, %v4829_v32 }
 0x180   : > { %v2486_v46 = vadd.f32 %v2391_v26, %v2245_v13  ;;  %3391 = vmatmul.msk.f32.gmra.mxu3 %vm2829_vm5, %v2808_v54  ;;  %v1700_v25 = vrot.slane %v1580_v49, 1  ;;  %v1821_v47 = vmul.f32 %v3928_v57, %v5015_v0  ;;  %v1822_v10 = vmul.f32 %v3928_v57, %v5088_v24  ;;  %v687_v54 = vpop.f32.mrf.mxu3 }
 0x181   : > { %v2794_v52 = vmax.f32 %v2762_v7, 0.0  ;;  %v1293_v4 = vadd.f32 %v1261_v61, %v1228_v42  ;;  %v6564_v35 = vrot.slane %v6563_v28, 1  ;;  %v1701_v13 = vrot.slane %v5332_v20, 1 }
 0x182   : > { %v2727_v62 = vadd.f32 %v2632_v22, %v2486_v46  ;;  %v1941_v40 = vrot.slane %v1821_v47, 1  ;;  %v1942_v30 = vrot.slane %v1822_v10, 1  ;;  %v2062_v18 = vmul.f32 %v3930_v2, %v4622_v3 }
 0x183   : > { %v1461_v1 = vsel %vm1398_vm2, %v1459_v14, %v6564_v35  ;;  %3377 = vmatmul.msk.f32.gmra.mxu1 %vm2829_vm5, %v2794_v52  ;;  %v1702_v61 = vsel %vm1398_vm2, %v1700_v25, %v1701_v13  ;;  %v2063_v22 = vmul.f32 %v3930_v2, %v4645_v50  ;;  %v2304_v49 = vmul.f32 %v3932_v17, %v4785_v36 }
 0x184   : > { %v2763_v26 = vadd.f32 %v5136_v48, %v2727_v62  ;;  %v1535_v46 = vadd.f32 %v1461_v1, %v1293_v4  ;;  %v1943_v42 = vsel %vm1398_vm2, %v1941_v40, %v1942_v30  ;;  %v2183_v14 = vrot.slane %v2062_v18, 2  ;;  %v5367_v1 = vld [vmem:[%s6230_s6] ss:$0 sm:$0xff] }
 0x185   : > { %v2305_v20 = vmul.f32 %v3932_v17, %v4829_v32  ;;  %v2184_v47 = vrot.slane %v2063_v22, 2  ;;  %v2424_v10 = vrot.slane %v2304_v49, 2  ;;  %v2545_v52 = vmul.f32 %v3942_v34, %v5015_v0 }
 0x186   : > { %v2795_v7 = vmax.f32 %v2763_v26, 0.0  ;;  %v1776_v62 = vadd.f32 %v1702_v61, %v1535_v46  ;;  %v2546_v4 = vmul.f32 %v3942_v34, %v5088_v24  ;;  %v1118_v28 = vmul.f32 %v3940_v53, %v4656_v29  ;;  %v2943_v46 = vpop.f32.mrf.mxu1 }
 0x187   : > { %v2425_v25 = vrot.slane %v2305_v20, 2  ;;  %v1183_v35 = vmul.f32 %v3946_v45, %v4831_v19  ;;  %v2185_v40 = vsel %vm2122_vm4, %v2183_v14, %v2184_v47  ;;  %v2665_v18 = vrot.slane %v2545_v52, 2 }
 0x188   : > { %v2017_v26 = vadd.f32 %v1943_v42, %v1776_v62  ;;  %v1248_v54 = vmul.f32 %v3964_v39, %v6560_v44  ;;  %v2666_v22 = vrot.slane %v2546_v4, 2  ;;  %v6565_v49 = vrot.slane %v4952_v41, 1  ;;  %v6566_v62 = vld [vmem:[#allocation34_spill] sm:$0xff]  ;;  %v6570_v41 = vld [vmem:[#allocation113_spill] sm:$0xff] }
 0x189   : > { %v2426_v61 = vsel %vm2122_vm4, %v2424_v10, %v2425_v25  ;;  %v1215_v29 = vadd.f32 %v1183_v35, %v1118_v28  ;;  %v6567_v14 = vrot.slane %v6566_v62, 1  ;;  %v6569_v38 = vrot.slane %v6568_v55, 2  ;;  %v6574_v55 = vld [vmem:[#allocation7_spill] sm:$0xff] }
 0x18a   : > { %v1669_v20 = vsel %vm1398_vm2, %v1666_v31, %v6565_v49  ;;  %v2259_v42 = vadd.f32 %v2185_v40, %v2017_v26  ;;  %v6571_v4 = vrot.slane %v6570_v41, 2  ;;  %v6572_v58 = vrot.slane %v5298_v59, 2  ;;  %v6573_v26 = vld [vmem:[#allocation39_spill] sm:$0xff]  ;;  %v6576_v49 = vld [vmem:[#allocation6_spill] sm:$0xff] }
 0x18b   : > { %v1910_v52 = vsel %vm1398_vm2, %v1907_v33, %v6567_v14  ;;  %v2152_v10 = vsel %vm2122_vm4, %v2149_v16, %v6569_v38  ;;  %v2667_v28 = vsel %vm2122_vm4, %v2665_v18, %v2666_v22  ;;  %v1280_v35 = vadd.f32 %v1248_v54, %v1215_v29  ;;  %3378 = vmatmul.msk.f32.gmra.mxu1 %vm2829_vm5, %v2795_v7  ;;  %v6578_v54 = vld [vmem:[#allocation95_spill] sm:$0xff] }
 0x18c   : > { %v2393_v31 = vsel %vm2122_vm4, %v6572_v58, %v6571_v4  ;;  %v2633_v40 = vrot.slane %v6573_v26, 2  ;;  %v2944_v6 = vadd.f32 %v5367_v1, %v2943_v46  ;;  %v2500_v33 = vadd.f32 %v2426_v61, %v2259_v42  ;;  %v6580_v41 = vld [vmem:[#allocation107_spill] sm:$0xff] }
 0x18d   : > { %v6575_v8 = vrot.slane %v6574_v55, 1  ;;  %v6577_v16 = vrot.slane %v6576_v49, 1  ;;  %v1132_v59 = vmul.f32 %v3940_v53, %v4645_v50  ;;  %v1197_v18 = vmul.f32 %v3946_v45, %v4829_v32  ;;  %v6582_v50 = vld [vmem:[#allocation72_spill] sm:$0xff] }
 0x18e   : > { %v1522_v29 = vadd.f32 %v6578_v54, %v1280_v35  ;;  %v6579_v62 = vrot.slane %v5306_v51, 2  ;;  %v1262_v61 = vmul.f32 %v3964_v39, %v5088_v24  ;;  %v2741_v42 = vadd.f32 %v2667_v28, %v2500_v33  ;;  %v6584_v51 = vld [vmem:[#allocation89_spill] sm:$0xff] }
 0x18f   : > { %v3041_v38 = vsel %vm1398_vm2, %v6577_v16, %v6575_v8  ;;  %v1229_v14 = vadd.f32 %v1197_v18, %v1132_v59  ;;  %v6581_v4 = vrot.slane %v6580_v41, 1  ;;  %v6583_v26 = vrot.slane %v6582_v50, 1  ;;  %v6586_v28 = vld [vmem:[#allocation109_spill] sm:$0xff]  ;;  %v6588_v16 = vld [vmem:[#allocation76_spill] sm:$0xff]  ;;  %v690_v50 = vpop.f32.mrf.mxu3 }
 0x190   : > { %v2634_v46 = vsel %vm2122_vm4, %v6579_v62, %v2633_v40  ;;  %v3151_v7 = vadd.f32 %v3041_v38, %v2944_v6  ;;  %v1763_v49 = vadd.f32 %v1669_v20, %v1522_v29  ;;  %v6585_v35 = vrot.slane %v6584_v51, 2  ;;  %v6589_v29 = vld [vmem:[#allocation43_spill] sm:$0xff] }
 0x191   : > { %v1704_v58 = vsel %vm1398_vm2, %v1701_v13, %v6581_v4  ;;  %v1945_v8 = vsel %vm1398_vm2, %v1942_v30, %v6583_v26  ;;  %v6587_v6 = vrot.slane %v6586_v28, 2  ;;  %v2668_v13 = vrot.slane %v6588_v16, 2 }
 0x192   : > { %3183 = vst.msk [vmem:[%s5420_s8] sm:$0xff] %vm354_vm0, %v3151_v7  ;;  %v2187_v40 = vsel %vm2122_vm4, %v2184_v47, %v6585_v35  ;;  %v2777_v38 = vadd.f32 %v5136_v48, %v2741_v42  ;;  %v1294_v59 = vadd.f32 %v1262_v61, %v1229_v14  ;;  %v1119_v30 = vmul.f32 %v3940_v53, %v6530_v9  ;;  %v6590_v7 = vld [vmem:[#allocation94_spill] sm:$0xff]  ;;  %v6591_v35 = vld [vmem:[#allocation41_spill] sm:$0xff] }
 0x193   : > { %v2428_v33 = vsel %vm2122_vm4, %v2425_v25, %v6587_v6  ;;  %v1184_v20 = vmul.f32 %v3946_v45, %v5027_v15  ;;  %v2004_v18 = vadd.f32 %v1910_v52, %v1763_v49  ;;  %v2669_v54 = vsel %vm2122_vm4, %v2666_v22, %v2668_v13 }
 0x194   : > { %v1249_v47 = vmul.f32 %v3964_v39, %v6589_v29  ;;  %v1320_v25 = vmul.f32 %v3913_v43, %v6530_v9  ;;  %v2809_v62 = vmax.f32 %v2777_v38, 0.0  ;;  %v1536_v41 = vadd.f32 %v6590_v7, %v1294_v59 }
 0x195   : > { %v1216_v42 = vadd.f32 %v1184_v20, %v1119_v30  ;;  %v1562_v61 = vmul.f32 %v3926_v56, %v5027_v15  ;;  %v2246_v14 = vadd.f32 %v2152_v10, %v2004_v18  ;;  %v5446_v52 = vmul.f32 %v3926_v56, %v6560_v44  ;;  %v6592_v10 = vld [vmem:[#allocation110_spill] sm:$0xff] }
 0x196   : > { %v1429_v4 = vrot.slane %v1320_v25, 1  ;;  %v1803_v22 = vmul.f32 %v3928_v57, %v6589_v29  ;;  %3392 = vmatmul.msk.f32.gmra.mxu3 %vm2829_vm5, %v2809_v62  ;;  %v1777_v26 = vadd.f32 %v1704_v58, %v1536_v41  ;;  %v5453_v28 = vmul.f32 %v3928_v57, %v6591_v35 }
 0x197   : > { %v1281_v49 = vadd.f32 %v1249_v47, %v1216_v42  ;;  %v1670_v51 = vrot.slane %v1562_v61, 1  ;;  %v2487_v6 = vadd.f32 %v2393_v31, %v2246_v14  ;;  %v6593_v16 = vrot.slane %v6592_v10, 1 }
 0x198   : > { %v1671_v38 = vrot.slane %v5446_v52, 1  ;;  %v1911_v59 = vrot.slane %v1803_v22, 1  ;;  %v2018_v30 = vadd.f32 %v1945_v8, %v1777_v26  ;;  %v1912_v18 = vrot.slane %v5453_v28, 1 }
 0x199   : > { %v1431_v13 = vsel %vm1398_vm2, %v1429_v4, %v6593_v16  ;;  %v2044_v58 = vmul.f32 %v3930_v2, %v6530_v9  ;;  %v2728_v47 = vadd.f32 %v2634_v46, %v2487_v6  ;;  %v5467_v31 = vmul.f32 %v3930_v2, %v4831_v19  ;;  %v2946_v9 = vpop.f32.mrf.mxu1  ;;  %v693_v16 = vpop.f32.mrf.mxu3 }
 0x19a   : > { %v1523_v20 = vadd.f32 %v1431_v13, %v1281_v49  ;;  %v1672_v25 = vsel %vm1398_vm2, %v1670_v51, %v1671_v38  ;;  %v2286_v62 = vmul.f32 %v3932_v17, %v5027_v15  ;;  %v2260_v7 = vadd.f32 %v2187_v40, %v2018_v30 }
 0x19b   : > { %v1913_v41 = vsel %vm1398_vm2, %v1911_v59, %v1912_v18  ;;  %v2153_v42 = vrot.slane %v2044_v58, 2  ;;  %v2764_v46 = vadd.f32 %v5136_v48, %v2728_v47  ;;  %v2154_v61 = vrot.slane %v5467_v31, 2  ;;  %v6594_v58 = vld [vmem:[#allocation8_spill] sm:$0xff] }
 0x19c   : > { %v1764_v8 = vadd.f32 %v1672_v25, %v1523_v20  ;;  %v5478_v14 = vmul.f32 %v3932_v17, %v6560_v44  ;;  %v2394_v4 = vrot.slane %v2286_v62, 2  ;;  %v2501_v22 = vadd.f32 %v2428_v33, %v2260_v7 }
 0x19d   : > { %v2527_v40 = vmul.f32 %v3942_v34, %v6589_v29  ;;  %v5484_v26 = vmul.f32 %v3942_v34, %v6591_v35  ;;  %v2796_v49 = vmax.f32 %v2764_v46, 0.0  ;;  %v2155_v51 = vsel %vm2122_vm4, %v2153_v42, %v2154_v61 }
 0x19e   : > { %v2005_v50 = vadd.f32 %v1913_v41, %v1764_v8  ;;  %v2395_v6 = vrot.slane %v5478_v14, 2  ;;  %v2947_v10 = vadd.f32 %v5367_v1, %v2946_v9  ;;  %v2742_v13 = vadd.f32 %v2669_v54, %v2501_v22  ;;  %v6610_v14 = vld [vmem:[#allocation70_spill] sm:$0xff] }
 0x19f   : > { %v2635_v59 = vrot.slane %v2527_v40, 2  ;;  %v6370_v30 = vrot.slane %v5484_v26, 2  ;;  %3379 = vmatmul.msk.f32.gmra.mxu1 %vm2829_vm5, %v2796_v49  ;;  %v6595_v47 = vrot.slane %v6594_v58, 1  ;;  %v6596_v25 = vrot.slane %v6574_v55, 1 }
 0x1a0   : > { %v2247_v33 = vadd.f32 %v2155_v51, %v2005_v50  ;;  %v2396_v20 = vsel %vm2122_vm4, %v2394_v4, %v2395_v6  ;;  %v1133_v54 = vmul.f32 %v3940_v53, %v4785_v36  ;;  %v1198_v7 = vmul.f32 %v3946_v45, %v5015_v0  ;;  %v6597_v4 = vld [vmem:[#allocation86_spill] sm:$0xff] }
 0x1a1   : > { %v3043_v62 = vsel %vm1398_vm2, %v6596_v25, %v6595_v47  ;;  %v2778_v8 = vadd.f32 %v5136_v48, %v2742_v13  ;;  %v2637_v42 = vsel %vm2122_vm4, %v2635_v59, %v6370_v30  ;;  %v1263_v55 = vmul.f32 %v3964_v39, %v6597_v4 }
 0x1a2   : > { %v2488_v41 = vadd.f32 %v2396_v20, %v2247_v33  ;;  %v3152_v9 = vadd.f32 %v3043_v62, %v2947_v10  ;;  %v1230_v46 = vadd.f32 %v1198_v7, %v1133_v54  ;;  %v1341_v22 = vmul.f32 %v3913_v43, %v4785_v36  ;;  %v6598_v62 = vld [vmem:[#allocation106_spill] sm:$0xff] }
 0x1a3   : > { %v1583_v50 = vmul.f32 %v3926_v56, %v5015_v0  ;;  %v2810_v40 = vmax.f32 %v2778_v8, 0.0  ;;  %v1584_v51 = vmul.f32 %v3926_v56, %v5088_v24  ;;  %v1824_v10 = vmul.f32 %v3928_v57, %v6597_v4 }
 0x1a4   : > { %v2729_v49 = vadd.f32 %v2637_v42, %v2488_v41  ;;  %3184 = vst.msk [vmem:[%s5420_s8 + $0x8] sm:$0xff] %vm354_vm0, %v3152_v9  ;;  %v1295_v16 = vadd.f32 %v1263_v55, %v1230_v46  ;;  %v1464_v13 = vrot.slane %v1341_v22, 1  ;;  %v1825_v59 = vmul.f32 %v3928_v57, %v6534_v60 }
 0x1a5   : > { %v1705_v33 = vrot.slane %v1583_v50, 1  ;;  %3393 = vmatmul.msk.f32.gmra.mxu3 %vm2829_vm5, %v2810_v40  ;;  %v1706_v58 = vrot.slane %v1584_v51, 1  ;;  %v1946_v47 = vrot.slane %v1824_v10, 1  ;;  %v2065_v25 = vmul.f32 %v3930_v2, %v4785_v36 }
 0x1a6   : > { %v2765_v20 = vadd.f32 %v5136_v48, %v2729_v49  ;;  %v6599_v54 = vrot.slane %v6598_v62, 1  ;;  %v1947_v8 = vrot.slane %v1825_v59, 1  ;;  %v2066_v41 = vmul.f32 %v3930_v2, %v4829_v32 }
 0x1a7   : > { %v2307_v42 = vmul.f32 %v3932_v17, %v5015_v0  ;;  %v1707_v55 = vsel %vm1398_vm2, %v1705_v33, %v1706_v58  ;;  %v2188_v22 = vrot.slane %v2065_v25, 2  ;;  %v2308_v36 = vmul.f32 %v3932_v17, %v5088_v24 }
 0x1a8   : > { %v1466_v7 = vsel %vm1398_vm2, %v1464_v13, %v6599_v54  ;;  %v2797_v9 = vmax.f32 %v2765_v20, 0.0  ;;  %v1948_v50 = vsel %vm1398_vm2, %v1946_v47, %v1947_v8  ;;  %v2189_v40 = vrot.slane %v2066_v41, 2 }
 0x1a9   : > { %v1537_v46 = vadd.f32 %v1466_v7, %v1295_v16  ;;  %v2429_v49 = vrot.slane %v2307_v42, 2  ;;  %v2548_v10 = vmul.f32 %v3942_v34, %v6597_v4  ;;  %v2549_v13 = vmul.f32 %v3942_v34, %v6534_v60  ;;  %v6600_v7 = vld [vmem:[#allocation33_spill] sm:$0xff] }
 0x1aa   : > { %3380 = vmatmul.msk.f32.gmra.mxu1 %vm2829_vm5, %v2797_v9  ;;  %v1120_v16 = vmul.f32 %v3940_v53, %v4831_v19  ;;  %v2190_v33 = vsel %vm2122_vm4, %v2188_v22, %v2189_v40  ;;  %v2430_v59 = vrot.slane %v2308_v36, 2  ;;  %v1185_v20 = vmul.f32 %v3946_v45, %v6560_v44  ;;  %v6604_v36 = vld [vmem:[#allocation112_spill] sm:$0xff] }
 0x1ab   : > { %v1778_v51 = vadd.f32 %v1707_v55, %v1537_v46  ;;  %v1250_v47 = vmul.f32 %v3964_v39, %v6591_v35  ;;  %v2670_v62 = vrot.slane %v2548_v10, 2  ;;  %v2671_v54 = vrot.slane %v2549_v13, 2  ;;  %v6602_v46 = vld [vmem:[#allocation45_spill] sm:$0xff]  ;;  %v6608_v13 = vld [vmem:[#allocation48_spill] sm:$0xff] }
 0x1ac   : > { %v6601_v41 = vrot.slane %v6600_v7, 1  ;;  %v2431_v19 = vsel %vm2122_vm4, %v2429_v49, %v2430_v59  ;;  %v1217_v9 = vadd.f32 %v1185_v20, %v1120_v16  ;;  %v6603_v55 = vrot.slane %v6602_v46, 1  ;;  %v6606_v10 = vld [vmem:[#allocation37_spill] sm:$0xff]  ;;  %v6615_v46 = vld [vmem:[#allocation108_spill] sm:$0xff] }
 0x1ad   : > { %v2019_v25 = vadd.f32 %v1948_v50, %v1778_v51  ;;  %v6605_v30 = vrot.slane %v6604_v36, 2  ;;  %v2672_v52 = vsel %vm2122_vm4, %v2670_v62, %v2671_v54  ;;  %v2638_v16 = vrot.slane %v6608_v13, 2  ;;  %v6612_v62 = vld [vmem:[#allocation101_spill] sm:$0xff] }
 0x1ae   : > { %v1674_v42 = vsel %vm1398_vm2, %v1671_v38, %v6601_v41  ;;  %v1915_v22 = vsel %vm1398_vm2, %v1912_v18, %v6603_v55  ;;  %v6607_v38 = vrot.slane %v6606_v10, 2  ;;  %v1282_v28 = vadd.f32 %v1250_v47, %v1217_v9 }
 0x1af   : > { %v2157_v50 = vsel %vm2122_vm4, %v2154_v61, %v6605_v30  ;;  %v2261_v51 = vadd.f32 %v2190_v33, %v2019_v25  ;;  %v1134_v18 = vmul.f32 %v3940_v53, %v4829_v32  ;;  %v1199_v31 = vmul.f32 %v3946_v45, %v5088_v24  ;;  %v6614_v32 = vld [vmem:[#allocation114_spill] sm:$0xff] }
 0x1b0   : > { %v2398_v49 = vsel %vm2122_vm4, %v2395_v6, %v6607_v38  ;;  %v1264_v61 = vmul.f32 %v3964_v39, %v6534_v60  ;;  %v6609_v33 = vrot.slane %v5484_v26, 2  ;;  %v6611_v25 = vrot.slane %v6610_v14, 1  ;;  %v6619_v38 = vld [vmem:[#allocation104_spill] sm:$0xff] }
 0x1b1   : > { %v2502_v30 = vadd.f32 %v2431_v19, %v2261_v51  ;;  %v6613_v47 = vrot.slane %v6612_v62, 1  ;;  %v1524_v41 = vadd.f32 %v6614_v32, %v1282_v28  ;;  %v1231_v9 = vadd.f32 %v1199_v31, %v1134_v18  ;;  %v6617_v19 = vld [vmem:[#allocation75_spill] sm:$0xff]  ;;  %v6620_v18 = vld [vmem:[#allocation50_spill] sm:$0xff] }
 0x1b2   : > { %v2639_v20 = vsel %vm2122_vm4, %v6609_v33, %v2638_v16  ;;  %v1709_v6 = vsel %vm1398_vm2, %v1706_v58, %v6611_v25  ;;  %v6616_v55 = vrot.slane %v6615_v46, 2  ;;  %v6618_v51 = vrot.slane %v6617_v19, 2  ;;  %v6621_v25 = vld [vmem:[#allocation111_spill] sm:$0xff] }
 0x1b3   : > { %v1950_v7 = vsel %vm1398_vm2, %v1947_v8, %v6613_v47  ;;  %v2743_v10 = vadd.f32 %v2672_v52, %v2502_v30  ;;  %v2673_v13 = vrot.slane %v6619_v38, 2  ;;  %v1121_v58 = vmul.f32 %v3940_v53, %v5027_v15  ;;  %v6624_v38 = vld [vmem:[#allocation51_spill] sm:$0xff] }
 0x1b4   : > { %v2192_v36 = vsel %vm2122_vm4, %v2189_v40, %v6616_v55  ;;  %v2433_v26 = vsel %vm2122_vm4, %v2430_v59, %v6618_v51  ;;  %v1186_v8 = vmul.f32 %v3946_v45, %v6589_v29  ;;  %v1765_v16 = vadd.f32 %v1674_v42, %v1524_v41  ;;  %v6622_v55 = vld [vmem:[#allocation32_spill] sm:$0xff] }
 0x1b5   : > { %v1296_v28 = vadd.f32 %v1264_v61, %v1231_v9  ;;  %v1251_v31 = vmul.f32 %v3964_v39, %v6620_v18  ;;  %v1323_v40 = vmul.f32 %v3913_v43, %v5027_v15  ;;  %v2779_v33 = vadd.f32 %v5136_v48, %v2743_v10 }
 0x1b6   : > { %v2674_v59 = vsel %vm2122_vm4, %v2671_v54, %v2673_v13  ;;  %v1218_v52 = vadd.f32 %v1186_v8, %v1121_v58  ;;  %v1565_v30 = vmul.f32 %v3926_v56, %v6589_v29  ;;  %v2006_v14 = vadd.f32 %v1915_v22, %v1765_v16 }
 0x1b7   : > { %v1538_v62 = vadd.f32 %v6621_v25, %v1296_v28  ;;  %v1434_v47 = vrot.slane %v1323_v40, 1  ;;  %v5611_v42 = vmul.f32 %v3926_v56, %v6591_v35  ;;  %v2811_v61 = vmax.f32 %v2779_v33, 0.0 }
 0x1b8   : > { %v1283_v32 = vadd.f32 %v1251_v31, %v1218_v52  ;;  %v1675_v41 = vrot.slane %v1565_v30, 1  ;;  %v1806_v9 = vmul.f32 %v3928_v57, %v6620_v18  ;;  %v2248_v46 = vadd.f32 %v2157_v50, %v2006_v14 }
 0x1b9   : > { %v1779_v54 = vadd.f32 %v1709_v6, %v1538_v62  ;;  %v6623_v19 = vrot.slane %v6622_v55, 1  ;;  %v1676_v22 = vrot.slane %v5611_v42, 1  ;;  %3394 = vmatmul.msk.f32.gmra.mxu3 %vm2829_vm5, %v2811_v61  ;;  %v5622_v13 = vmul.f32 %v3928_v57, %v6624_v38 }
 0x1ba   : > { %v1916_v58 = vrot.slane %v1806_v9, 1  ;;  %v2047_v8 = vmul.f32 %v3930_v2, %v5027_v15  ;;  %v2489_v16 = vadd.f32 %v2398_v49, %v2248_v46  ;;  %v5631_v28 = vmul.f32 %v3930_v2, %v6560_v44 }
 0x1bb   : > { %v1436_v51 = vsel %vm1398_vm2, %v1434_v47, %v6623_v19  ;;  %v2020_v50 = vadd.f32 %v1950_v7, %v1779_v54  ;;  %v1677_v6 = vsel %vm1398_vm2, %v1675_v41, %v1676_v22  ;;  %v1917_v40 = vrot.slane %v5622_v13, 1  ;;  %v2949_v7 = vpop.f32.mrf.mxu1 }
 0x1bc   : > { %v1525_v10 = vadd.f32 %v1436_v51, %v1283_v32  ;;  %v2158_v33 = vrot.slane %v2047_v8, 2  ;;  %v2289_v52 = vmul.f32 %v3932_v17, %v6589_v29  ;;  %v2730_v30 = vadd.f32 %v2639_v20, %v2489_v16  ;;  %v6627_v16 = vld [vmem:[#allocation9_spill] sm:$0xff] }
 0x1bd   : > { %v2262_v14 = vadd.f32 %v2192_v36, %v2020_v50  ;;  %v2159_v15 = vrot.slane %v5631_v28, 2  ;;  %v5639_v49 = vmul.f32 %v3932_v17, %v6591_v35  ;;  %v1918_v25 = vsel %vm1398_vm2, %v1916_v58, %v1917_v40  ;;  %v6625_v58 = vld [vmem:[#allocation10_spill] sm:$0xff] }
 0x1be   : > { %v1766_v31 = vadd.f32 %v1677_v6, %v1525_v10  ;;  %v2399_v62 = vrot.slane %v2289_v52, 2  ;;  %v2530_v47 = vmul.f32 %v3942_v34, %v6620_v18  ;;  %v5648_v61 = vmul.f32 %v3942_v34, %v6624_v38 }
 0x1bf   : > { %v2766_v20 = vadd.f32 %v5136_v48, %v2730_v30  ;;  %v2503_v36 = vadd.f32 %v2433_v26, %v2262_v14  ;;  %v2160_v41 = vsel %vm2122_vm4, %v2158_v33, %v2159_v15  ;;  %v2400_v9 = vrot.slane %v5639_v49, 2 }
 0x1c0   : > { %v2007_v32 = vadd.f32 %v1918_v25, %v1766_v31  ;;  %v2640_v46 = vrot.slane %v2530_v47, 2  ;;  %v2641_v54 = vrot.slane %v5648_v61, 2  ;;  %v2950_v55 = vadd.f32 %v5367_v1, %v2949_v7  ;;  %v6653_v61 = vld [vmem:[#allocation103_spill] sm:$0xff] }
 0x1c1   : > { %v2798_v19 = vmax.f32 %v2766_v20, 0.0  ;;  %v2744_v51 = vadd.f32 %v2674_v59, %v2503_v36  ;;  %v6626_v8 = vrot.slane %v6625_v58, 1  ;;  %v6628_v26 = vrot.slane %v6627_v16, 1  ;;  %v6630_v20 = vld [vmem:[#allocation117_spill] sm:$0xff] }
 0x1c2   : > { %v2249_v10 = vadd.f32 %v2160_v41, %v2007_v32  ;;  %v2401_v6 = vsel %vm2122_vm4, %v2399_v62, %v2400_v9  ;;  %v2642_v31 = vsel %vm2122_vm4, %v2640_v46, %v2641_v54  ;;  %v1135_v52 = vmul.f32 %v3940_v53, %v5015_v0 }
 0x1c3   : > { %v3046_v50 = vsel %vm1398_vm2, %v6628_v26, %v6626_v8  ;;  %3381 = vmatmul.msk.f32.gmra.mxu1 %vm2829_vm5, %v2798_v19  ;;  %v2780_v59 = vadd.f32 %v5136_v48, %v2744_v51  ;;  %v1200_v14 = vmul.f32 %v3946_v45, %v6597_v4  ;;  %v1344_v49 = vmul.f32 %v3913_v43, %v5015_v0 }
 0x1c4   : > { %v3153_v33 = vadd.f32 %v3046_v50, %v2950_v55  ;;  %v2490_v30 = vadd.f32 %v2401_v6, %v2249_v10  ;;  %v1345_v7 = vmul.f32 %v3913_v43, %v5088_v24  ;;  %v1586_v25 = vmul.f32 %v3926_v56, %v6597_v4  ;;  %v6632_v50 = vld [vmem:[#allocation115_spill] sm:$0xff] }
 0x1c5   : > { %v1587_v62 = vmul.f32 %v3926_v56, %v6534_v60  ;;  %v6629_v47 = vrot.slane %v5166_v21, 1  ;;  %v6631_v36 = vrot.slane %v6630_v20, 1  ;;  %v2812_v41 = vmax.f32 %v2780_v59, 0.0 }
 0x1c6   : > { %3185 = vst.msk [vmem:[%s5420_s8 + $0x10] sm:$0xff] %vm354_vm0, %v3153_v33  ;;  %v2731_v46 = vadd.f32 %v2642_v31, %v2490_v30  ;;  %v1232_v55 = vadd.f32 %v1200_v14, %v1135_v52  ;;  %v1469_v19 = vrot.slane %v1344_v49, 1  ;;  %v1470_v51 = vrot.slane %v1345_v7, 1 }
 0x1c7   : > { %v1953_v32 = vsel %vm1398_vm2, %v6631_v36, %v6629_v47  ;;  %v1710_v10 = vrot.slane %v1586_v25, 1  ;;  %v1711_v8 = vrot.slane %v1587_v62, 1  ;;  %v2068_v16 = vmul.f32 %v3930_v2, %v5015_v0  ;;  %3395 = vmatmul.msk.f32.gmra.mxu3 %vm2829_vm5, %v2812_v41  ;;  %v6633_v47 = vld [vmem:[#allocation119_spill] sm:$0xff] }
 0x1c8   : > { %v2767_v26 = vadd.f32 %v5136_v48, %v2731_v46  ;;  %v1297_v21 = vadd.f32 %v6632_v50, %v1232_v55  ;;  %v2069_v6 = vmul.f32 %v3930_v2, %v5088_v24  ;;  %v2310_v31 = vmul.f32 %v3932_v17, %v6597_v4  ;;  %v6634_v50 = vld [vmem:[#allocation44_spill] sm:$0xff] }
 0x1c9   : > { %v1471_v33 = vsel %vm1398_vm2, %v1469_v19, %v1470_v51  ;;  %v1712_v52 = vsel %vm1398_vm2, %v1710_v10, %v1711_v8  ;;  %v2193_v59 = vrot.slane %v2068_v16, 2  ;;  %v2311_v0 = vmul.f32 %v3932_v17, %v6534_v60  ;;  %v2952_v10 = vpop.f32.mrf.mxu1 }
 0x1ca   : > { %v2799_v30 = vmax.f32 %v2767_v26, 0.0  ;;  %v1539_v14 = vadd.f32 %v1471_v33, %v1297_v21  ;;  %v2194_v49 = vrot.slane %v2069_v6, 2  ;;  %v2434_v7 = vrot.slane %v2310_v31, 2  ;;  %v6636_v6 = vld [vmem:[#allocation54_spill] sm:$0xff] }
 0x1cb   : > { %v2435_v25 = vrot.slane %v2311_v0, 2  ;;  %v2552_v62 = vmul.f32 %v3942_v34, %v5004_v27  ;;  %v2675_v20 = vrot.slane %v6633_v47, 2  ;;  %v1122_v36 = vmul.f32 %v3940_v53, %v6560_v44  ;;  %v6638_v0 = vld [vmem:[#allocation36_spill] sm:$0xff]  ;;  %v6642_v47 = vld [vmem:[#allocation57_spill] sm:$0xff] }
 0x1cc   : > { %3382 = vmatmul.msk.f32.gmra.mxu1 %vm2829_vm5, %v2799_v30  ;;  %v1780_v41 = vadd.f32 %v1712_v52, %v1539_v14  ;;  %v2195_v46 = vsel %vm2122_vm4, %v2193_v59, %v2194_v49  ;;  %v1187_v55 = vmul.f32 %v3946_v45, %v6591_v35  ;;  %v1252_v19 = vmul.f32 %v3964_v39, %v6624_v38 }
 0x1cd   : > { %v2436_v16 = vsel %vm2122_vm4, %v2434_v7, %v2435_v25  ;;  %v2676_v26 = vrot.slane %v2552_v62, 2  ;;  %v6635_v21 = vrot.slane %v6634_v50, 1  ;;  %v6637_v31 = vrot.slane %v6636_v6, 1  ;;  %v6640_v7 = vld [vmem:[#allocation47_spill] sm:$0xff] }
 0x1ce   : > { %v2021_v52 = vadd.f32 %v1953_v32, %v1780_v41  ;;  %v1219_v59 = vadd.f32 %v1187_v55, %v1122_v36  ;;  %v6639_v30 = vrot.slane %v6638_v0, 2  ;;  %v6641_v62 = vrot.slane %v6640_v7, 2 }
 0x1cf   : > { %v1679_v44 = vsel %vm1398_vm2, %v1676_v22, %v6635_v21  ;;  %v1920_v33 = vsel %vm1398_vm2, %v1917_v40, %v6637_v31  ;;  %v2677_v22 = vsel %vm2122_vm4, %v2675_v20, %v2676_v26  ;;  %v2643_v50 = vrot.slane %v6642_v47, 2  ;;  %v6643_v40 = vld [vmem:[#allocation11_spill] sm:$0xff] }
 0x1d0   : > { %v2162_v14 = vsel %vm2122_vm4, %v2159_v15, %v6639_v30  ;;  %v2403_v42 = vsel %vm2122_vm4, %v2400_v9, %v6641_v62  ;;  %v2953_v13 = vadd.f32 %v5367_v1, %v2952_v10  ;;  %v6644_v32 = vrot.slane %v6643_v40, 1  ;;  %v6646_v10 = vld [vmem:[#allocation69_spill] sm:$0xff]  ;;  %v6651_v30 = vld [vmem:[#allocation74_spill] sm:$0xff] }
 0x1d1   : > { %v6645_v36 = vrot.slane %v6625_v58, 1  ;;  %v2263_v28 = vadd.f32 %v2195_v46, %v2021_v52  ;;  %v1284_v55 = vadd.f32 %v1252_v19, %v1219_v59  ;;  %v1136_v15 = vmul.f32 %v3940_v53, %v5088_v24  ;;  %v6648_v58 = vld [vmem:[#allocation99_spill] sm:$0xff]  ;;  %v6650_v52 = vld [vmem:[#allocation40_spill] sm:$0xff] }
 0x1d2   : > { %v1201_v9 = vmul.f32 %v3946_v45, %v6534_v60  ;;  %v2644_v20 = vsel %vm2122_vm4, %v2641_v54, %v2643_v50  ;;  %v6647_v6 = vrot.slane %v6646_v10, 1  ;;  %v6649_v0 = vrot.slane %v6648_v58, 1 }
 0x1d3   : > { %v3048_v41 = vsel %vm1398_vm2, %v6645_v36, %v6644_v32  ;;  %v2504_v19 = vadd.f32 %v2436_v16, %v2263_v28  ;;  %v1526_v59 = vadd.f32 %v6650_v52, %v1284_v55  ;;  %v6652_v7 = vrot.slane %v6651_v30, 2  ;;  %v6656_v32 = vld [vmem:[#allocation121_spill] sm:$0xff]  ;;  %v6657_v36 = vld [vmem:[#allocation59_spill] sm:$0xff]  ;;  %v6658_v52 = vld [vmem:[#allocation60_spill] sm:$0xff] }
 0x1d4   : > { %v3154_v21 = vadd.f32 %v3048_v41, %v2953_v13  ;;  %v1473_v31 = vsel %vm1398_vm2, %v1470_v51, %v6647_v6  ;;  %v1714_v46 = vsel %vm1398_vm2, %v1711_v8, %v6649_v0  ;;  %v1233_v24 = vadd.f32 %v1201_v9, %v1136_v15 }
 0x1d5   : > { %v2197_v62 = vsel %vm2122_vm4, %v2194_v49, %v6652_v7  ;;  %v6654_v54 = vrot.slane %v6653_v61, 2  ;;  %v6655_v51 = vrot.slane %v5184_v63, 2  ;;  %v1123_v8 = vmul.f32 %v3940_v53, %v6589_v29 }
 0x1d6   : > { %3186 = vst.msk [vmem:[%s5420_s8 + $0x18] sm:$0xff] %vm354_vm0, %v3154_v21  ;;  %v1188_v16 = vmul.f32 %v3946_v45, %v6620_v18  ;;  %v2745_v13 = vadd.f32 %v2677_v22, %v2504_v19  ;;  %v1767_v40 = vadd.f32 %v1679_v44, %v1526_v59  ;;  %v1298_v49 = vadd.f32 %v6656_v32, %v1233_v24  ;;  %v6659_v24 = vld [vmem:[#allocation42_spill] sm:$0xff] }
 0x1d7   : > { %v2438_v47 = vsel %vm2122_vm4, %v2435_v25, %v6654_v54  ;;  %v2679_v50 = vsel %vm2122_vm4, %v2676_v26, %v6655_v51  ;;  %v1253_v41 = vmul.f32 %v3964_v39, %v6657_v36  ;;  %v1326_v25 = vmul.f32 %v3913_v43, %v6589_v29 }
 0x1d8   : > { %v1220_v28 = vadd.f32 %v1188_v16, %v1123_v8  ;;  %v1568_v63 = vmul.f32 %v3926_v56, %v6620_v18  ;;  %v5776_v26 = vmul.f32 %v3926_v56, %v6624_v38  ;;  %v2781_v55 = vadd.f32 %v5136_v48, %v2745_v13 }
 0x1d9   : > { %v2008_v22 = vadd.f32 %v1920_v33, %v1767_v40  ;;  %v1540_v44 = vadd.f32 %v1473_v31, %v1298_v49  ;;  %v1809_v15 = vmul.f32 %v3928_v57, %v6657_v36  ;;  %v1439_v21 = vrot.slane %v1326_v25, 1 }
 0x1da   : > { %v1285_v9 = vadd.f32 %v1253_v41, %v1220_v28  ;;  %v1680_v10 = vrot.slane %v1568_v63, 1  ;;  %v1681_v6 = vrot.slane %v5776_v26, 1  ;;  %v2813_v58 = vmax.f32 %v2781_v55, 0.0 }
 0x1db   : > { %v2250_v0 = vadd.f32 %v2162_v14, %v2008_v22  ;;  %v1781_v19 = vadd.f32 %v1714_v46, %v1540_v44  ;;  %v5784_v59 = vmul.f32 %v3928_v57, %v6658_v52  ;;  %v6660_v30 = vrot.slane %v6659_v24, 1 }
 0x1dc   : > { %v1682_v31 = vsel %vm1398_vm2, %v1680_v10, %v1681_v6  ;;  %v1921_v7 = vrot.slane %v1809_v15, 1  ;;  %v2050_v61 = vmul.f32 %v3930_v2, %v6589_v29  ;;  %3396 = vmatmul.msk.f32.gmra.mxu3 %vm2829_vm5, %v2813_v58  ;;  %v5799_v8 = vmul.f32 %v3930_v2, %v6591_v35 }
 0x1dd   : > { %v1441_v33 = vsel %vm1398_vm2, %v1439_v21, %v6660_v30  ;;  %v2491_v14 = vadd.f32 %v2403_v42, %v2250_v0  ;;  %v2022_v46 = vadd.f32 %v5202_v23, %v1781_v19  ;;  %v1922_v51 = vrot.slane %v5784_v59, 1  ;;  %v6662_v19 = vld [vmem:[#allocation116_spill] sm:$0xff] }
 0x1de   : > { %v1527_v54 = vadd.f32 %v1441_v33, %v1285_v9  ;;  %v2163_v16 = vrot.slane %v2050_v61, 2  ;;  %v2292_v13 = vmul.f32 %v3932_v17, %v6620_v18  ;;  %v2293_v40 = vmul.f32 %v3932_v17, %v6624_v38 }
 0x1df   : > { %v2732_v29 = vadd.f32 %v2644_v20, %v2491_v14  ;;  %v2264_v32 = vadd.f32 %v2197_v62, %v2022_v46  ;;  %v1923_v42 = vsel %vm1398_vm2, %v1921_v7, %v1922_v51  ;;  %v2164_v23 = vrot.slane %v5799_v8, 2 }
 0x1e0   : > { %v1768_v49 = vadd.f32 %v1682_v31, %v1527_v54  ;;  %v2404_v41 = vrot.slane %v2292_v13, 2  ;;  %v2405_v28 = vrot.slane %v2293_v40, 2  ;;  %v2533_v25 = vmul.f32 %v3942_v34, %v6657_v36  ;;  %v6665_v40 = vld [vmem:[#allocation120_spill] sm:$0xff] }
 0x1e1   : > { %v2768_v63 = vadd.f32 %v5136_v48, %v2732_v29  ;;  %v2505_v55 = vadd.f32 %v2438_v47, %v2264_v32  ;;  %v5812_v44 = vmul.f32 %v3942_v34, %v6658_v52  ;;  %v2165_v20 = vsel %vm2122_vm4, %v2163_v16, %v2164_v23 }
 0x1e2   : > { %v2009_v22 = vadd.f32 %v1923_v42, %v1768_v49  ;;  %v2406_v62 = vsel %vm2122_vm4, %v2404_v41, %v2405_v28  ;;  %v2645_v15 = vrot.slane %v2533_v25, 2  ;;  %v1347_v9 = vmul.f32 %v3913_v43, %v6597_v4 }
 0x1e3   : > { %v2800_v21 = vmax.f32 %v2768_v63, 0.0  ;;  %v2746_v10 = vadd.f32 %v2679_v50, %v2505_v55  ;;  %v2646_v0 = vrot.slane %v5812_v44, 2  ;;  %v6661_v47 = vrot.slane %v5158_v12, 1  ;;  %v5831_v50 = vld [vmem:[%s6228_s4] ss:$0 sm:$0xff]  ;;  %v2955_v55 = vpop.f32.mrf.mxu1 }
 0x1e4   : > { %v2251_v58 = vadd.f32 %v2165_v20, %v2009_v22  ;;  %v1474_v48 = vrot.slane %v1347_v9, 1  ;;  %v6663_v59 = vrot.slane %v6662_v19, 1  ;;  %v1830_v30 = vmul.f32 0.0, %v3928_v57  ;;  %v6666_v20 = vld [vmem:[#allocation118_spill] sm:$0xff]  ;;  %v6668_v9 = vld [vmem:[#allocation53_spill] sm:$0xff]  ;;  %v6670_v19 = vld [vmem:[#allocation63_spill] sm:$0xff] }
 0x1e5   : > { %v2071_v33 = vmul.f32 %v3930_v2, %v6597_v4  ;;  %3383 = vmatmul.msk.f32.gmra.mxu1 %vm2829_vm5, %v2800_v21  ;;  %v2782_v31 = vadd.f32 %v5831_v50, %v2746_v10  ;;  %v2647_v12 = vsel %vm2122_vm4, %v2645_v15, %v2646_v0  ;;  %v2072_v61 = vmul.f32 %v3930_v2, %v6534_v60 }
 0x1e6   : > { %v1717_v24 = vsel %vm1398_vm2, %v6663_v59, %v6661_v47  ;;  %v2492_v7 = vadd.f32 %v2406_v62, %v2251_v58  ;;  %v6664_v14 = vrot.slane %v5154_v37, 1  ;;  %v1956_v46 = vrot.slane %v1830_v30, 1 }
 0x1e7   : > { %v2198_v54 = vrot.slane %v2071_v33, 2  ;;  %v2314_v8 = vmul.f32 %v3932_v17, %v5004_v27  ;;  %v2814_v16 = vmax.f32 %v2782_v31, 0.0  ;;  %v2199_v32 = vrot.slane %v2072_v61, 2 }
 0x1e8   : > { %v1476_v4 = vsel %vm1398_vm2, %v1474_v48, %v6664_v14  ;;  %v2733_v13 = vadd.f32 %v2647_v12, %v2492_v7  ;;  %v2554_v42 = vmul.f32 0.0, %v3942_v34  ;;  %v1124_v60 = vmul.f32 %v3940_v53, %v6591_v35  ;;  %v6674_v7 = vld [vmem:[#allocation56_spill] sm:$0xff]  ;;  %v6676_v14 = vld [vmem:[#allocation13_spill] sm:$0xff] }
 0x1e9   : > { %v1541_v29 = vadd.f32 %v1476_v4, %v6665_v40  ;;  %v2440_v49 = vrot.slane %v2314_v8, 2  ;;  %v1189_v37 = vmul.f32 %v3946_v45, %v6624_v38  ;;  %3397 = vmatmul.msk.f32.gmra.mxu3 %vm2829_vm5, %v2814_v16  ;;  %v2200_v27 = vsel %vm2122_vm4, %v2198_v54, %v2199_v32  ;;  %v6678_v54 = vld [vmem:[#allocation12_spill] sm:$0xff] }
 0x1ea   : > { %v2769_v41 = vadd.f32 %v5831_v50, %v2733_v13  ;;  %v1254_v63 = vmul.f32 %v3964_v39, %v6658_v52  ;;  %v2442_v22 = vrot.slane %v5181_v5, 2  ;;  %v6667_v62 = vrot.slane %v6666_v20, 2  ;;  %v6672_v5 = vld [vmem:[#allocation46_spill] sm:$0xff] }
 0x1eb   : > { %v1782_v25 = vadd.f32 %v1717_v24, %v1541_v29  ;;  %v1221_v15 = vadd.f32 %v1189_v37, %v1124_v60  ;;  %v6669_v21 = vrot.slane %v6668_v9, 1  ;;  %v2680_v47 = vrot.slane %v2554_v42, 2  ;;  %v6680_v13 = vld [vmem:[#allocation102_spill] sm:$0xff]  ;;  %v6682_v29 = vld [vmem:[#allocation49_spill] sm:$0xff] }
 0x1ec   : > { %v2441_v35 = vsel %vm2122_vm4, %v6667_v62, %v2440_v49  ;;  %v2801_v58 = vmax.f32 %v2769_v41, 0.0  ;;  %v6671_v59 = vrot.slane %v6670_v19, 1  ;;  %v6673_v33 = vrot.slane %v6672_v5, 2  ;;  %v6683_v42 = vld [vmem:[#allocation65_spill] sm:$0xff]  ;;  %v2958_v5 = vpop.f32.mrf.mxu1 }
 0x1ed   : > { %v1684_v10 = vsel %vm1398_vm2, %v1681_v6, %v6669_v21  ;;  %v2023_v48 = vadd.f32 %v1956_v46, %v1782_v25  ;;  %v1286_v30 = vadd.f32 %v1254_v63, %v1221_v15  ;;  %v6675_v12 = vrot.slane %v6674_v7, 2  ;;  %v6685_v7 = vld [vmem:[#allocation52_spill] sm:$0xff] }
 0x1ee   : > { %v1925_v24 = vsel %vm1398_vm2, %v1922_v51, %v6671_v59  ;;  %v2167_v31 = vsel %vm2122_vm4, %v2164_v23, %v6673_v33  ;;  %v2956_v26 = vadd.f32 %v5367_v1, %v2955_v55  ;;  %3384 = vmatmul.msk.f32.gmra.mxu1 %vm2829_vm5, %v2801_v58  ;;  %v6677_v4 = vrot.slane %v6676_v14, 1 }
 0x1ef   : > { %v2408_v61 = vsel %vm2122_vm4, %v2405_v28, %v6675_v12  ;;  %v2265_v6 = vadd.f32 %v2200_v27, %v2023_v48  ;;  %v6679_v8 = vrot.slane %v6678_v54, 1  ;;  %v2024_v16 = vadd.f32 %v1956_v46, %v5197_v11  ;;  %v6684_v46 = vld [vmem:[#allocation66_spill] sm:$0xff] }
 0x1f0   : > { %v6681_v23 = vrot.slane %v6680_v13, 2  ;;  %v1528_v28 = vadd.f32 %v6682_v29, %v1286_v30  ;;  %v2648_v60 = vrot.slane %v6683_v42, 2  ;;  %v2443_v41 = vsel %vm2122_vm4, %v2440_v49, %v2442_v22 }
 0x1f1   : > { %v3051_v51 = vsel %vm1398_vm2, %v6679_v8, %v6677_v4  ;;  %v2506_v25 = vadd.f32 %v2441_v35, %v2265_v6  ;;  %v1125_v63 = vmul.f32 %v3940_v53, %v6620_v18  ;;  %v1190_v55 = vmul.f32 %v3946_v45, %v6657_v36  ;;  %v6687_v6 = vld [vmem:[#allocation68_spill] sm:$0xff] }
 0x1f2   : > { %v2202_v40 = vsel %vm2122_vm4, %v2199_v32, %v6681_v23  ;;  %v3155_v37 = vadd.f32 %v3051_v51, %v2956_v26  ;;  %v1769_v11 = vadd.f32 %v1684_v10, %v1528_v28  ;;  %v1255_v32 = vmul.f32 %v3964_v39, %v6684_v46 }
 0x1f3   : > { %v2266_v27 = vadd.f32 %v2202_v40, %v2024_v16  ;;  %v1329_v20 = vmul.f32 %v3913_v43, %v6620_v18  ;;  %v1571_v49 = vmul.f32 %v3926_v56, %v6657_v36  ;;  %v2747_v22 = vadd.f32 %v2680_v47, %v2506_v25 }
 0x1f4   : > { %3187 = vst.msk [vmem:[%s5420_s8 + $0x20] sm:$0xff] %vm354_vm0, %v3155_v37  ;;  %v1222_v35 = vadd.f32 %v1190_v55, %v1125_v63  ;;  %v1572_v15 = vmul.f32 %v3926_v56, %v6658_v52  ;;  %v2010_v9 = vadd.f32 %v1925_v24, %v1769_v11  ;;  %v1812_v58 = vmul.f32 %v3928_v57, %v6684_v46 }
 0x1f5   : > { %v2507_v62 = vadd.f32 %v2443_v41, %v2266_v27  ;;  %v1444_v21 = vrot.slane %v1329_v20, 1  ;;  %v1685_v10 = vrot.slane %v1571_v49, 1  ;;  %v2783_v48 = vadd.f32 %v5831_v50, %v2747_v22  ;;  %v6688_v22 = vld [vmem:[#allocation14_spill] sm:$0xff] }
 0x1f6   : > { %v1287_v59 = vadd.f32 %v1255_v32, %v1222_v35  ;;  %v1686_v30 = vrot.slane %v1572_v15, 1  ;;  %v2252_v33 = vadd.f32 %v2167_v31, %v2010_v9  ;;  %v6686_v12 = vrot.slane %v6685_v7, 1  ;;  %v2961_v9 = vpop.f32.mrf.mxu1 }
 0x1f7   : > { %v2748_v19 = vadd.f32 %v2680_v47, %v2507_v62  ;;  %v1813_v4 = vmul.f32 %v3928_v57, %v6687_v6  ;;  %v1926_v24 = vrot.slane %v1812_v58, 1  ;;  %v2815_v54 = vmax.f32 %v2783_v48, 0.0 }
 0x1f8   : > { %v1446_v26 = vsel %vm1398_vm2, %v1444_v21, %v6686_v12  ;;  %v2649_v8 = vsel %vm2122_vm4, %v2646_v0, %v2648_v60  ;;  %v1687_v47 = vsel %vm1398_vm2, %v1685_v10, %v1686_v30  ;;  %v2493_v16 = vadd.f32 %v2408_v61, %v2252_v33 }
 0x1f9   : > { %v1529_v51 = vadd.f32 %v1446_v26, %v1287_v59  ;;  %v1927_v13 = vrot.slane %v1813_v4, 1  ;;  %v2053_v31 = vmul.f32 %v3930_v2, %v6620_v18  ;;  %v2054_v23 = vmul.f32 %v3930_v2, %v6624_v38  ;;  %3398 = vmatmul.msk.f32.gmra.mxu3 %vm2829_vm5, %v2815_v54  ;;  %v6692_v4 = vld [vmem:[#allocation62_spill] sm:$0xff] }
 0x1fa   : > { %v2784_v40 = vadd.f32 %v5831_v50, %v2748_v19  ;;  %v2295_v44 = vmul.f32 %v3932_v17, %v6657_v36  ;;  %v2296_v0 = vmul.f32 %v3932_v17, %v6658_v52  ;;  %v2734_v28 = vadd.f32 %v2649_v8, %v2493_v16  ;;  %v3006_v19 = vpop.f32.mrf.mxu3  ;;  %v6694_v8 = vld [vmem:[#allocation55_spill] sm:$0xff] }
 0x1fb   : > { %v1770_v29 = vadd.f32 %v1687_v47, %v1529_v51  ;;  %v1928_v61 = vsel %vm1398_vm2, %v1926_v24, %v1927_v13  ;;  %v2168_v42 = vrot.slane %v2053_v31, 2  ;;  %v2169_v60 = vrot.slane %v2054_v23, 2  ;;  %v6696_v47 = vld [vmem:[#allocation77_spill] sm:$0xff]  ;;  %v6698_v23 = vld [vmem:[#allocation79_spill] sm:$0xff] }
 0x1fc   : > { %v2409_v37 = vrot.slane %v2295_v44, 2  ;;  %v2410_v41 = vrot.slane %v2296_v0, 2  ;;  %v2536_v25 = vmul.f32 %v3942_v34, %v6684_v46  ;;  %v2770_v27 = vadd.f32 %v5831_v50, %v2734_v28 }
 0x1fd   : > { %v2011_v18 = vadd.f32 %v1928_v61, %v1770_v29  ;;  %v2170_v63 = vsel %vm2122_vm4, %v2168_v42, %v2169_v60  ;;  %v2537_v55 = vmul.f32 %v3942_v34, %v6687_v6  ;;  %v2959_v11 = vadd.f32 %v5367_v1, %v2958_v5 }
 0x1fe   : > { %v2816_v32 = vmax.f32 %v2784_v40, 0.0  ;;  %v2650_v49 = vrot.slane %v2536_v25, 2  ;;  %v6689_v62 = vrot.slane %v6688_v22, 1  ;;  %v6690_v35 = vrot.slane %v6676_v14, 1  ;;  %v6691_v14 = vld [vmem:[#allocation64_spill] sm:$0xff] }
 0x1ff   : > { %v2253_v20 = vadd.f32 %v2170_v63, %v2011_v18  ;;  %v2802_v21 = vmax.f32 %v2770_v27, 0.0  ;;  %v2411_v10 = vsel %vm2122_vm4, %v2409_v37, %v2410_v41  ;;  %v2651_v58 = vrot.slane %v2537_v55, 2  ;;  %v6699_v18 = vld [vmem:[#allocation58_spill] sm:$0xff]  ;;  %v2964_v63 = vpop.f32.mrf.mxu1 }
 0x200   : > { %v3053_v15 = vsel %vm1398_vm2, %v6690_v35, %v6689_v62  ;;  %v1126_v5 = vmul.f32 %v3940_v53, %v6624_v38  ;;  %v1191_v33 = vmul.f32 %v3946_v45, %v6658_v52  ;;  %v1256_v7 = vmul.f32 %v3964_v39, %v6687_v6 }
 0x201   : > { %v3156_v48 = vadd.f32 %v3053_v15, %v2959_v11  ;;  %v2494_v59 = vadd.f32 %v2411_v10, %v2253_v20  ;;  %v2412_v12 = vrot.slane %v6691_v14, 2  ;;  %3385 = vmatmul.msk.f32.gmra.mxu1 %vm2829_vm5, %v2802_v21  ;;  %v2652_v26 = vsel %vm2122_vm4, %v2650_v49, %v2651_v58  ;;  %3399 = vmatmul.msk.f32.gmra.mxu3 %vm2829_vm5, %v2816_v32  ;;  %v6700_v49 = vld [vmem:[#allocation61_spill] sm:$0xff] }
 0x202   : > { %v6693_v24 = vrot.slane %v6692_v4, 1  ;;  %v6695_v38 = vrot.slane %v6694_v8, 2  ;;  %v1223_v6 = vadd.f32 %v1191_v33, %v1126_v5  ;;  %v6697_v16 = vrot.slane %v6696_v47, 1  ;;  %v3009_v32 = vpop.f32.mrf.mxu3  ;;  %v6704_v15 = vld [vmem:[#allocation97_spill] sm:$0xff] }
 0x203   : > { %3188 = vst.msk [vmem:[%s5420_s8 + $0x28] sm:$0xff] %vm354_vm0, %v3156_v48  ;;  %v2735_v52 = vadd.f32 %v2652_v26, %v2494_v59  ;;  %v2653_v40 = vrot.slane %v6698_v23, 2  ;;  %v1127_v29 = vmul.f32 %v3940_v53, %v6657_v36  ;;  %v1257_v44 = vmul.f32 %v3964_v39, %v4622_v3  ;;  %v6706_v59 = vld [vmem:[#allocation98_spill] sm:$0xff] }
 0x204   : > { %v1689_v54 = vsel %vm1398_vm2, %v1686_v30, %v6693_v24  ;;  %v2172_v51 = vsel %vm2122_vm4, %v2169_v60, %v6695_v38  ;;  %v1930_v31 = vsel %vm1398_vm2, %v1927_v13, %v6697_v16  ;;  %v1192_v30 = vmul.f32 %v3946_v45, %v6684_v46 }
 0x205   : > { %v1332_v0 = vmul.f32 %v3913_v43, %v6657_v36  ;;  %v2771_v28 = vadd.f32 %v5831_v50, %v2735_v52  ;;  %v1288_v61 = vadd.f32 %v1256_v7, %v1223_v6  ;;  %v1574_v13 = vmul.f32 %v3926_v56, %v6684_v46  ;;  %v6710_v7 = vld [vmem:[#allocation15_spill] sm:$0xff]  ;;  %v6009_v52 = vld [vmem:[%s6230_s6] ss:$0 sm:$0xff] }
 0x206   : > { %v1815_v42 = vmul.f32 %v3928_v57, %v4622_v3  ;;  %v1224_v60 = vadd.f32 %v1192_v30, %v1127_v29  ;;  %v2056_v45 = vmul.f32 %v3930_v2, %v6657_v36  ;;  %v2298_v39 = vmul.f32 %v3932_v17, %v6684_v46 }
 0x207   : > { %v1449_v53 = vrot.slane %v1332_v0, 1  ;;  %v1530_v37 = vadd.f32 %v6699_v18, %v1288_v61  ;;  %v2413_v43 = vsel %vm2122_vm4, %v2410_v41, %v2412_v12  ;;  %v1690_v25 = vrot.slane %v1574_v13, 1  ;;  %v6702_v41 = vld [vmem:[#allocation71_spill] sm:$0xff]  ;;  %v6721_v13 = vld [vmem:[#allocation21_spill] sm:$0xff]  ;;  %v6725_v18 = vld [vmem:[#allocation20_spill] sm:$0xff] }
 0x208   : > { %v1931_v27 = vrot.slane %v1815_v42, 1  ;;  %v2803_v55 = vmax.f32 %v2771_v28, 0.0  ;;  %v2654_v56 = vsel %vm2122_vm4, %v2651_v58, %v2653_v40  ;;  %v1289_v11 = vadd.f32 %v1257_v44, %v1224_v60  ;;  %v6717_v40 = vld [vmem:[#allocation16_spill] sm:$0xff]  ;;  %v6719_v28 = vld [vmem:[#allocation23_spill] sm:$0xff] }
 0x209   : > { %v2173_v57 = vrot.slane %v2056_v45, 2  ;;  %v1771_v20 = vadd.f32 %v1689_v54, %v1530_v37  ;;  %v6701_v22 = vrot.slane %v6700_v49, 1  ;;  %v2414_v36 = vrot.slane %v2298_v39, 2  ;;  %v6712_v54 = vld [vmem:[#allocation19_spill] sm:$0xff]  ;;  %v6723_v45 = vld [vmem:[#allocation22_spill] sm:$0xff] }
 0x20a   : > { %v2539_v17 = vmul.f32 %v3942_v34, %v4622_v3  ;;  %3386 = vmatmul.msk.f32.gmra.mxu1 %vm2829_vm5, %v2803_v55  ;;  %v6703_v62 = vrot.slane %v6702_v41, 1  ;;  %v6705_v21 = vrot.slane %v6704_v15, 1  ;;  %v2962_v58 = vadd.f32 %v5367_v1, %v2961_v9  ;;  %v6708_v34 = vld [vmem:[#allocation17_spill] sm:$0xff]  ;;  %v6735_v41 = vld [vmem:[#allocation27_spill] sm:$0xff] }
 0x20b   : > { %v1451_v2 = vsel %vm1398_vm2, %v1449_v53, %v6701_v22  ;;  %v2012_v48 = vadd.f32 %v1930_v31, %v1771_v20  ;;  %v6707_v5 = vrot.slane %v6706_v59, 2  ;;  %v6709_v3 = vrot.slane %v6708_v34, 1  ;;  %v6715_v31 = vld [vmem:[#allocation18_spill] sm:$0xff]  ;;  %v2967_v53 = vpop.f32.mrf.mxu1  ;;  %v6742_v34 = vld [vmem:[#allocation28_spill] sm:$0xff] }
 0x20c   : > { %v1531_v46 = vadd.f32 %v1451_v2, %v1289_v11  ;;  %v1692_v35 = vsel %vm1398_vm2, %v1690_v25, %v6703_v62  ;;  %v1933_v10 = vsel %vm1398_vm2, %v1931_v27, %v6705_v21  ;;  %v6711_v14 = vrot.slane %v6710_v7, 1  ;;  %v6727_v27 = vld [vmem:[#allocation25_spill] sm:$0xff]  ;;  %v6737_v21 = vld [vmem:[#allocation100_spill] sm:$0xff]  ;;  %v6744_v7 = vld [vmem:[#allocation26_spill] sm:$0xff] }
 0x20d   : > { %v2175_v33 = vsel %vm2122_vm4, %v2173_v57, %v6707_v5  ;;  %v2965_v26 = vadd.f32 %v5367_v1, %v2964_v63  ;;  %v6713_v8 = vrot.slane %v6712_v54, 1  ;;  %v6714_v9 = vmov %v6709_v3  ;;  %v6730_v57 = vld [vmem:[#allocation24_spill] sm:$0xff] }
 0x20e   : > { %v3056_v12 = vsel %vm1398_vm2, %v6711_v14, %v6709_v3  ;;  %v1772_v4 = vadd.f32 %v1692_v35, %v1531_v46  ;;  %v3007_v6 = vadd.f32 %v6009_v52, %v3006_v19  ;;  %v2254_v47 = vadd.f32 %v2172_v51, %v2012_v48  ;;  %v6739_v48 = vld [vmem:[#allocation35_spill] sm:$0xff] }
 0x20f   : > { %v3157_v24 = vadd.f32 %v3056_v12, %v2962_v58  ;;  %v3058_v38 = vsel %vm1398_vm2, %v6714_v9, %v6713_v8  ;;  %v2655_v16 = vrot.slane %v2539_v17, 2  ;;  %v6716_v23 = vrot.slane %v6715_v31, 1  ;;  %v6733_v17 = vld [vmem:[#allocation29_spill] sm:$0xff] }
 0x210   : > { %v3158_v1 = vadd.f32 %v3058_v38, %v2965_v26  ;;  %v6718_v29 = vrot.slane %v6717_v40, 1  ;;  %v2013_v44 = vadd.f32 %v1933_v10, %v1772_v4  ;;  %v6720_v61 = vrot.slane %v6719_v28, 1  ;;  %v6746_v4 = vld [vmem:[#allocation105_spill] sm:$0xff]  ;;  %v6750_v38 = vld [vmem:[#allocation38_spill] sm:$0xff] }
 0x211   : > { %3189 = vst.msk [vmem:[%s5420_s8 + $0x30] sm:$0xff] %vm354_vm0, %v3157_v24  ;;  %v6722_v42 = vrot.slane %v6721_v13, 1  ;;  %v3010_v51 = vadd.f32 %v6009_v52, %v3009_v32  ;;  %v2495_v60 = vadd.f32 %v2413_v43, %v2254_v47  ;;  %v6724_v39 = vrot.slane %v6723_v45, 1  ;;  %v6748_v8 = vld [vmem:[#allocation5_spill] sm:$0xff] }
 0x212   : > { %v3093_v30 = vsel %vm1398_vm2, %v6718_v29, %v6716_v23  ;;  %3190 = vst.msk [vmem:[%s5420_s8 + $0x38] sm:$0xff] %vm354_vm0, %v3158_v1  ;;  %v6726_v37 = vrot.slane %v6725_v18, 1  ;;  %v6728_v63 = vrot.slane %v6727_v27, 1  ;;  %v6729_v55 = vmov %v6720_v61 }
 0x213   : > { %v3172_v0 = vadd.f32 %v3093_v30, %v3007_v6  ;;  %v3061_v19 = vsel %vm1398_vm2, %v6722_v42, %v6720_v61  ;;  %v6731_v20 = vrot.slane %v6730_v57, 1  ;;  %v6732_v43 = vmov %v6724_v39  ;;  %v6752_v30 = vld [vmem:[#allocation30_spill] sm:$0xff]  ;;  %v2970_v61 = vpop.f32.mrf.mxu1 }
 0x214   : > { %v3096_v25 = vsel %vm1398_vm2, %v6726_v37, %v6724_v39  ;;  %v3063_v11 = vsel %vm1398_vm2, %v6729_v55, %v6728_v63  ;;  %v2255_v49 = vadd.f32 %v2175_v33, %v2013_v44  ;;  %v2968_v22 = vadd.f32 %v6009_v52, %v2967_v53  ;;  %v3487_v39 = vld [vmem:[%s3701_s12 + $0xb8] sm:$0xff]  ;;  %v3488_v63 = vld [vmem:[%s3701_s12 + $0x150] sm:$0xff] }
 0x215   : > { %v3098_v32 = vsel %vm1398_vm2, %v6732_v43, %v6731_v20  ;;  %3204 = vst.msk [vmem:[%s5420_s8 + $0xa8] sm:$0xff] %vm354_vm0, %v3172_v0  ;;  %v3173_v2 = vadd.f32 %v3096_v25, %v3010_v51  ;;  %v6734_v46 = vrot.slane %v6733_v17, 1  ;;  %v6736_v62 = vrot.slane %v6735_v41, 1  ;;  %v3491_v17 = vld [vmem:[%s3701_s12 + $0xc8] sm:$0xff] }
 0x216   : > { %v2736_v15 = vadd.f32 %v2654_v56, %v2495_v60  ;;  %v6738_v10 = vrot.slane %v6737_v21, 2  ;;  %v6740_v59 = vrot.slane %v6739_v48, 1  ;;  %v6743_v3 = vrot.slane %v6742_v34, 1  ;;  %v3493_v34 = vld [vmem:[%s3701_s12 + $0xd0] sm:$0xff] }
 0x217   : > { %v3066_v35 = vsel %vm1398_vm2, %v6736_v62, %v6734_v46  ;;  %v6741_v5 = vmov %v6734_v46  ;;  %v6745_v14 = vrot.slane %v6744_v7, 1  ;;  %v6747_v56 = vrot.slane %v6746_v4, 2  ;;  %3205 = vst.msk [vmem:[%s5420_s8 + $0xb0] sm:$0xff] %vm354_vm0, %v3173_v2  ;;  %v3492_v62 = vld [vmem:[%s3701_s12 + $0x160] sm:$0xff]  ;;  %v3495_v4 = vld [vmem:[%s3701_s12 + $0x170] sm:$0xff] }
 0x218   : > { %v2416_v58 = vsel %vm2122_vm4, %v2414_v36, %v6738_v10  ;;  %v3068_v33 = vsel %vm1398_vm2, %v6741_v5, %v6740_v59  ;;  %v3159_v54 = vadd.f32 %v3061_v19, %v2968_v22  ;;  %v3012_v36 = vpop.f32.mrf.mxu3  ;;  %v6749_v9 = vrot.slane %v6748_v8, 1  ;;  %v3490_v22 = vld [vmem:[%s3701_s12 + $0xc0] sm:$0xff] }
 0x219   : > { %v3101_v12 = vsel %vm1398_vm2, %v6745_v14, %v6743_v3  ;;  %v2496_v26 = vadd.f32 %v2416_v58, %v2255_v49  ;;  %v2657_v24 = vsel %vm2122_vm4, %v2655_v16, %v6747_v56  ;;  %v6751_v6 = vrot.slane %v6750_v38, 1 }
 0x21a   : > { %v2772_v1 = vadd.f32 %v5831_v50, %v2736_v15  ;;  %v3013_v31 = vadd.f32 %v6009_v52, %v3012_v36  ;;  %3191 = vst.msk [vmem:[%s5420_s8 + $0x40] sm:$0xff] %vm354_vm0, %v3159_v54  ;;  %v6753_v44 = vrot.slane %v6752_v30, 1  ;;  %v6754_v0 = vmov %v6743_v3 }
 0x21b   : > { %v3071_v47 = vsel %vm1398_vm2, %v6751_v6, %v6749_v9  ;;  %v2737_v16 = vadd.f32 %v2657_v24, %v2496_v26  ;;  %v2971_v13 = vadd.f32 %v6009_v52, %v2970_v61  ;;  %v2973_v60 = vpop.f32.mrf.mxu1  ;;  %v3072_v18 = vrot.slane %v3487_v39, 1  ;;  %v3497_v6 = vld [vmem:[%s3701_s12 + $0xe0] sm:$0xff] }
 0x21c   : > { %v2804_v23 = vmax.f32 %v2772_v1, 0.0  ;;  %v3174_v29 = vadd.f32 %v3098_v32, %v3013_v31  ;;  %v3103_v28 = vsel %vm1398_vm2, %v6754_v0, %v6753_v44  ;;  %v2974_v53 = vadd.f32 %v6009_v52, %v2973_v60  ;;  %v3500_v60 = vld [vmem:[%s3701_s12 + $0x180] sm:$0xff] }
 0x21d   : > { %v2773_v42 = vadd.f32 %v5831_v50, %v2737_v16  ;;  %v3160_v19 = vadd.f32 %v3063_v11, %v2971_v13  ;;  %v3104_v55 = vrot.slane %v3488_v63, 1  ;;  %v3489_v11 = vld [vmem:[%s3701_s12 + $0x158] sm:$0xff]  ;;  %v6755_v43 = vmov %v6749_v9 }
 0x21e   : > { %3387 = vmatmul.msk.f32.gmra.mxu1 %vm2829_vm5, %v2804_v23  ;;  %3206 = vst.msk [vmem:[%s5420_s8 + $0xb8] sm:$0xff] %vm354_vm0, %v3174_v29  ;;  %v3161_v45 = vadd.f32 %v3066_v35, %v2974_v53  ;;  %v3105_v57 = vrot.slane %v3489_v11, 1  ;;  %v3073_v32 = vsel %vm1398_vm2, %v6755_v43, %v3072_v18  ;;  %v3074_v2 = vrot.slane %v3490_v22, 1  ;;  %v3496_v9 = vld [vmem:[%s3701_s12 + $0xd8] sm:$0xff] }
 0x21f   : > { %3192 = vst.msk [vmem:[%s5420_s8 + $0x48] sm:$0xff] %vm354_vm0, %v3160_v19  ;;  %v2805_v51 = vmax.f32 %v2773_v42, 0.0  ;;  %v3075_v46 = vrot.slane %v3491_v17, 1  ;;  %v3107_v35 = vrot.slane %v3492_v62, 1  ;;  %v3077_v3 = vrot.slane %v3493_v34, 1  ;;  %v3498_v23 = vld [vmem:[%s3701_s12 + $0x178] sm:$0xff] }
 0x220   : > { %3193 = vst.msk [vmem:[%s5420_s8 + $0x50] sm:$0xff] %vm354_vm0, %v3161_v45  ;;  %v3015_v37 = vpop.f32.mrf.mxu3  ;;  %v3106_v41 = vsel %vm1398_vm2, %v3104_v55, %v3105_v57  ;;  %v3110_v56 = vrot.slane %v3495_v4, 1  ;;  %v3079_v38 = vrot.slane %v3496_v9, 1  ;;  %v3112_v16 = vrot.slane %v3498_v23, 1  ;;  %v3499_v19 = vld [vmem:[%s3701_s12 + $0xe8] sm:$0xff] }
 0x221   : > { %v3016_v50 = vadd.f32 %v6009_v52, %v3015_v37  ;;  %v3076_v21 = vsel %vm1398_vm2, %v3074_v2, %v3075_v46  ;;  %v3108_v5 = vsel %vm1398_vm2, %v3105_v57, %v3107_v35  ;;  %v3078_v24 = vsel %vm1398_vm2, %v3075_v46, %v3077_v3  ;;  %v3501_v45 = vld [vmem:[%s3701_s12 + $0x188] sm:$0xff]  ;;  %v3502_v37 = vld [vmem:[%s3701_s12 + $0xf0] sm:$0xff]  ;;  %v3505_v35 = vld [vmem:[%s3701_s12 + $0x100] sm:$0xff] }
 0x222   : > { %v3113_v13 = vsel %vm1398_vm2, %v3110_v56, %v3112_v16  ;;  %v3114_v53 = vrot.slane %v3500_v60, 1  ;;  %v3115_v39 = vrot.slane %v3501_v45, 1  ;;  %v3506_v9 = vld [vmem:[%s3701_s12 + $0x108] sm:$0xff] }
 0x223   : > { %v2976_v25 = vpop.f32.mrf.mxu1  ;;  %v3175_v27 = vadd.f32 %v3101_v12, %v3016_v50  ;;  %v3494_v12 = vld [vmem:[%s3701_s12 + $0x168] sm:$0xff]  ;;  %v3084_v50 = vrot.slane %v3502_v37, 1 }
 0x224   : > { %v2977_v20 = vadd.f32 %v6009_v52, %v2976_v25  ;;  %v3109_v26 = vrot.slane %v3494_v12, 1  ;;  %v3503_v25 = vld [vmem:[%s3701_s12 + $0xf8] sm:$0xff]  ;;  %v3116_v55 = vsel %vm1398_vm2, %v3114_v53, %v3115_v39 }
 0x225   : > { %3207 = vst.msk [vmem:[%s5420_s8 + $0xc0] sm:$0xff] %vm354_vm0, %v3175_v27  ;;  %v3085_v27 = vrot.slane %v3503_v25, 1 }
 0x226   : > { %3388 = vmatmul.msk.f32.gmra.mxu1 %vm2829_vm5, %v2805_v51  ;;  %v3162_v49 = vadd.f32 %v3068_v33, %v2977_v20  ;;  %v3111_v31 = vsel %vm1398_vm2, %v3109_v26, %v3110_v56  ;;  %v3082_v51 = vrot.slane %v3499_v19, 1 }
 0x227   : > { %v3086_v22 = vsel %vm1398_vm2, %v3084_v50, %v3085_v27 }
 0x228   : > { %3194 = vst.msk [vmem:[%s5420_s8 + $0x58] sm:$0xff] %vm354_vm0, %v3162_v49  ;;  %v3018_v58 = vpop.f32.mrf.mxu3 }
 0x229   : > { %v3019_v59 = vadd.f32 %v6009_v52, %v3018_v58 }
 0x22b   : > { %v2979_v15 = vpop.f32.mrf.mxu1  ;;  %v3176_v33 = vadd.f32 %v3103_v28, %v3019_v59 }
 0x22c   : > { %v2980_v10 = vadd.f32 %v6009_v52, %v2979_v15  ;;  %v3087_v15 = vrot.slane %v3505_v35, 1 }
 0x22d   : > { %3208 = vst.msk [vmem:[%s5420_s8 + $0xc8] sm:$0xff] %vm354_vm0, %v3176_v33 }
 0x22e   : > { %v3163_v48 = vadd.f32 %v3071_v47, %v2980_v10  ;;  %v3080_v47 = vrot.slane %v3497_v6, 1 }
 0x230   : > { %3195 = vst.msk [vmem:[%s5420_s8 + $0x60] sm:$0xff] %vm354_vm0, %v3163_v48  ;;  %v3081_v29 = vsel %vm1398_vm2, %v3079_v38, %v3080_v47  ;;  %v3083_v18 = vsel %vm1398_vm2, %v3080_v47, %v3082_v51  ;;  %v3088_v48 = vsel %vm1398_vm2, %v3085_v27, %v3087_v15  ;;  %v3089_v38 = vrot.slane %v3506_v9, 1 }
 0x231   : > { %v6756_v47 = vrot.slane %v6717_v40, 1 }
 0x23c   : > { %v3021_v7 = vpop.f32.mrf.mxu3 }
 0x23d   : > { %v3022_v14 = vadd.f32 %v6009_v52, %v3021_v7 }
 0x23f   : > { %v3177_v36 = vadd.f32 %v3106_v41, %v3022_v14 }
 0x240   : > { %v2982_v54 = vpop.f32.mrf.mxu1 }
 0x241   : > { %v2983_v8 = vadd.f32 %v6009_v52, %v2982_v54  ;;  %3209 = vst.msk [vmem:[%s5420_s8 + $0xd0] sm:$0xff] %vm354_vm0, %v3177_v36 }
 0x243   : > { %v3164_v1 = vadd.f32 %v3073_v32, %v2983_v8  ;;  %v3504_v32 = vld [vmem:[%s3701_s12 + $0x190] sm:$0xff]  ;;  %s3521_s12 = sshra.s32 %s3234_s30, 4  ;;  %s3522_s12 = int_to_ptr.hbm [resolvable:$true] %s3521_s12 }
 0x244   : > { %v3117_v49 = vrot.slane %v3504_v32, 1  ;;  %s3523_s10 = scalar_lea.hbm %s3522_s12, 256  ;;  %p3528_p1 = scmp.lt.s32.totalorder %s3522_s12, %s6231_s7 }
 0x245   : > { %3196 = vst.msk [vmem:[%s5420_s8 + $0x68] sm:$0xff] %vm354_vm0, %v3164_v1  ;;  %v3091_v1 = vsel %vm1398_vm2, %v3089_v38, %v6756_v47  ;;  %p3524_p12 = scmp.ne.s32.totalorder %s3522_s12, %s3523_s10  ;;  %p3529_p2 = scmp.lt.s32.totalorder %s3527_s17, %s3523_s10 }
 0x246   : > { %v3118_v17 = vsel %vm1398_vm2, %v3115_v39, %v3117_v49 }
 0x247   : > { %p3525_p13 = pnand %p3524_p12, %p3669_p4  ;;  %p3530_p3 = por %p3529_p2, %p3528_p1 }
 0x249   : > { %v2985_v30 = vpop.f32.mrf.mxu1  ;;  %p3526_p0 = pneg %p3525_p13 }
 0x24a   : > { %v2986_v44 = vadd.f32 %v6009_v52, %v2985_v30  ;;  %v3024_v0 = vpop.f32.mrf.mxu3 }
 0x24b   : > { %v3025_v61 = vadd.f32 %v6009_v52, %v3024_v0  ;;  %p3531_p5 = pnand %p3530_p3, %p3526_p0 }
 0x24c   : > { %v3165_v28 = vadd.f32 %v3076_v21, %v2986_v44 }
 0x24d   : > { %v3178_v42 = vadd.f32 %v3108_v5, %v3025_v61 }
 0x24e   : > { %3197 = vst.msk [vmem:[%s5420_s8 + $0x70] sm:$0xff] %vm354_vm0, %v3165_v28 }
 0x24f   : > { %3210 = vst.msk [vmem:[%s5420_s8 + $0xd8] sm:$0xff] %vm354_vm0, %v3178_v42 }
 0x25f   : > { %v3027_v63 = vpop.f32.mrf.mxu3 }
 0x260   : > { %v3028_v11 = vadd.f32 %v6009_v52, %v3027_v63 }
 0x262   : > { %v2988_v57 = vpop.f32.mrf.mxu1  ;;  %v3179_v43 = vadd.f32 %v3111_v31, %v3028_v11 }
 0x263   : > { %v2989_v20 = vadd.f32 %v6009_v52, %v2988_v57 }
 0x264   : > { %3211 = vst.msk [vmem:[%s5420_s8 + $0xe0] sm:$0xff] %vm354_vm0, %v3179_v43 }
 0x265   : > { %v3166_v2 = vadd.f32 %v3078_v24, %v2989_v20 }
 0x267   : > { %3198 = vst.msk [vmem:[%s5420_s8 + $0x78] sm:$0xff] %vm354_vm0, %v3166_v2 }
 0x26b   : > { %v2991_v46 = vpop.f32.mrf.mxu1 }
 0x26c   : > { %v2992_v41 = vadd.f32 %v6009_v52, %v2991_v46  ;;  %v3030_v62 = vpop.f32.mrf.mxu3 }
 0x26d   : > { %v3031_v10 = vadd.f32 %v6009_v52, %v3030_v62 }
 0x26e   : > { %v3167_v21 = vadd.f32 %v3081_v29, %v2992_v41 }
 0x26f   : > { %v3180_v58 = vadd.f32 %v3113_v13, %v3031_v10 }
 0x270   : > { %3199 = vst.msk [vmem:[%s5420_s8 + $0x80] sm:$0xff] %vm354_vm0, %v3167_v21 }
 0x271   : > { %3212 = vst.msk [vmem:[%s5420_s8 + $0xe8] sm:$0xff] %vm354_vm0, %v3180_v58 }
 0x27c   : > { %v3033_v59 = vpop.f32.mrf.mxu3 }
 0x27d   : > { %v3034_v33 = vadd.f32 %v6009_v52, %v3033_v59 }
 0x27e   : > { %v2994_v5 = vpop.f32.mrf.mxu1 }
 0x27f   : > { %v2995_v34 = vadd.f32 %v6009_v52, %v2994_v5  ;;  %v3181_v3 = vadd.f32 %v3116_v55, %v3034_v33 }
 0x281   : > { %v3168_v7 = vadd.f32 %v3083_v18, %v2995_v34  ;;  %3213 = vst.msk [vmem:[%s5420_s8 + $0xf0] sm:$0xff] %vm354_vm0, %v3181_v3 }
 0x283   : > { %3200 = vst.msk [vmem:[%s5420_s8 + $0x88] sm:$0xff] %vm354_vm0, %v3168_v7 }
 0x284   : > { %v3036_v14 = vpop.f32.mrf.mxu3 }
 0x285   : > { %v3037_v26 = vadd.f32 %v6009_v52, %v3036_v14 }
 0x287   : > { %v2997_v12 = vpop.f32.mrf.mxu1  ;;  %v3182_v56 = vadd.f32 %v3118_v17, %v3037_v26 }
 0x288   : > { %v2998_v4 = vadd.f32 %v6009_v52, %v2997_v12 }
 0x289   : > { %3214 = vst.msk [vmem:[%s5420_s8 + $0xf8] sm:$0xff] %vm354_vm0, %v3182_v56 }
 0x28a   : > { %v3169_v24 = vadd.f32 %v3086_v22, %v2998_v4 }
 0x28c   : > { %3201 = vst.msk [vmem:[%s5420_s8 + $0x90] sm:$0xff] %vm354_vm0, %v3169_v24 }
 0x29b   : > { %v3000_v54 = vpop.f32.mrf.mxu1 }
 0x29c   : > { %v3001_v36 = vadd.f32 %v6009_v52, %v3000_v54 }
 0x29e   : > { %v3170_v8 = vadd.f32 %v3088_v48, %v3001_v36 }
 0x2a0   : > { %3202 = vst.msk [vmem:[%s5420_s8 + $0x98] sm:$0xff] %vm354_vm0, %v3170_v8 }
 0x2a3   : > { %v3003_v6 = vpop.f32.mrf.mxu1 }
 0x2a4   : > { %v3004_v31 = vadd.f32 %v6009_v52, %v3003_v6 }
 0x2a6   : > { %v3171_v23 = vadd.f32 %v3091_v1, %v3004_v31 }
 0x2a8   : > { %3203 = vst.msk [vmem:[%s5420_s8 + $0xa0] sm:$0xff] %vm354_vm0, %v3171_v23 }
 0x2a9   : > { %3534 = shalt.err (!%p3531_p5)
}
 0x2aa   : > { %s3587_s21 = smov 128   ;;  %s3588_s8 = smov 8  }
 0x2ab   : > { %3423 = dma.vmem_to_hbm [thread:$0]  (%p3669_p4), %s3232_s23, 4096, %s3234_s30, %s3216_s27, %s3587_s21, %s3587_s21, %s3588_s8  }
 0x2ac PF: > { %p3429_p6 = scmp.ge.s32.totalorder %s3585_s29, 2  ;;  %s3248_s20 = sand.u32 1, %s3565_s24  }
 0x2ad   : > { %s3249_s22 = scalar_lea.sflag [#allocation3], %s3248_s20 }
 0x2ae   : > { %p3426_p7 = pnand %p3429_p6, %p3676_p8 }
 0x2b0   : > { %p3427_p9 = pneg %p3426_p7 }
 0x2b2   : > { %3560 = dma.done.wait (%p3427_p9), %s3249_s22, 4096  }
 0x2b3   : > { %3562 = vsyncadd (%p3427_p9), %s3249_s22, 4294963200  ;;  %s20_s29 = sadd.s32 1, %s3585_s29   ;;  %s6757_s24 = smov %s3569_s25 }
 0x2b4   : > { %p17_p10 = scmp.ge.s32.totalorder %s20_s29, 4   ;;  %s6758_s25 = smov %s3573_s26 }
 0x2b5   : > { %s6759_s26 = smov %s3682_s14  ;;  %s6760_s27 = smov %s3581_s28 }
 0x2b6   : > { %s6761_s28 = smov %s6763_s9  ;;  %19 = sbr.rel (!%p17_p10) target bundleno = 4 (0x4), region = 83 }
 0x2bb   :  { %3255 = vsyncpa [#allocation3], 1 }
 0x2bc   :  { %3257 = vsyncpa [#allocation3 + $0x1], 1 }

</bundles_post_ra>
